<compile_context>
chip_gen: v5e
topology: v5e:2x2
jax: 0.10.0
libtpu: 0.0.40
codegen_flags: <defaults>
</compile_context>

<pallas_src>
import jax
import jax.numpy as jnp
from jax.experimental import pallas as pl
from jax.experimental.pallas import tpu as pltpu

HIDDEN = 100            # LSTM hidden size
INPUT = 4               # LSTM input size
NL = 3                  # number of LSTMs
OUT_DIM = 3 * 4         # fc output (12)
HP = 128                # hidden padded to one 128-lane block
GW = 4 * HP             # 512: per-LSTM gate width, columns = [i | f | o | g]
OUT_PAD = 128           # fc output padded to one 128-lane block
GATE_SRC = (0, 1, 3, 2)  # packed blocks [i, f, o, g] <- PyTorch rows [i, f, g, o]


# ---------------------------------------------------------------------------
# Fused kernel: 3 dense per-LSTM recurrences + Linear + ReLU
# ---------------------------------------------------------------------------
def _fused_kernel(x1_ref, x2_ref, x3_ref, wih_ref, whh_ref, b_ref,
                  fcw_ref, fcb_ref, out_ref):
    """x{n}_ref: [B, T, INPUT]      raw batch-first inputs (one per LSTM)
       wih_ref:  [NL, INPUT, GW]    dense per-LSTM input weights, f32
       whh_ref:  [NL, HP, GW]       dense per-LSTM recurrent weights, bf16
       b_ref:    [NL, 1, GW]        b_ih + b_hh, f32 (padding lanes zero)
       fcw_ref:  [NL, HP, OUT_PAD]  fc weight split per LSTM (pad rows/cols zero)
       fcb_ref:  [1, OUT_PAD]
       out_ref:  [B, OUT_PAD]
    """
    B = x1_ref.shape[0]
    T = x1_ref.shape[1]
    x_refs = (x1_ref, x2_ref, x3_ref)

    acc = jnp.zeros((B, OUT_PAD), jnp.float32)

    for n in range(NL):                                   # 3 independent LSTMs
        # Hoisted input projection (+ bias) for all timesteps: one tiny matmul,
        # off the recurrent critical path.
        x = x_refs[n][...].reshape(B * T, INPUT)
        xg = (jnp.dot(x, wih_ref[n], preferred_element_type=jnp.float32)
              + b_ref[n]).reshape(B, T, GW)               # [B, T, GW]

        w_hh = whh_ref[n]                                  # [HP, GW] bf16, hoisted
        h = jnp.zeros((B, HP), jnp.float32)
        c = jnp.zeros((B, HP), jnp.float32)

        # Fully unrolled recurrence (T small and static); dense [B,128]@[128,512].
        for t in range(T):
            gates = jnp.dot(h.astype(jnp.bfloat16), w_hh,
                            preferred_element_type=jnp.float32) + xg[:, t, :]
            sig = jax.nn.sigmoid(gates[:, 0:3 * HP])       # [i | f | o] in one shot
            g = jnp.tanh(gates[:, 3 * HP:GW])
            i = sig[:, 0:HP]
            f = sig[:, HP:2 * HP]
            o = sig[:, 2 * HP:3 * HP]
            c = f * c + i * g
            h = o * jnp.tanh(c)
            # Padding lanes stay exactly zero: padded W/b columns are zero, so
            # c_pad = sig(0)*0 + sig(0)*tanh(0) = 0 and h_pad = sig(0)*tanh(0) = 0.

        # Per-LSTM contribution to the final Linear, fused in-kernel.
        acc = acc + jnp.dot(h, fcw_ref[n], preferred_element_type=jnp.float32)

    out_ref[...] = jnp.maximum(acc + fcb_ref[...], 0.0)    # ReLU, lane-dense store


# ---------------------------------------------------------------------------
# Wrapper
# ---------------------------------------------------------------------------
def seq_classifier_forward(packed, x1, x2, x3):
    """x1, x2, x3: [B, T, INPUT] (batch_first, like PyTorch)."""
    B, T, _ = x1.shape
    vmem = pl.BlockSpec(memory_space=pltpu.MemorySpace.VMEM)

    flops = NL * (2 * B * T * INPUT * GW        # input projections
                  + 2 * B * HP * GW * T         # recurrent matmuls
                  + 2 * B * HP * OUT_PAD)       # fc contributions
    transcendentals = NL * T * B * (3 * HP + HP + HP)   # sigmoids + 2x tanh
    args = (x1, x2, x3, packed["W_ih"], packed["W_hh"], packed["b"],
            packed["FC_W"], packed["FC_b"])
    bytes_accessed = sum(int(a.size) * a.dtype.itemsize for a in args) \
        + B * OUT_PAD * 4

    out_full = pl.pallas_call(
        _fused_kernel,
        out_shape=jax.ShapeDtypeStruct((B, OUT_PAD), jnp.float32),
        in_specs=[vmem] * len(args),
        out_specs=vmem,
        cost_estimate=pl.CostEstimate(flops=flops,
                                      transcendentals=transcendentals,
                                      bytes_accessed=bytes_accessed),
    )(*args)
    return out_full[:, :OUT_DIM]


# ---------------------------------------------------------------------------
# Weight packing: PyTorch layout -> dense per-LSTM, [i|f|o|g]-grouped, padded
# ---------------------------------------------------------------------------
def pack_params(raw):
    W_ih = jnp.zeros((NL, INPUT, GW), jnp.float32)
    W_hh = jnp.zeros((NL, HP, GW), jnp.float32)
    b = jnp.zeros((NL, 1, GW), jnp.float32)
    for n, p in enumerate(raw["lstms"]):
        w_ih = p["w_ih"]                       # [4H, INPUT] (PyTorch order i,f,g,o)
        w_hh = p["w_hh"]                       # [4H, H]
        bias = p["b_ih"] + p["b_hh"]           # [4H]
        for k, src in enumerate(GATE_SRC):     # packed block k <- pytorch gate src
            rows = slice(src * HIDDEN, (src + 1) * HIDDEN)
            col0 = k * HP
            W_ih = W_ih.at[n, :, col0:col0 + HIDDEN].set(w_ih[rows, :].T)
            W_hh = W_hh.at[n, :HIDDEN, col0:col0 + HIDDEN].set(w_hh[rows, :].T)
            b = b.at[n, 0, col0:col0 + HIDDEN].set(bias[rows])
    FC_W = jnp.zeros((NL, HP, OUT_PAD), jnp.float32)
    for n in range(NL):
        FC_W = FC_W.at[n, :HIDDEN, :OUT_DIM].set(
            raw["fc_w"][:, n * HIDDEN:(n + 1) * HIDDEN].T)
    FC_b = jnp.zeros((1, OUT_PAD), jnp.float32).at[0, :OUT_DIM].set(raw["fc_b"])
    return {"W_ih": W_ih,
            "W_hh": W_hh.astype(jnp.bfloat16),   # bf16 recurrent weights
            "b": b, "FC_W": FC_W, "FC_b": FC_b}


# ---------------------------------------------------------------------------
# Pure-JAX f32 reference (mirrors PyTorch LSTM equations)
# ---------------------------------------------------------------------------
def _ref_forward(raw, x1, x2, x3):
    B = x1.shape[0]
    outs = []
    for x, p in zip((x1, x2, x3), raw["lstms"]):
        h = jnp.zeros((B, HIDDEN), jnp.float32)
        c = jnp.zeros((B, HIDDEN), jnp.float32)
        bias = p["b_ih"] + p["b_hh"]
        for t in range(x.shape[1]):
            g = x[:, t, :] @ p["w_ih"].T + h @ p["w_hh"].T + bias
            i = jax.nn.sigmoid(g[:, :HIDDEN])
            f = jax.nn.sigmoid(g[:, HIDDEN:2 * HIDDEN])
            gg = jnp.tanh(g[:, 2 * HIDDEN:3 * HIDDEN])
            o = jax.nn.sigmoid(g[:, 3 * HIDDEN:])
            c = f * c + i * gg
            h = o * jnp.tanh(c)
        outs.append(h)
    l = jnp.concatenate(outs, axis=1)
    return jnp.maximum(l @ raw["fc_w"].T + raw["fc_b"], 0.0)


# ---------------------------------------------------------------------------
def make_params(key):
    ks = jax.random.split(key, 14)
    scale = 0.1
    lstms = []
    for n in range(NL):
        k0, k1, k2, k3 = ks[4 * n:4 * n + 4]
        lstms.append({
            "w_ih": scale * jax.random.normal(k0, (4 * HIDDEN, INPUT), jnp.float32),
            "w_hh": scale * jax.random.normal(k1, (4 * HIDDEN, HIDDEN), jnp.float32),
            "b_ih": scale * jax.random.normal(k2, (4 * HIDDEN,), jnp.float32),
            "b_hh": scale * jax.random.normal(k3, (4 * HIDDEN,), jnp.float32),
        })
    fc_w = scale * jax.random.normal(ks[12], (OUT_DIM, 3 * HIDDEN), jnp.float32)
    fc_b = scale * jax.random.normal(ks[13], (OUT_DIM,), jnp.float32)
    return {"lstms": lstms, "fc_w": fc_w, "fc_b": fc_b}


if __name__ == "__main__":
    key = jax.random.PRNGKey(0)
    kp, kx1, kx2, kx3 = jax.random.split(key, 4)
    raw = make_params(kp)
    packed = pack_params(raw)

    # batch = 1 (implied by the module's persistent (1, 1, 100) cell state), seq = 8
    B, T = 1, 8
    x1 = jax.random.normal(kx1, (B, T, INPUT), jnp.float32)
    x2 = jax.random.normal(kx2, (B, T, INPUT), jnp.float32)
    x3 = jax.random.normal(kx3, (B, T, INPUT), jnp.float32)

    out = seq_classifier_forward(packed, x1, x2, x3)
    out = jax.block_until_ready(out)

    ref = _ref_forward(raw, x1, x2, x3)
    assert out.shape == (B, OUT_DIM)
    # bf16 recurrent weights -> relaxed tolerance vs. the f32 reference.
    assert jnp.allclose(out, ref, atol=2e-2, rtol=2e-2), "mismatch vs reference"

    print("KERNEL_OK")
</pallas_src>

<mosaic_0001>
module attributes {stable_mosaic.version = 11 : i64} {
  func.func @_fused_kernel(%arg0: memref<1x8x4xf32, #tpu.memory_space<vmem>>, %arg1: memref<1x8x4xf32, #tpu.memory_space<vmem>>, %arg2: memref<1x8x4xf32, #tpu.memory_space<vmem>>, %arg3: memref<3x4x512xf32, #tpu.memory_space<vmem>>, %arg4: memref<3x128x512xbf16, #tpu.memory_space<vmem>>, %arg5: memref<3x1x512xf32, #tpu.memory_space<vmem>>, %arg6: memref<3x128x128xf32, #tpu.memory_space<vmem>>, %arg7: memref<1x128xf32, #tpu.memory_space<vmem>>, %arg8: memref<1x128xf32, #tpu.memory_space<vmem>>) attributes {dimension_semantics = [], scalar_prefetch = 0 : i64, scratch_operands = 0 : i64, tpu.core_type = #tpu.core_type<tc>} {
    %cst = arith.constant 0.000000e+00 : f32
    %0 = vector.broadcast %cst : f32 to vector<1x128xf32>
    %c0 = arith.constant 0 : index
    %c0_0 = arith.constant 0 : index
    %c0_1 = arith.constant 0 : index
    %1 = vector.load %arg0[%c0, %c0_0, %c0_1] : memref<1x8x4xf32, #tpu.memory_space<vmem>>, vector<1x8x4xf32>
    %2 = vector.shape_cast %1 : vector<1x8x4xf32> to vector<8x4xf32>
    %c0_2 = arith.constant 0 : index
    %c0_3 = arith.constant 0 : index
    %c0_4 = arith.constant 0 : index
    %3 = vector.load %arg3[%c0_2, %c0_3, %c0_4] : memref<3x4x512xf32, #tpu.memory_space<vmem>>, vector<1x4x512xf32>
    %4 = vector.shape_cast %3 : vector<1x4x512xf32> to vector<4x512xf32>
    %cst_5 = arith.constant dense<0.000000e+00> : vector<8x512xf32>
    %5 = tpu.matmul %2, %4, %cst_5 {dimension_numbers = #tpu.dot_dimension_numbers<[1], [0], [0], [1], [0, 0, 1, 1], [], []>} : vector<8x4xf32>, vector<4x512xf32>, vector<8x512xf32> -> vector<8x512xf32>
    %c0_6 = arith.constant 0 : index
    %c0_7 = arith.constant 0 : index
    %c0_8 = arith.constant 0 : index
    %6 = vector.load %arg5[%c0_6, %c0_7, %c0_8] : memref<3x1x512xf32, #tpu.memory_space<vmem>>, vector<1x1x512xf32>
    %7 = vector.shape_cast %6 : vector<1x1x512xf32> to vector<1x512xf32>
    %8 = vector.broadcast %7 : vector<1x512xf32> to vector<8x512xf32>
    %9 = arith.addf %5, %8 : vector<8x512xf32>
    %10 = vector.shape_cast %9 : vector<8x512xf32> to vector<1x8x512xf32>
    %c0_9 = arith.constant 0 : index
    %c0_10 = arith.constant 0 : index
    %c0_11 = arith.constant 0 : index
    %11 = vector.load %arg4[%c0_9, %c0_10, %c0_11] : memref<3x128x512xbf16, #tpu.memory_space<vmem>>, vector<1x128x512xbf16>
    %12 = vector.shape_cast %11 : vector<1x128x512xbf16> to vector<128x512xbf16>
    %cst_12 = arith.constant 0.000000e+00 : f32
    %13 = vector.broadcast %cst_12 : f32 to vector<1x128xf32>
    %cst_13 = arith.constant 0.000000e+00 : f32
    %14 = vector.broadcast %cst_13 : f32 to vector<1x128xf32>
    %15 = arith.truncf %13 : vector<1x128xf32> to vector<1x128xbf16>
    %cst_14 = arith.constant dense<0.000000e+00> : vector<1x512xf32>
    %16 = tpu.matmul %15, %12, %cst_14 {dimension_numbers = #tpu.dot_dimension_numbers<[1], [0], [0], [1], [0, 0, 1, 1], [], []>} : vector<1x128xbf16>, vector<128x512xbf16>, vector<1x512xf32> -> vector<1x512xf32>
    %17 = vector.extract_strided_slice %10 {offsets = [0, 0, 0], sizes = [1, 1, 512], strides = [1, 1, 1]} : vector<1x8x512xf32> to vector<1x1x512xf32>
    %18 = vector.shape_cast %17 : vector<1x1x512xf32> to vector<1x512xf32>
    %19 = arith.addf %16, %18 : vector<1x512xf32>
    %20 = vector.extract_strided_slice %19 {offsets = [0, 0], sizes = [1, 384], strides = [1, 1]} : vector<1x512xf32> to vector<1x384xf32>
    %21 = arith.negf %20 : vector<1x384xf32>
    %22 = math.exp %21 : vector<1x384xf32>
    %cst_15 = arith.constant 1.000000e+00 : f32
    %23 = vector.broadcast %cst_15 : f32 to vector<1x384xf32>
    %24 = arith.addf %23, %22 : vector<1x384xf32>
    %25 = arith.divf %23, %24 : vector<1x384xf32>
    %26 = vector.extract_strided_slice %19 {offsets = [0, 384], sizes = [1, 128], strides = [1, 1]} : vector<1x512xf32> to vector<1x128xf32>
    %27 = math.tanh %26 : vector<1x128xf32>
    %28 = vector.extract_strided_slice %25 {offsets = [0, 0], sizes = [1, 128], strides = [1, 1]} : vector<1x384xf32> to vector<1x128xf32>
    %29 = vector.extract_strided_slice %25 {offsets = [0, 128], sizes = [1, 128], strides = [1, 1]} : vector<1x384xf32> to vector<1x128xf32>
    %30 = vector.extract_strided_slice %25 {offsets = [0, 256], sizes = [1, 128], strides = [1, 1]} : vector<1x384xf32> to vector<1x128xf32>
    %31 = arith.mulf %29, %14 : vector<1x128xf32>
    %32 = arith.mulf %28, %27 : vector<1x128xf32>
    %33 = arith.addf %31, %32 : vector<1x128xf32>
    %34 = math.tanh %33 : vector<1x128xf32>
    %35 = arith.mulf %30, %34 : vector<1x128xf32>
    %36 = arith.truncf %35 : vector<1x128xf32> to vector<1x128xbf16>
    %cst_16 = arith.constant dense<0.000000e+00> : vector<1x512xf32>
    %37 = tpu.matmul %36, %12, %cst_16 {dimension_numbers = #tpu.dot_dimension_numbers<[1], [0], [0], [1], [0, 0, 1, 1], [], []>} : vector<1x128xbf16>, vector<128x512xbf16>, vector<1x512xf32> -> vector<1x512xf32>
    %38 = vector.extract_strided_slice %10 {offsets = [0, 1, 0], sizes = [1, 1, 512], strides = [1, 1, 1]} : vector<1x8x512xf32> to vector<1x1x512xf32>
    %39 = vector.shape_cast %38 : vector<1x1x512xf32> to vector<1x512xf32>
    %40 = arith.addf %37, %39 : vector<1x512xf32>
    %41 = vector.extract_strided_slice %40 {offsets = [0, 0], sizes = [1, 384], strides = [1, 1]} : vector<1x512xf32> to vector<1x384xf32>
    %42 = arith.negf %41 : vector<1x384xf32>
    %43 = math.exp %42 : vector<1x384xf32>
    %cst_17 = arith.constant 1.000000e+00 : f32
    %44 = vector.broadcast %cst_17 : f32 to vector<1x384xf32>
    %45 = arith.addf %44, %43 : vector<1x384xf32>
    %46 = arith.divf %44, %45 : vector<1x384xf32>
    %47 = vector.extract_strided_slice %40 {offsets = [0, 384], sizes = [1, 128], strides = [1, 1]} : vector<1x512xf32> to vector<1x128xf32>
    %48 = math.tanh %47 : vector<1x128xf32>
    %49 = vector.extract_strided_slice %46 {offsets = [0, 0], sizes = [1, 128], strides = [1, 1]} : vector<1x384xf32> to vector<1x128xf32>
    %50 = vector.extract_strided_slice %46 {offsets = [0, 128], sizes = [1, 128], strides = [1, 1]} : vector<1x384xf32> to vector<1x128xf32>
    %51 = vector.extract_strided_slice %46 {offsets = [0, 256], sizes = [1, 128], strides = [1, 1]} : vector<1x384xf32> to vector<1x128xf32>
    %52 = arith.mulf %50, %33 : vector<1x128xf32>
    %53 = arith.mulf %49, %48 : vector<1x128xf32>
    %54 = arith.addf %52, %53 : vector<1x128xf32>
    %55 = math.tanh %54 : vector<1x128xf32>
    %56 = arith.mulf %51, %55 : vector<1x128xf32>
    %57 = arith.truncf %56 : vector<1x128xf32> to vector<1x128xbf16>
    %cst_18 = arith.constant dense<0.000000e+00> : vector<1x512xf32>
    %58 = tpu.matmul %57, %12, %cst_18 {dimension_numbers = #tpu.dot_dimension_numbers<[1], [0], [0], [1], [0, 0, 1, 1], [], []>} : vector<1x128xbf16>, vector<128x512xbf16>, vector<1x512xf32> -> vector<1x512xf32>
    %59 = vector.extract_strided_slice %10 {offsets = [0, 2, 0], sizes = [1, 1, 512], strides = [1, 1, 1]} : vector<1x8x512xf32> to vector<1x1x512xf32>
    %60 = vector.shape_cast %59 : vector<1x1x512xf32> to vector<1x512xf32>
    %61 = arith.addf %58, %60 : vector<1x512xf32>
    %62 = vector.extract_strided_slice %61 {offsets = [0, 0], sizes = [1, 384], strides = [1, 1]} : vector<1x512xf32> to vector<1x384xf32>
    %63 = arith.negf %62 : vector<1x384xf32>
    %64 = math.exp %63 : vector<1x384xf32>
    %cst_19 = arith.constant 1.000000e+00 : f32
    %65 = vector.broadcast %cst_19 : f32 to vector<1x384xf32>
    %66 = arith.addf %65, %64 : vector<1x384xf32>
    %67 = arith.divf %65, %66 : vector<1x384xf32>
    %68 = vector.extract_strided_slice %61 {offsets = [0, 384], sizes = [1, 128], strides = [1, 1]} : vector<1x512xf32> to vector<1x128xf32>
    %69 = math.tanh %68 : vector<1x128xf32>
    %70 = vector.extract_strided_slice %67 {offsets = [0, 0], sizes = [1, 128], strides = [1, 1]} : vector<1x384xf32> to vector<1x128xf32>
    %71 = vector.extract_strided_slice %67 {offsets = [0, 128], sizes = [1, 128], strides = [1, 1]} : vector<1x384xf32> to vector<1x128xf32>
    %72 = vector.extract_strided_slice %67 {offsets = [0, 256], sizes = [1, 128], strides = [1, 1]} : vector<1x384xf32> to vector<1x128xf32>
    %73 = arith.mulf %71, %54 : vector<1x128xf32>
    %74 = arith.mulf %70, %69 : vector<1x128xf32>
    %75 = arith.addf %73, %74 : vector<1x128xf32>
    %76 = math.tanh %75 : vector<1x128xf32>
    %77 = arith.mulf %72, %76 : vector<1x128xf32>
    %78 = arith.truncf %77 : vector<1x128xf32> to vector<1x128xbf16>
    %cst_20 = arith.constant dense<0.000000e+00> : vector<1x512xf32>
    %79 = tpu.matmul %78, %12, %cst_20 {dimension_numbers = #tpu.dot_dimension_numbers<[1], [0], [0], [1], [0, 0, 1, 1], [], []>} : vector<1x128xbf16>, vector<128x512xbf16>, vector<1x512xf32> -> vector<1x512xf32>
    %80 = vector.extract_strided_slice %10 {offsets = [0, 3, 0], sizes = [1, 1, 512], strides = [1, 1, 1]} : vector<1x8x512xf32> to vector<1x1x512xf32>
    %81 = vector.shape_cast %80 : vector<1x1x512xf32> to vector<1x512xf32>
    %82 = arith.addf %79, %81 : vector<1x512xf32>
    %83 = vector.extract_strided_slice %82 {offsets = [0, 0], sizes = [1, 384], strides = [1, 1]} : vector<1x512xf32> to vector<1x384xf32>
    %84 = arith.negf %83 : vector<1x384xf32>
    %85 = math.exp %84 : vector<1x384xf32>
    %cst_21 = arith.constant 1.000000e+00 : f32
    %86 = vector.broadcast %cst_21 : f32 to vector<1x384xf32>
    %87 = arith.addf %86, %85 : vector<1x384xf32>
    %88 = arith.divf %86, %87 : vector<1x384xf32>
    %89 = vector.extract_strided_slice %82 {offsets = [0, 384], sizes = [1, 128], strides = [1, 1]} : vector<1x512xf32> to vector<1x128xf32>
    %90 = math.tanh %89 : vector<1x128xf32>
    %91 = vector.extract_strided_slice %88 {offsets = [0, 0], sizes = [1, 128], strides = [1, 1]} : vector<1x384xf32> to vector<1x128xf32>
    %92 = vector.extract_strided_slice %88 {offsets = [0, 128], sizes = [1, 128], strides = [1, 1]} : vector<1x384xf32> to vector<1x128xf32>
    %93 = vector.extract_strided_slice %88 {offsets = [0, 256], sizes = [1, 128], strides = [1, 1]} : vector<1x384xf32> to vector<1x128xf32>
    %94 = arith.mulf %92, %75 : vector<1x128xf32>
    %95 = arith.mulf %91, %90 : vector<1x128xf32>
    %96 = arith.addf %94, %95 : vector<1x128xf32>
    %97 = math.tanh %96 : vector<1x128xf32>
    %98 = arith.mulf %93, %97 : vector<1x128xf32>
    %99 = arith.truncf %98 : vector<1x128xf32> to vector<1x128xbf16>
    %cst_22 = arith.constant dense<0.000000e+00> : vector<1x512xf32>
    %100 = tpu.matmul %99, %12, %cst_22 {dimension_numbers = #tpu.dot_dimension_numbers<[1], [0], [0], [1], [0, 0, 1, 1], [], []>} : vector<1x128xbf16>, vector<128x512xbf16>, vector<1x512xf32> -> vector<1x512xf32>
    %101 = vector.extract_strided_slice %10 {offsets = [0, 4, 0], sizes = [1, 1, 512], strides = [1, 1, 1]} : vector<1x8x512xf32> to vector<1x1x512xf32>
    %102 = vector.shape_cast %101 : vector<1x1x512xf32> to vector<1x512xf32>
    %103 = arith.addf %100, %102 : vector<1x512xf32>
    %104 = vector.extract_strided_slice %103 {offsets = [0, 0], sizes = [1, 384], strides = [1, 1]} : vector<1x512xf32> to vector<1x384xf32>
    %105 = arith.negf %104 : vector<1x384xf32>
    %106 = math.exp %105 : vector<1x384xf32>
    %cst_23 = arith.constant 1.000000e+00 : f32
    %107 = vector.broadcast %cst_23 : f32 to vector<1x384xf32>
    %108 = arith.addf %107, %106 : vector<1x384xf32>
    %109 = arith.divf %107, %108 : vector<1x384xf32>
    %110 = vector.extract_strided_slice %103 {offsets = [0, 384], sizes = [1, 128], strides = [1, 1]} : vector<1x512xf32> to vector<1x128xf32>
    %111 = math.tanh %110 : vector<1x128xf32>
    %112 = vector.extract_strided_slice %109 {offsets = [0, 0], sizes = [1, 128], strides = [1, 1]} : vector<1x384xf32> to vector<1x128xf32>
    %113 = vector.extract_strided_slice %109 {offsets = [0, 128], sizes = [1, 128], strides = [1, 1]} : vector<1x384xf32> to vector<1x128xf32>
    %114 = vector.extract_strided_slice %109 {offsets = [0, 256], sizes = [1, 128], strides = [1, 1]} : vector<1x384xf32> to vector<1x128xf32>
    %115 = arith.mulf %113, %96 : vector<1x128xf32>
    %116 = arith.mulf %112, %111 : vector<1x128xf32>
    %117 = arith.addf %115, %116 : vector<1x128xf32>
    %118 = math.tanh %117 : vector<1x128xf32>
    %119 = arith.mulf %114, %118 : vector<1x128xf32>
    %120 = arith.truncf %119 : vector<1x128xf32> to vector<1x128xbf16>
    %cst_24 = arith.constant dense<0.000000e+00> : vector<1x512xf32>
    %121 = tpu.matmul %120, %12, %cst_24 {dimension_numbers = #tpu.dot_dimension_numbers<[1], [0], [0], [1], [0, 0, 1, 1], [], []>} : vector<1x128xbf16>, vector<128x512xbf16>, vector<1x512xf32> -> vector<1x512xf32>
    %122 = vector.extract_strided_slice %10 {offsets = [0, 5, 0], sizes = [1, 1, 512], strides = [1, 1, 1]} : vector<1x8x512xf32> to vector<1x1x512xf32>
    %123 = vector.shape_cast %122 : vector<1x1x512xf32> to vector<1x512xf32>
    %124 = arith.addf %121, %123 : vector<1x512xf32>
    %125 = vector.extract_strided_slice %124 {offsets = [0, 0], sizes = [1, 384], strides = [1, 1]} : vector<1x512xf32> to vector<1x384xf32>
    %126 = arith.negf %125 : vector<1x384xf32>
    %127 = math.exp %126 : vector<1x384xf32>
    %cst_25 = arith.constant 1.000000e+00 : f32
    %128 = vector.broadcast %cst_25 : f32 to vector<1x384xf32>
    %129 = arith.addf %128, %127 : vector<1x384xf32>
    %130 = arith.divf %128, %129 : vector<1x384xf32>
    %131 = vector.extract_strided_slice %124 {offsets = [0, 384], sizes = [1, 128], strides = [1, 1]} : vector<1x512xf32> to vector<1x128xf32>
    %132 = math.tanh %131 : vector<1x128xf32>
    %133 = vector.extract_strided_slice %130 {offsets = [0, 0], sizes = [1, 128], strides = [1, 1]} : vector<1x384xf32> to vector<1x128xf32>
    %134 = vector.extract_strided_slice %130 {offsets = [0, 128], sizes = [1, 128], strides = [1, 1]} : vector<1x384xf32> to vector<1x128xf32>
    %135 = vector.extract_strided_slice %130 {offsets = [0, 256], sizes = [1, 128], strides = [1, 1]} : vector<1x384xf32> to vector<1x128xf32>
    %136 = arith.mulf %134, %117 : vector<1x128xf32>
    %137 = arith.mulf %133, %132 : vector<1x128xf32>
    %138 = arith.addf %136, %137 : vector<1x128xf32>
    %139 = math.tanh %138 : vector<1x128xf32>
    %140 = arith.mulf %135, %139 : vector<1x128xf32>
    %141 = arith.truncf %140 : vector<1x128xf32> to vector<1x128xbf16>
    %cst_26 = arith.constant dense<0.000000e+00> : vector<1x512xf32>
    %142 = tpu.matmul %141, %12, %cst_26 {dimension_numbers = #tpu.dot_dimension_numbers<[1], [0], [0], [1], [0, 0, 1, 1], [], []>} : vector<1x128xbf16>, vector<128x512xbf16>, vector<1x512xf32> -> vector<1x512xf32>
    %143 = vector.extract_strided_slice %10 {offsets = [0, 6, 0], sizes = [1, 1, 512], strides = [1, 1, 1]} : vector<1x8x512xf32> to vector<1x1x512xf32>
    %144 = vector.shape_cast %143 : vector<1x1x512xf32> to vector<1x512xf32>
    %145 = arith.addf %142, %144 : vector<1x512xf32>
    %146 = vector.extract_strided_slice %145 {offsets = [0, 0], sizes = [1, 384], strides = [1, 1]} : vector<1x512xf32> to vector<1x384xf32>
    %147 = arith.negf %146 : vector<1x384xf32>
    %148 = math.exp %147 : vector<1x384xf32>
    %cst_27 = arith.constant 1.000000e+00 : f32
    %149 = vector.broadcast %cst_27 : f32 to vector<1x384xf32>
    %150 = arith.addf %149, %148 : vector<1x384xf32>
    %151 = arith.divf %149, %150 : vector<1x384xf32>
    %152 = vector.extract_strided_slice %145 {offsets = [0, 384], sizes = [1, 128], strides = [1, 1]} : vector<1x512xf32> to vector<1x128xf32>
    %153 = math.tanh %152 : vector<1x128xf32>
    %154 = vector.extract_strided_slice %151 {offsets = [0, 0], sizes = [1, 128], strides = [1, 1]} : vector<1x384xf32> to vector<1x128xf32>
    %155 = vector.extract_strided_slice %151 {offsets = [0, 128], sizes = [1, 128], strides = [1, 1]} : vector<1x384xf32> to vector<1x128xf32>
    %156 = vector.extract_strided_slice %151 {offsets = [0, 256], sizes = [1, 128], strides = [1, 1]} : vector<1x384xf32> to vector<1x128xf32>
    %157 = arith.mulf %155, %138 : vector<1x128xf32>
    %158 = arith.mulf %154, %153 : vector<1x128xf32>
    %159 = arith.addf %157, %158 : vector<1x128xf32>
    %160 = math.tanh %159 : vector<1x128xf32>
    %161 = arith.mulf %156, %160 : vector<1x128xf32>
    %162 = arith.truncf %161 : vector<1x128xf32> to vector<1x128xbf16>
    %cst_28 = arith.constant dense<0.000000e+00> : vector<1x512xf32>
    %163 = tpu.matmul %162, %12, %cst_28 {dimension_numbers = #tpu.dot_dimension_numbers<[1], [0], [0], [1], [0, 0, 1, 1], [], []>} : vector<1x128xbf16>, vector<128x512xbf16>, vector<1x512xf32> -> vector<1x512xf32>
    %164 = vector.extract_strided_slice %10 {offsets = [0, 7, 0], sizes = [1, 1, 512], strides = [1, 1, 1]} : vector<1x8x512xf32> to vector<1x1x512xf32>
    %165 = vector.shape_cast %164 : vector<1x1x512xf32> to vector<1x512xf32>
    %166 = arith.addf %163, %165 : vector<1x512xf32>
    %167 = vector.extract_strided_slice %166 {offsets = [0, 0], sizes = [1, 384], strides = [1, 1]} : vector<1x512xf32> to vector<1x384xf32>
    %168 = arith.negf %167 : vector<1x384xf32>
    %169 = math.exp %168 : vector<1x384xf32>
    %cst_29 = arith.constant 1.000000e+00 : f32
    %170 = vector.broadcast %cst_29 : f32 to vector<1x384xf32>
    %171 = arith.addf %170, %169 : vector<1x384xf32>
    %172 = arith.divf %170, %171 : vector<1x384xf32>
    %173 = vector.extract_strided_slice %166 {offsets = [0, 384], sizes = [1, 128], strides = [1, 1]} : vector<1x512xf32> to vector<1x128xf32>
    %174 = math.tanh %173 : vector<1x128xf32>
    %175 = vector.extract_strided_slice %172 {offsets = [0, 0], sizes = [1, 128], strides = [1, 1]} : vector<1x384xf32> to vector<1x128xf32>
    %176 = vector.extract_strided_slice %172 {offsets = [0, 128], sizes = [1, 128], strides = [1, 1]} : vector<1x384xf32> to vector<1x128xf32>
    %177 = vector.extract_strided_slice %172 {offsets = [0, 256], sizes = [1, 128], strides = [1, 1]} : vector<1x384xf32> to vector<1x128xf32>
    %178 = arith.mulf %176, %159 : vector<1x128xf32>
    %179 = arith.mulf %175, %174 : vector<1x128xf32>
    %180 = arith.addf %178, %179 : vector<1x128xf32>
    %181 = math.tanh %180 : vector<1x128xf32>
    %182 = arith.mulf %177, %181 : vector<1x128xf32>
    %c0_30 = arith.constant 0 : index
    %c0_31 = arith.constant 0 : index
    %c0_32 = arith.constant 0 : index
    %183 = vector.load %arg6[%c0_30, %c0_31, %c0_32] : memref<3x128x128xf32, #tpu.memory_space<vmem>>, vector<1x128x128xf32>
    %184 = vector.shape_cast %183 : vector<1x128x128xf32> to vector<128x128xf32>
    %cst_33 = arith.constant dense<0.000000e+00> : vector<1x128xf32>
    %185 = tpu.matmul %182, %184, %cst_33 {dimension_numbers = #tpu.dot_dimension_numbers<[1], [0], [0], [1], [0, 0, 1, 1], [], []>} : vector<1x128xf32>, vector<128x128xf32>, vector<1x128xf32> -> vector<1x128xf32>
    %186 = arith.addf %0, %185 : vector<1x128xf32>
    %c0_34 = arith.constant 0 : index
    %c0_35 = arith.constant 0 : index
    %c0_36 = arith.constant 0 : index
    %187 = vector.load %arg1[%c0_34, %c0_35, %c0_36] : memref<1x8x4xf32, #tpu.memory_space<vmem>>, vector<1x8x4xf32>
    %188 = vector.shape_cast %187 : vector<1x8x4xf32> to vector<8x4xf32>
    %c1 = arith.constant 1 : index
    %c0_37 = arith.constant 0 : index
    %c0_38 = arith.constant 0 : index
    %189 = vector.load %arg3[%c1, %c0_37, %c0_38] : memref<3x4x512xf32, #tpu.memory_space<vmem>>, vector<1x4x512xf32>
    %190 = vector.shape_cast %189 : vector<1x4x512xf32> to vector<4x512xf32>
    %cst_39 = arith.constant dense<0.000000e+00> : vector<8x512xf32>
    %191 = tpu.matmul %188, %190, %cst_39 {dimension_numbers = #tpu.dot_dimension_numbers<[1], [0], [0], [1], [0, 0, 1, 1], [], []>} : vector<8x4xf32>, vector<4x512xf32>, vector<8x512xf32> -> vector<8x512xf32>
    %c1_40 = arith.constant 1 : index
    %c0_41 = arith.constant 0 : index
    %c0_42 = arith.constant 0 : index
    %192 = vector.load %arg5[%c1_40, %c0_41, %c0_42] : memref<3x1x512xf32, #tpu.memory_space<vmem>>, vector<1x1x512xf32>
    %193 = vector.shape_cast %192 : vector<1x1x512xf32> to vector<1x512xf32>
    %194 = vector.broadcast %193 : vector<1x512xf32> to vector<8x512xf32>
    %195 = arith.addf %191, %194 : vector<8x512xf32>
    %196 = vector.shape_cast %195 : vector<8x512xf32> to vector<1x8x512xf32>
    %c1_43 = arith.constant 1 : index
    %c0_44 = arith.constant 0 : index
    %c0_45 = arith.constant 0 : index
    %197 = vector.load %arg4[%c1_43, %c0_44, %c0_45] : memref<3x128x512xbf16, #tpu.memory_space<vmem>>, vector<1x128x512xbf16>
    %198 = vector.shape_cast %197 : vector<1x128x512xbf16> to vector<128x512xbf16>
    %cst_46 = arith.constant 0.000000e+00 : f32
    %199 = vector.broadcast %cst_46 : f32 to vector<1x128xf32>
    %cst_47 = arith.constant 0.000000e+00 : f32
    %200 = vector.broadcast %cst_47 : f32 to vector<1x128xf32>
    %201 = arith.truncf %199 : vector<1x128xf32> to vector<1x128xbf16>
    %cst_48 = arith.constant dense<0.000000e+00> : vector<1x512xf32>
    %202 = tpu.matmul %201, %198, %cst_48 {dimension_numbers = #tpu.dot_dimension_numbers<[1], [0], [0], [1], [0, 0, 1, 1], [], []>} : vector<1x128xbf16>, vector<128x512xbf16>, vector<1x512xf32> -> vector<1x512xf32>
    %203 = vector.extract_strided_slice %196 {offsets = [0, 0, 0], sizes = [1, 1, 512], strides = [1, 1, 1]} : vector<1x8x512xf32> to vector<1x1x512xf32>
    %204 = vector.shape_cast %203 : vector<1x1x512xf32> to vector<1x512xf32>
    %205 = arith.addf %202, %204 : vector<1x512xf32>
    %206 = vector.extract_strided_slice %205 {offsets = [0, 0], sizes = [1, 384], strides = [1, 1]} : vector<1x512xf32> to vector<1x384xf32>
    %207 = arith.negf %206 : vector<1x384xf32>
    %208 = math.exp %207 : vector<1x384xf32>
    %cst_49 = arith.constant 1.000000e+00 : f32
    %209 = vector.broadcast %cst_49 : f32 to vector<1x384xf32>
    %210 = arith.addf %209, %208 : vector<1x384xf32>
    %211 = arith.divf %209, %210 : vector<1x384xf32>
    %212 = vector.extract_strided_slice %205 {offsets = [0, 384], sizes = [1, 128], strides = [1, 1]} : vector<1x512xf32> to vector<1x128xf32>
    %213 = math.tanh %212 : vector<1x128xf32>
    %214 = vector.extract_strided_slice %211 {offsets = [0, 0], sizes = [1, 128], strides = [1, 1]} : vector<1x384xf32> to vector<1x128xf32>
    %215 = vector.extract_strided_slice %211 {offsets = [0, 128], sizes = [1, 128], strides = [1, 1]} : vector<1x384xf32> to vector<1x128xf32>
    %216 = vector.extract_strided_slice %211 {offsets = [0, 256], sizes = [1, 128], strides = [1, 1]} : vector<1x384xf32> to vector<1x128xf32>
    %217 = arith.mulf %215, %200 : vector<1x128xf32>
    %218 = arith.mulf %214, %213 : vector<1x128xf32>
    %219 = arith.addf %217, %218 : vector<1x128xf32>
    %220 = math.tanh %219 : vector<1x128xf32>
    %221 = arith.mulf %216, %220 : vector<1x128xf32>
    %222 = arith.truncf %221 : vector<1x128xf32> to vector<1x128xbf16>
    %cst_50 = arith.constant dense<0.000000e+00> : vector<1x512xf32>
    %223 = tpu.matmul %222, %198, %cst_50 {dimension_numbers = #tpu.dot_dimension_numbers<[1], [0], [0], [1], [0, 0, 1, 1], [], []>} : vector<1x128xbf16>, vector<128x512xbf16>, vector<1x512xf32> -> vector<1x512xf32>
    %224 = vector.extract_strided_slice %196 {offsets = [0, 1, 0], sizes = [1, 1, 512], strides = [1, 1, 1]} : vector<1x8x512xf32> to vector<1x1x512xf32>
    %225 = vector.shape_cast %224 : vector<1x1x512xf32> to vector<1x512xf32>
    %226 = arith.addf %223, %225 : vector<1x512xf32>
    %227 = vector.extract_strided_slice %226 {offsets = [0, 0], sizes = [1, 384], strides = [1, 1]} : vector<1x512xf32> to vector<1x384xf32>
    %228 = arith.negf %227 : vector<1x384xf32>
    %229 = math.exp %228 : vector<1x384xf32>
    %cst_51 = arith.constant 1.000000e+00 : f32
    %230 = vector.broadcast %cst_51 : f32 to vector<1x384xf32>
    %231 = arith.addf %230, %229 : vector<1x384xf32>
    %232 = arith.divf %230, %231 : vector<1x384xf32>
    %233 = vector.extract_strided_slice %226 {offsets = [0, 384], sizes = [1, 128], strides = [1, 1]} : vector<1x512xf32> to vector<1x128xf32>
    %234 = math.tanh %233 : vector<1x128xf32>
    %235 = vector.extract_strided_slice %232 {offsets = [0, 0], sizes = [1, 128], strides = [1, 1]} : vector<1x384xf32> to vector<1x128xf32>
    %236 = vector.extract_strided_slice %232 {offsets = [0, 128], sizes = [1, 128], strides = [1, 1]} : vector<1x384xf32> to vector<1x128xf32>
    %237 = vector.extract_strided_slice %232 {offsets = [0, 256], sizes = [1, 128], strides = [1, 1]} : vector<1x384xf32> to vector<1x128xf32>
    %238 = arith.mulf %236, %219 : vector<1x128xf32>
    %239 = arith.mulf %235, %234 : vector<1x128xf32>
    %240 = arith.addf %238, %239 : vector<1x128xf32>
    %241 = math.tanh %240 : vector<1x128xf32>
    %242 = arith.mulf %237, %241 : vector<1x128xf32>
    %243 = arith.truncf %242 : vector<1x128xf32> to vector<1x128xbf16>
    %cst_52 = arith.constant dense<0.000000e+00> : vector<1x512xf32>
    %244 = tpu.matmul %243, %198, %cst_52 {dimension_numbers = #tpu.dot_dimension_numbers<[1], [0], [0], [1], [0, 0, 1, 1], [], []>} : vector<1x128xbf16>, vector<128x512xbf16>, vector<1x512xf32> -> vector<1x512xf32>
    %245 = vector.extract_strided_slice %196 {offsets = [0, 2, 0], sizes = [1, 1, 512], strides = [1, 1, 1]} : vector<1x8x512xf32> to vector<1x1x512xf32>
    %246 = vector.shape_cast %245 : vector<1x1x512xf32> to vector<1x512xf32>
    %247 = arith.addf %244, %246 : vector<1x512xf32>
    %248 = vector.extract_strided_slice %247 {offsets = [0, 0], sizes = [1, 384], strides = [1, 1]} : vector<1x512xf32> to vector<1x384xf32>
    %249 = arith.negf %248 : vector<1x384xf32>
    %250 = math.exp %249 : vector<1x384xf32>
    %cst_53 = arith.constant 1.000000e+00 : f32
    %251 = vector.broadcast %cst_53 : f32 to vector<1x384xf32>
    %252 = arith.addf %251, %250 : vector<1x384xf32>
    %253 = arith.divf %251, %252 : vector<1x384xf32>
    %254 = vector.extract_strided_slice %247 {offsets = [0, 384], sizes = [1, 128], strides = [1, 1]} : vector<1x512xf32> to vector<1x128xf32>
    %255 = math.tanh %254 : vector<1x128xf32>
    %256 = vector.extract_strided_slice %253 {offsets = [0, 0], sizes = [1, 128], strides = [1, 1]} : vector<1x384xf32> to vector<1x128xf32>
    %257 = vector.extract_strided_slice %253 {offsets = [0, 128], sizes = [1, 128], strides = [1, 1]} : vector<1x384xf32> to vector<1x128xf32>
    %258 = vector.extract_strided_slice %253 {offsets = [0, 256], sizes = [1, 128], strides = [1, 1]} : vector<1x384xf32> to vector<1x128xf32>
    %259 = arith.mulf %257, %240 : vector<1x128xf32>
    %260 = arith.mulf %256, %255 : vector<1x128xf32>
    %261 = arith.addf %259, %260 : vector<1x128xf32>
    %262 = math.tanh %261 : vector<1x128xf32>
    %263 = arith.mulf %258, %262 : vector<1x128xf32>
    %264 = arith.truncf %263 : vector<1x128xf32> to vector<1x128xbf16>
    %cst_54 = arith.constant dense<0.000000e+00> : vector<1x512xf32>
    %265 = tpu.matmul %264, %198, %cst_54 {dimension_numbers = #tpu.dot_dimension_numbers<[1], [0], [0], [1], [0, 0, 1, 1], [], []>} : vector<1x128xbf16>, vector<128x512xbf16>, vector<1x512xf32> -> vector<1x512xf32>
    %266 = vector.extract_strided_slice %196 {offsets = [0, 3, 0], sizes = [1, 1, 512], strides = [1, 1, 1]} : vector<1x8x512xf32> to vector<1x1x512xf32>
    %267 = vector.shape_cast %266 : vector<1x1x512xf32> to vector<1x512xf32>
    %268 = arith.addf %265, %267 : vector<1x512xf32>
    %269 = vector.extract_strided_slice %268 {offsets = [0, 0], sizes = [1, 384], strides = [1, 1]} : vector<1x512xf32> to vector<1x384xf32>
    %270 = arith.negf %269 : vector<1x384xf32>
    %271 = math.exp %270 : vector<1x384xf32>
    %cst_55 = arith.constant 1.000000e+00 : f32
    %272 = vector.broadcast %cst_55 : f32 to vector<1x384xf32>
    %273 = arith.addf %272, %271 : vector<1x384xf32>
    %274 = arith.divf %272, %273 : vector<1x384xf32>
    %275 = vector.extract_strided_slice %268 {offsets = [0, 384], sizes = [1, 128], strides = [1, 1]} : vector<1x512xf32> to vector<1x128xf32>
    %276 = math.tanh %275 : vector<1x128xf32>
    %277 = vector.extract_strided_slice %274 {offsets = [0, 0], sizes = [1, 128], strides = [1, 1]} : vector<1x384xf32> to vector<1x128xf32>
    %278 = vector.extract_strided_slice %274 {offsets = [0, 128], sizes = [1, 128], strides = [1, 1]} : vector<1x384xf32> to vector<1x128xf32>
    %279 = vector.extract_strided_slice %274 {offsets = [0, 256], sizes = [1, 128], strides = [1, 1]} : vector<1x384xf32> to vector<1x128xf32>
    %280 = arith.mulf %278, %261 : vector<1x128xf32>
    %281 = arith.mulf %277, %276 : vector<1x128xf32>
    %282 = arith.addf %280, %281 : vector<1x128xf32>
    %283 = math.tanh %282 : vector<1x128xf32>
    %284 = arith.mulf %279, %283 : vector<1x128xf32>
    %285 = arith.truncf %284 : vector<1x128xf32> to vector<1x128xbf16>
    %cst_56 = arith.constant dense<0.000000e+00> : vector<1x512xf32>
    %286 = tpu.matmul %285, %198, %cst_56 {dimension_numbers = #tpu.dot_dimension_numbers<[1], [0], [0], [1], [0, 0, 1, 1], [], []>} : vector<1x128xbf16>, vector<128x512xbf16>, vector<1x512xf32> -> vector<1x512xf32>
    %287 = vector.extract_strided_slice %196 {offsets = [0, 4, 0], sizes = [1, 1, 512], strides = [1, 1, 1]} : vector<1x8x512xf32> to vector<1x1x512xf32>
    %288 = vector.shape_cast %287 : vector<1x1x512xf32> to vector<1x512xf32>
    %289 = arith.addf %286, %288 : vector<1x512xf32>
    %290 = vector.extract_strided_slice %289 {offsets = [0, 0], sizes = [1, 384], strides = [1, 1]} : vector<1x512xf32> to vector<1x384xf32>
    %291 = arith.negf %290 : vector<1x384xf32>
    %292 = math.exp %291 : vector<1x384xf32>
    %cst_57 = arith.constant 1.000000e+00 : f32
    %293 = vector.broadcast %cst_57 : f32 to vector<1x384xf32>
    %294 = arith.addf %293, %292 : vector<1x384xf32>
    %295 = arith.divf %293, %294 : vector<1x384xf32>
    %296 = vector.extract_strided_slice %289 {offsets = [0, 384], sizes = [1, 128], strides = [1, 1]} : vector<1x512xf32> to vector<1x128xf32>
    %297 = math.tanh %296 : vector<1x128xf32>
    %298 = vector.extract_strided_slice %295 {offsets = [0, 0], sizes = [1, 128], strides = [1, 1]} : vector<1x384xf32> to vector<1x128xf32>
    %299 = vector.extract_strided_slice %295 {offsets = [0, 128], sizes = [1, 128], strides = [1, 1]} : vector<1x384xf32> to vector<1x128xf32>
    %300 = vector.extract_strided_slice %295 {offsets = [0, 256], sizes = [1, 128], strides = [1, 1]} : vector<1x384xf32> to vector<1x128xf32>
    %301 = arith.mulf %299, %282 : vector<1x128xf32>
    %302 = arith.mulf %298, %297 : vector<1x128xf32>
    %303 = arith.addf %301, %302 : vector<1x128xf32>
    %304 = math.tanh %303 : vector<1x128xf32>
    %305 = arith.mulf %300, %304 : vector<1x128xf32>
    %306 = arith.truncf %305 : vector<1x128xf32> to vector<1x128xbf16>
    %cst_58 = arith.constant dense<0.000000e+00> : vector<1x512xf32>
    %307 = tpu.matmul %306, %198, %cst_58 {dimension_numbers = #tpu.dot_dimension_numbers<[1], [0], [0], [1], [0, 0, 1, 1], [], []>} : vector<1x128xbf16>, vector<128x512xbf16>, vector<1x512xf32> -> vector<1x512xf32>
    %308 = vector.extract_strided_slice %196 {offsets = [0, 5, 0], sizes = [1, 1, 512], strides = [1, 1, 1]} : vector<1x8x512xf32> to vector<1x1x512xf32>
    %309 = vector.shape_cast %308 : vector<1x1x512xf32> to vector<1x512xf32>
    %310 = arith.addf %307, %309 : vector<1x512xf32>
    %311 = vector.extract_strided_slice %310 {offsets = [0, 0], sizes = [1, 384], strides = [1, 1]} : vector<1x512xf32> to vector<1x384xf32>
    %312 = arith.negf %311 : vector<1x384xf32>
    %313 = math.exp %312 : vector<1x384xf32>
    %cst_59 = arith.constant 1.000000e+00 : f32
    %314 = vector.broadcast %cst_59 : f32 to vector<1x384xf32>
    %315 = arith.addf %314, %313 : vector<1x384xf32>
    %316 = arith.divf %314, %315 : vector<1x384xf32>
    %317 = vector.extract_strided_slice %310 {offsets = [0, 384], sizes = [1, 128], strides = [1, 1]} : vector<1x512xf32> to vector<1x128xf32>
    %318 = math.tanh %317 : vector<1x128xf32>
    %319 = vector.extract_strided_slice %316 {offsets = [0, 0], sizes = [1, 128], strides = [1, 1]} : vector<1x384xf32> to vector<1x128xf32>
    %320 = vector.extract_strided_slice %316 {offsets = [0, 128], sizes = [1, 128], strides = [1, 1]} : vector<1x384xf32> to vector<1x128xf32>
    %321 = vector.extract_strided_slice %316 {offsets = [0, 256], sizes = [1, 128], strides = [1, 1]} : vector<1x384xf32> to vector<1x128xf32>
    %322 = arith.mulf %320, %303 : vector<1x128xf32>
    %323 = arith.mulf %319, %318 : vector<1x128xf32>
    %324 = arith.addf %322, %323 : vector<1x128xf32>
    %325 = math.tanh %324 : vector<1x128xf32>
    %326 = arith.mulf %321, %325 : vector<1x128xf32>
    %327 = arith.truncf %326 : vector<1x128xf32> to vector<1x128xbf16>
    %cst_60 = arith.constant dense<0.000000e+00> : vector<1x512xf32>
    %328 = tpu.matmul %327, %198, %cst_60 {dimension_numbers = #tpu.dot_dimension_numbers<[1], [0], [0], [1], [0, 0, 1, 1], [], []>} : vector<1x128xbf16>, vector<128x512xbf16>, vector<1x512xf32> -> vector<1x512xf32>
    %329 = vector.extract_strided_slice %196 {offsets = [0, 6, 0], sizes = [1, 1, 512], strides = [1, 1, 1]} : vector<1x8x512xf32> to vector<1x1x512xf32>
    %330 = vector.shape_cast %329 : vector<1x1x512xf32> to vector<1x512xf32>
    %331 = arith.addf %328, %330 : vector<1x512xf32>
    %332 = vector.extract_strided_slice %331 {offsets = [0, 0], sizes = [1, 384], strides = [1, 1]} : vector<1x512xf32> to vector<1x384xf32>
    %333 = arith.negf %332 : vector<1x384xf32>
    %334 = math.exp %333 : vector<1x384xf32>
    %cst_61 = arith.constant 1.000000e+00 : f32
    %335 = vector.broadcast %cst_61 : f32 to vector<1x384xf32>
    %336 = arith.addf %335, %334 : vector<1x384xf32>
    %337 = arith.divf %335, %336 : vector<1x384xf32>
    %338 = vector.extract_strided_slice %331 {offsets = [0, 384], sizes = [1, 128], strides = [1, 1]} : vector<1x512xf32> to vector<1x128xf32>
    %339 = math.tanh %338 : vector<1x128xf32>
    %340 = vector.extract_strided_slice %337 {offsets = [0, 0], sizes = [1, 128], strides = [1, 1]} : vector<1x384xf32> to vector<1x128xf32>
    %341 = vector.extract_strided_slice %337 {offsets = [0, 128], sizes = [1, 128], strides = [1, 1]} : vector<1x384xf32> to vector<1x128xf32>
    %342 = vector.extract_strided_slice %337 {offsets = [0, 256], sizes = [1, 128], strides = [1, 1]} : vector<1x384xf32> to vector<1x128xf32>
    %343 = arith.mulf %341, %324 : vector<1x128xf32>
    %344 = arith.mulf %340, %339 : vector<1x128xf32>
    %345 = arith.addf %343, %344 : vector<1x128xf32>
    %346 = math.tanh %345 : vector<1x128xf32>
    %347 = arith.mulf %342, %346 : vector<1x128xf32>
    %348 = arith.truncf %347 : vector<1x128xf32> to vector<1x128xbf16>
    %cst_62 = arith.constant dense<0.000000e+00> : vector<1x512xf32>
    %349 = tpu.matmul %348, %198, %cst_62 {dimension_numbers = #tpu.dot_dimension_numbers<[1], [0], [0], [1], [0, 0, 1, 1], [], []>} : vector<1x128xbf16>, vector<128x512xbf16>, vector<1x512xf32> -> vector<1x512xf32>
    %350 = vector.extract_strided_slice %196 {offsets = [0, 7, 0], sizes = [1, 1, 512], strides = [1, 1, 1]} : vector<1x8x512xf32> to vector<1x1x512xf32>
    %351 = vector.shape_cast %350 : vector<1x1x512xf32> to vector<1x512xf32>
    %352 = arith.addf %349, %351 : vector<1x512xf32>
    %353 = vector.extract_strided_slice %352 {offsets = [0, 0], sizes = [1, 384], strides = [1, 1]} : vector<1x512xf32> to vector<1x384xf32>
    %354 = arith.negf %353 : vector<1x384xf32>
    %355 = math.exp %354 : vector<1x384xf32>
    %cst_63 = arith.constant 1.000000e+00 : f32
    %356 = vector.broadcast %cst_63 : f32 to vector<1x384xf32>
    %357 = arith.addf %356, %355 : vector<1x384xf32>
    %358 = arith.divf %356, %357 : vector<1x384xf32>
    %359 = vector.extract_strided_slice %352 {offsets = [0, 384], sizes = [1, 128], strides = [1, 1]} : vector<1x512xf32> to vector<1x128xf32>
    %360 = math.tanh %359 : vector<1x128xf32>
    %361 = vector.extract_strided_slice %358 {offsets = [0, 0], sizes = [1, 128], strides = [1, 1]} : vector<1x384xf32> to vector<1x128xf32>
    %362 = vector.extract_strided_slice %358 {offsets = [0, 128], sizes = [1, 128], strides = [1, 1]} : vector<1x384xf32> to vector<1x128xf32>
    %363 = vector.extract_strided_slice %358 {offsets = [0, 256], sizes = [1, 128], strides = [1, 1]} : vector<1x384xf32> to vector<1x128xf32>
    %364 = arith.mulf %362, %345 : vector<1x128xf32>
    %365 = arith.mulf %361, %360 : vector<1x128xf32>
    %366 = arith.addf %364, %365 : vector<1x128xf32>
    %367 = math.tanh %366 : vector<1x128xf32>
    %368 = arith.mulf %363, %367 : vector<1x128xf32>
    %c1_64 = arith.constant 1 : index
    %c0_65 = arith.constant 0 : index
    %c0_66 = arith.constant 0 : index
    %369 = vector.load %arg6[%c1_64, %c0_65, %c0_66] : memref<3x128x128xf32, #tpu.memory_space<vmem>>, vector<1x128x128xf32>
    %370 = vector.shape_cast %369 : vector<1x128x128xf32> to vector<128x128xf32>
    %cst_67 = arith.constant dense<0.000000e+00> : vector<1x128xf32>
    %371 = tpu.matmul %368, %370, %cst_67 {dimension_numbers = #tpu.dot_dimension_numbers<[1], [0], [0], [1], [0, 0, 1, 1], [], []>} : vector<1x128xf32>, vector<128x128xf32>, vector<1x128xf32> -> vector<1x128xf32>
    %372 = arith.addf %186, %371 : vector<1x128xf32>
    %c0_68 = arith.constant 0 : index
    %c0_69 = arith.constant 0 : index
    %c0_70 = arith.constant 0 : index
    %373 = vector.load %arg2[%c0_68, %c0_69, %c0_70] : memref<1x8x4xf32, #tpu.memory_space<vmem>>, vector<1x8x4xf32>
    %374 = vector.shape_cast %373 : vector<1x8x4xf32> to vector<8x4xf32>
    %c2 = arith.constant 2 : index
    %c0_71 = arith.constant 0 : index
    %c0_72 = arith.constant 0 : index
    %375 = vector.load %arg3[%c2, %c0_71, %c0_72] : memref<3x4x512xf32, #tpu.memory_space<vmem>>, vector<1x4x512xf32>
    %376 = vector.shape_cast %375 : vector<1x4x512xf32> to vector<4x512xf32>
    %cst_73 = arith.constant dense<0.000000e+00> : vector<8x512xf32>
    %377 = tpu.matmul %374, %376, %cst_73 {dimension_numbers = #tpu.dot_dimension_numbers<[1], [0], [0], [1], [0, 0, 1, 1], [], []>} : vector<8x4xf32>, vector<4x512xf32>, vector<8x512xf32> -> vector<8x512xf32>
    %c2_74 = arith.constant 2 : index
    %c0_75 = arith.constant 0 : index
    %c0_76 = arith.constant 0 : index
    %378 = vector.load %arg5[%c2_74, %c0_75, %c0_76] : memref<3x1x512xf32, #tpu.memory_space<vmem>>, vector<1x1x512xf32>
    %379 = vector.shape_cast %378 : vector<1x1x512xf32> to vector<1x512xf32>
    %380 = vector.broadcast %379 : vector<1x512xf32> to vector<8x512xf32>
    %381 = arith.addf %377, %380 : vector<8x512xf32>
    %382 = vector.shape_cast %381 : vector<8x512xf32> to vector<1x8x512xf32>
    %c2_77 = arith.constant 2 : index
    %c0_78 = arith.constant 0 : index
    %c0_79 = arith.constant 0 : index
    %383 = vector.load %arg4[%c2_77, %c0_78, %c0_79] : memref<3x128x512xbf16, #tpu.memory_space<vmem>>, vector<1x128x512xbf16>
    %384 = vector.shape_cast %383 : vector<1x128x512xbf16> to vector<128x512xbf16>
    %cst_80 = arith.constant 0.000000e+00 : f32
    %385 = vector.broadcast %cst_80 : f32 to vector<1x128xf32>
    %cst_81 = arith.constant 0.000000e+00 : f32
    %386 = vector.broadcast %cst_81 : f32 to vector<1x128xf32>
    %387 = arith.truncf %385 : vector<1x128xf32> to vector<1x128xbf16>
    %cst_82 = arith.constant dense<0.000000e+00> : vector<1x512xf32>
    %388 = tpu.matmul %387, %384, %cst_82 {dimension_numbers = #tpu.dot_dimension_numbers<[1], [0], [0], [1], [0, 0, 1, 1], [], []>} : vector<1x128xbf16>, vector<128x512xbf16>, vector<1x512xf32> -> vector<1x512xf32>
    %389 = vector.extract_strided_slice %382 {offsets = [0, 0, 0], sizes = [1, 1, 512], strides = [1, 1, 1]} : vector<1x8x512xf32> to vector<1x1x512xf32>
    %390 = vector.shape_cast %389 : vector<1x1x512xf32> to vector<1x512xf32>
    %391 = arith.addf %388, %390 : vector<1x512xf32>
    %392 = vector.extract_strided_slice %391 {offsets = [0, 0], sizes = [1, 384], strides = [1, 1]} : vector<1x512xf32> to vector<1x384xf32>
    %393 = arith.negf %392 : vector<1x384xf32>
    %394 = math.exp %393 : vector<1x384xf32>
    %cst_83 = arith.constant 1.000000e+00 : f32
    %395 = vector.broadcast %cst_83 : f32 to vector<1x384xf32>
    %396 = arith.addf %395, %394 : vector<1x384xf32>
    %397 = arith.divf %395, %396 : vector<1x384xf32>
    %398 = vector.extract_strided_slice %391 {offsets = [0, 384], sizes = [1, 128], strides = [1, 1]} : vector<1x512xf32> to vector<1x128xf32>
    %399 = math.tanh %398 : vector<1x128xf32>
    %400 = vector.extract_strided_slice %397 {offsets = [0, 0], sizes = [1, 128], strides = [1, 1]} : vector<1x384xf32> to vector<1x128xf32>
    %401 = vector.extract_strided_slice %397 {offsets = [0, 128], sizes = [1, 128], strides = [1, 1]} : vector<1x384xf32> to vector<1x128xf32>
    %402 = vector.extract_strided_slice %397 {offsets = [0, 256], sizes = [1, 128], strides = [1, 1]} : vector<1x384xf32> to vector<1x128xf32>
    %403 = arith.mulf %401, %386 : vector<1x128xf32>
    %404 = arith.mulf %400, %399 : vector<1x128xf32>
    %405 = arith.addf %403, %404 : vector<1x128xf32>
    %406 = math.tanh %405 : vector<1x128xf32>
    %407 = arith.mulf %402, %406 : vector<1x128xf32>
    %408 = arith.truncf %407 : vector<1x128xf32> to vector<1x128xbf16>
    %cst_84 = arith.constant dense<0.000000e+00> : vector<1x512xf32>
    %409 = tpu.matmul %408, %384, %cst_84 {dimension_numbers = #tpu.dot_dimension_numbers<[1], [0], [0], [1], [0, 0, 1, 1], [], []>} : vector<1x128xbf16>, vector<128x512xbf16>, vector<1x512xf32> -> vector<1x512xf32>
    %410 = vector.extract_strided_slice %382 {offsets = [0, 1, 0], sizes = [1, 1, 512], strides = [1, 1, 1]} : vector<1x8x512xf32> to vector<1x1x512xf32>
    %411 = vector.shape_cast %410 : vector<1x1x512xf32> to vector<1x512xf32>
    %412 = arith.addf %409, %411 : vector<1x512xf32>
    %413 = vector.extract_strided_slice %412 {offsets = [0, 0], sizes = [1, 384], strides = [1, 1]} : vector<1x512xf32> to vector<1x384xf32>
    %414 = arith.negf %413 : vector<1x384xf32>
    %415 = math.exp %414 : vector<1x384xf32>
    %cst_85 = arith.constant 1.000000e+00 : f32
    %416 = vector.broadcast %cst_85 : f32 to vector<1x384xf32>
    %417 = arith.addf %416, %415 : vector<1x384xf32>
    %418 = arith.divf %416, %417 : vector<1x384xf32>
    %419 = vector.extract_strided_slice %412 {offsets = [0, 384], sizes = [1, 128], strides = [1, 1]} : vector<1x512xf32> to vector<1x128xf32>
    %420 = math.tanh %419 : vector<1x128xf32>
    %421 = vector.extract_strided_slice %418 {offsets = [0, 0], sizes = [1, 128], strides = [1, 1]} : vector<1x384xf32> to vector<1x128xf32>
    %422 = vector.extract_strided_slice %418 {offsets = [0, 128], sizes = [1, 128], strides = [1, 1]} : vector<1x384xf32> to vector<1x128xf32>
    %423 = vector.extract_strided_slice %418 {offsets = [0, 256], sizes = [1, 128], strides = [1, 1]} : vector<1x384xf32> to vector<1x128xf32>
    %424 = arith.mulf %422, %405 : vector<1x128xf32>
    %425 = arith.mulf %421, %420 : vector<1x128xf32>
    %426 = arith.addf %424, %425 : vector<1x128xf32>
    %427 = math.tanh %426 : vector<1x128xf32>
    %428 = arith.mulf %423, %427 : vector<1x128xf32>
    %429 = arith.truncf %428 : vector<1x128xf32> to vector<1x128xbf16>
    %cst_86 = arith.constant dense<0.000000e+00> : vector<1x512xf32>
    %430 = tpu.matmul %429, %384, %cst_86 {dimension_numbers = #tpu.dot_dimension_numbers<[1], [0], [0], [1], [0, 0, 1, 1], [], []>} : vector<1x128xbf16>, vector<128x512xbf16>, vector<1x512xf32> -> vector<1x512xf32>
    %431 = vector.extract_strided_slice %382 {offsets = [0, 2, 0], sizes = [1, 1, 512], strides = [1, 1, 1]} : vector<1x8x512xf32> to vector<1x1x512xf32>
    %432 = vector.shape_cast %431 : vector<1x1x512xf32> to vector<1x512xf32>
    %433 = arith.addf %430, %432 : vector<1x512xf32>
    %434 = vector.extract_strided_slice %433 {offsets = [0, 0], sizes = [1, 384], strides = [1, 1]} : vector<1x512xf32> to vector<1x384xf32>
    %435 = arith.negf %434 : vector<1x384xf32>
    %436 = math.exp %435 : vector<1x384xf32>
    %cst_87 = arith.constant 1.000000e+00 : f32
    %437 = vector.broadcast %cst_87 : f32 to vector<1x384xf32>
    %438 = arith.addf %437, %436 : vector<1x384xf32>
    %439 = arith.divf %437, %438 : vector<1x384xf32>
    %440 = vector.extract_strided_slice %433 {offsets = [0, 384], sizes = [1, 128], strides = [1, 1]} : vector<1x512xf32> to vector<1x128xf32>
    %441 = math.tanh %440 : vector<1x128xf32>
    %442 = vector.extract_strided_slice %439 {offsets = [0, 0], sizes = [1, 128], strides = [1, 1]} : vector<1x384xf32> to vector<1x128xf32>
    %443 = vector.extract_strided_slice %439 {offsets = [0, 128], sizes = [1, 128], strides = [1, 1]} : vector<1x384xf32> to vector<1x128xf32>
    %444 = vector.extract_strided_slice %439 {offsets = [0, 256], sizes = [1, 128], strides = [1, 1]} : vector<1x384xf32> to vector<1x128xf32>
    %445 = arith.mulf %443, %426 : vector<1x128xf32>
    %446 = arith.mulf %442, %441 : vector<1x128xf32>
    %447 = arith.addf %445, %446 : vector<1x128xf32>
    %448 = math.tanh %447 : vector<1x128xf32>
    %449 = arith.mulf %444, %448 : vector<1x128xf32>
    %450 = arith.truncf %449 : vector<1x128xf32> to vector<1x128xbf16>
    %cst_88 = arith.constant dense<0.000000e+00> : vector<1x512xf32>
    %451 = tpu.matmul %450, %384, %cst_88 {dimension_numbers = #tpu.dot_dimension_numbers<[1], [0], [0], [1], [0, 0, 1, 1], [], []>} : vector<1x128xbf16>, vector<128x512xbf16>, vector<1x512xf32> -> vector<1x512xf32>
    %452 = vector.extract_strided_slice %382 {offsets = [0, 3, 0], sizes = [1, 1, 512], strides = [1, 1, 1]} : vector<1x8x512xf32> to vector<1x1x512xf32>
    %453 = vector.shape_cast %452 : vector<1x1x512xf32> to vector<1x512xf32>
    %454 = arith.addf %451, %453 : vector<1x512xf32>
    %455 = vector.extract_strided_slice %454 {offsets = [0, 0], sizes = [1, 384], strides = [1, 1]} : vector<1x512xf32> to vector<1x384xf32>
    %456 = arith.negf %455 : vector<1x384xf32>
    %457 = math.exp %456 : vector<1x384xf32>
    %cst_89 = arith.constant 1.000000e+00 : f32
    %458 = vector.broadcast %cst_89 : f32 to vector<1x384xf32>
    %459 = arith.addf %458, %457 : vector<1x384xf32>
    %460 = arith.divf %458, %459 : vector<1x384xf32>
    %461 = vector.extract_strided_slice %454 {offsets = [0, 384], sizes = [1, 128], strides = [1, 1]} : vector<1x512xf32> to vector<1x128xf32>
    %462 = math.tanh %461 : vector<1x128xf32>
    %463 = vector.extract_strided_slice %460 {offsets = [0, 0], sizes = [1, 128], strides = [1, 1]} : vector<1x384xf32> to vector<1x128xf32>
    %464 = vector.extract_strided_slice %460 {offsets = [0, 128], sizes = [1, 128], strides = [1, 1]} : vector<1x384xf32> to vector<1x128xf32>
    %465 = vector.extract_strided_slice %460 {offsets = [0, 256], sizes = [1, 128], strides = [1, 1]} : vector<1x384xf32> to vector<1x128xf32>
    %466 = arith.mulf %464, %447 : vector<1x128xf32>
    %467 = arith.mulf %463, %462 : vector<1x128xf32>
    %468 = arith.addf %466, %467 : vector<1x128xf32>
    %469 = math.tanh %468 : vector<1x128xf32>
    %470 = arith.mulf %465, %469 : vector<1x128xf32>
    %471 = arith.truncf %470 : vector<1x128xf32> to vector<1x128xbf16>
    %cst_90 = arith.constant dense<0.000000e+00> : vector<1x512xf32>
    %472 = tpu.matmul %471, %384, %cst_90 {dimension_numbers = #tpu.dot_dimension_numbers<[1], [0], [0], [1], [0, 0, 1, 1], [], []>} : vector<1x128xbf16>, vector<128x512xbf16>, vector<1x512xf32> -> vector<1x512xf32>
    %473 = vector.extract_strided_slice %382 {offsets = [0, 4, 0], sizes = [1, 1, 512], strides = [1, 1, 1]} : vector<1x8x512xf32> to vector<1x1x512xf32>
    %474 = vector.shape_cast %473 : vector<1x1x512xf32> to vector<1x512xf32>
    %475 = arith.addf %472, %474 : vector<1x512xf32>
    %476 = vector.extract_strided_slice %475 {offsets = [0, 0], sizes = [1, 384], strides = [1, 1]} : vector<1x512xf32> to vector<1x384xf32>
    %477 = arith.negf %476 : vector<1x384xf32>
    %478 = math.exp %477 : vector<1x384xf32>
    %cst_91 = arith.constant 1.000000e+00 : f32
    %479 = vector.broadcast %cst_91 : f32 to vector<1x384xf32>
    %480 = arith.addf %479, %478 : vector<1x384xf32>
    %481 = arith.divf %479, %480 : vector<1x384xf32>
    %482 = vector.extract_strided_slice %475 {offsets = [0, 384], sizes = [1, 128], strides = [1, 1]} : vector<1x512xf32> to vector<1x128xf32>
    %483 = math.tanh %482 : vector<1x128xf32>
    %484 = vector.extract_strided_slice %481 {offsets = [0, 0], sizes = [1, 128], strides = [1, 1]} : vector<1x384xf32> to vector<1x128xf32>
    %485 = vector.extract_strided_slice %481 {offsets = [0, 128], sizes = [1, 128], strides = [1, 1]} : vector<1x384xf32> to vector<1x128xf32>
    %486 = vector.extract_strided_slice %481 {offsets = [0, 256], sizes = [1, 128], strides = [1, 1]} : vector<1x384xf32> to vector<1x128xf32>
    %487 = arith.mulf %485, %468 : vector<1x128xf32>
    %488 = arith.mulf %484, %483 : vector<1x128xf32>
    %489 = arith.addf %487, %488 : vector<1x128xf32>
    %490 = math.tanh %489 : vector<1x128xf32>
    %491 = arith.mulf %486, %490 : vector<1x128xf32>
    %492 = arith.truncf %491 : vector<1x128xf32> to vector<1x128xbf16>
    %cst_92 = arith.constant dense<0.000000e+00> : vector<1x512xf32>
    %493 = tpu.matmul %492, %384, %cst_92 {dimension_numbers = #tpu.dot_dimension_numbers<[1], [0], [0], [1], [0, 0, 1, 1], [], []>} : vector<1x128xbf16>, vector<128x512xbf16>, vector<1x512xf32> -> vector<1x512xf32>
    %494 = vector.extract_strided_slice %382 {offsets = [0, 5, 0], sizes = [1, 1, 512], strides = [1, 1, 1]} : vector<1x8x512xf32> to vector<1x1x512xf32>
    %495 = vector.shape_cast %494 : vector<1x1x512xf32> to vector<1x512xf32>
    %496 = arith.addf %493, %495 : vector<1x512xf32>
    %497 = vector.extract_strided_slice %496 {offsets = [0, 0], sizes = [1, 384], strides = [1, 1]} : vector<1x512xf32> to vector<1x384xf32>
    %498 = arith.negf %497 : vector<1x384xf32>
    %499 = math.exp %498 : vector<1x384xf32>
    %cst_93 = arith.constant 1.000000e+00 : f32
    %500 = vector.broadcast %cst_93 : f32 to vector<1x384xf32>
    %501 = arith.addf %500, %499 : vector<1x384xf32>
    %502 = arith.divf %500, %501 : vector<1x384xf32>
    %503 = vector.extract_strided_slice %496 {offsets = [0, 384], sizes = [1, 128], strides = [1, 1]} : vector<1x512xf32> to vector<1x128xf32>
    %504 = math.tanh %503 : vector<1x128xf32>
    %505 = vector.extract_strided_slice %502 {offsets = [0, 0], sizes = [1, 128], strides = [1, 1]} : vector<1x384xf32> to vector<1x128xf32>
    %506 = vector.extract_strided_slice %502 {offsets = [0, 128], sizes = [1, 128], strides = [1, 1]} : vector<1x384xf32> to vector<1x128xf32>
    %507 = vector.extract_strided_slice %502 {offsets = [0, 256], sizes = [1, 128], strides = [1, 1]} : vector<1x384xf32> to vector<1x128xf32>
    %508 = arith.mulf %506, %489 : vector<1x128xf32>
    %509 = arith.mulf %505, %504 : vector<1x128xf32>
    %510 = arith.addf %508, %509 : vector<1x128xf32>
    %511 = math.tanh %510 : vector<1x128xf32>
    %512 = arith.mulf %507, %511 : vector<1x128xf32>
    %513 = arith.truncf %512 : vector<1x128xf32> to vector<1x128xbf16>
    %cst_94 = arith.constant dense<0.000000e+00> : vector<1x512xf32>
    %514 = tpu.matmul %513, %384, %cst_94 {dimension_numbers = #tpu.dot_dimension_numbers<[1], [0], [0], [1], [0, 0, 1, 1], [], []>} : vector<1x128xbf16>, vector<128x512xbf16>, vector<1x512xf32> -> vector<1x512xf32>
    %515 = vector.extract_strided_slice %382 {offsets = [0, 6, 0], sizes = [1, 1, 512], strides = [1, 1, 1]} : vector<1x8x512xf32> to vector<1x1x512xf32>
    %516 = vector.shape_cast %515 : vector<1x1x512xf32> to vector<1x512xf32>
    %517 = arith.addf %514, %516 : vector<1x512xf32>
    %518 = vector.extract_strided_slice %517 {offsets = [0, 0], sizes = [1, 384], strides = [1, 1]} : vector<1x512xf32> to vector<1x384xf32>
    %519 = arith.negf %518 : vector<1x384xf32>
    %520 = math.exp %519 : vector<1x384xf32>
    %cst_95 = arith.constant 1.000000e+00 : f32
    %521 = vector.broadcast %cst_95 : f32 to vector<1x384xf32>
    %522 = arith.addf %521, %520 : vector<1x384xf32>
    %523 = arith.divf %521, %522 : vector<1x384xf32>
    %524 = vector.extract_strided_slice %517 {offsets = [0, 384], sizes = [1, 128], strides = [1, 1]} : vector<1x512xf32> to vector<1x128xf32>
    %525 = math.tanh %524 : vector<1x128xf32>
    %526 = vector.extract_strided_slice %523 {offsets = [0, 0], sizes = [1, 128], strides = [1, 1]} : vector<1x384xf32> to vector<1x128xf32>
    %527 = vector.extract_strided_slice %523 {offsets = [0, 128], sizes = [1, 128], strides = [1, 1]} : vector<1x384xf32> to vector<1x128xf32>
    %528 = vector.extract_strided_slice %523 {offsets = [0, 256], sizes = [1, 128], strides = [1, 1]} : vector<1x384xf32> to vector<1x128xf32>
    %529 = arith.mulf %527, %510 : vector<1x128xf32>
    %530 = arith.mulf %526, %525 : vector<1x128xf32>
    %531 = arith.addf %529, %530 : vector<1x128xf32>
    %532 = math.tanh %531 : vector<1x128xf32>
    %533 = arith.mulf %528, %532 : vector<1x128xf32>
    %534 = arith.truncf %533 : vector<1x128xf32> to vector<1x128xbf16>
    %cst_96 = arith.constant dense<0.000000e+00> : vector<1x512xf32>
    %535 = tpu.matmul %534, %384, %cst_96 {dimension_numbers = #tpu.dot_dimension_numbers<[1], [0], [0], [1], [0, 0, 1, 1], [], []>} : vector<1x128xbf16>, vector<128x512xbf16>, vector<1x512xf32> -> vector<1x512xf32>
    %536 = vector.extract_strided_slice %382 {offsets = [0, 7, 0], sizes = [1, 1, 512], strides = [1, 1, 1]} : vector<1x8x512xf32> to vector<1x1x512xf32>
    %537 = vector.shape_cast %536 : vector<1x1x512xf32> to vector<1x512xf32>
    %538 = arith.addf %535, %537 : vector<1x512xf32>
    %539 = vector.extract_strided_slice %538 {offsets = [0, 0], sizes = [1, 384], strides = [1, 1]} : vector<1x512xf32> to vector<1x384xf32>
    %540 = arith.negf %539 : vector<1x384xf32>
    %541 = math.exp %540 : vector<1x384xf32>
    %cst_97 = arith.constant 1.000000e+00 : f32
    %542 = vector.broadcast %cst_97 : f32 to vector<1x384xf32>
    %543 = arith.addf %542, %541 : vector<1x384xf32>
    %544 = arith.divf %542, %543 : vector<1x384xf32>
    %545 = vector.extract_strided_slice %538 {offsets = [0, 384], sizes = [1, 128], strides = [1, 1]} : vector<1x512xf32> to vector<1x128xf32>
    %546 = math.tanh %545 : vector<1x128xf32>
    %547 = vector.extract_strided_slice %544 {offsets = [0, 0], sizes = [1, 128], strides = [1, 1]} : vector<1x384xf32> to vector<1x128xf32>
    %548 = vector.extract_strided_slice %544 {offsets = [0, 128], sizes = [1, 128], strides = [1, 1]} : vector<1x384xf32> to vector<1x128xf32>
    %549 = vector.extract_strided_slice %544 {offsets = [0, 256], sizes = [1, 128], strides = [1, 1]} : vector<1x384xf32> to vector<1x128xf32>
    %550 = arith.mulf %548, %531 : vector<1x128xf32>
    %551 = arith.mulf %547, %546 : vector<1x128xf32>
    %552 = arith.addf %550, %551 : vector<1x128xf32>
    %553 = math.tanh %552 : vector<1x128xf32>
    %554 = arith.mulf %549, %553 : vector<1x128xf32>
    %c2_98 = arith.constant 2 : index
    %c0_99 = arith.constant 0 : index
    %c0_100 = arith.constant 0 : index
    %555 = vector.load %arg6[%c2_98, %c0_99, %c0_100] : memref<3x128x128xf32, #tpu.memory_space<vmem>>, vector<1x128x128xf32>
    %556 = vector.shape_cast %555 : vector<1x128x128xf32> to vector<128x128xf32>
    %cst_101 = arith.constant dense<0.000000e+00> : vector<1x128xf32>
    %557 = tpu.matmul %554, %556, %cst_101 {dimension_numbers = #tpu.dot_dimension_numbers<[1], [0], [0], [1], [0, 0, 1, 1], [], []>} : vector<1x128xf32>, vector<128x128xf32>, vector<1x128xf32> -> vector<1x128xf32>
    %558 = arith.addf %372, %557 : vector<1x128xf32>
    %c0_102 = arith.constant 0 : index
    %c0_103 = arith.constant 0 : index
    %559 = vector.load %arg7[%c0_102, %c0_103] : memref<1x128xf32, #tpu.memory_space<vmem>>, vector<1x128xf32>
    %560 = arith.addf %558, %559 : vector<1x128xf32>
    %cst_104 = arith.constant 0.000000e+00 : f32
    %561 = vector.broadcast %cst_104 : f32 to vector<1x128xf32>
    %562 = arith.maximumf %560, %561 : vector<1x128xf32>
    %c0_105 = arith.constant 0 : index
    %c0_106 = arith.constant 0 : index
    %563 = vector.load %arg8[%c0_105, %c0_106] : memref<1x128xf32, #tpu.memory_space<vmem>>, vector<1x128xf32>
    tpu.vector_store %arg8[%c0_105, %c0_106], %562 {strides = array<i32>} : memref<1x128xf32, #tpu.memory_space<vmem>>, vector<1x128xf32>,
    return
  }
}

</mosaic_0001>

<bundles_post_ra>
// kernel: tpu_custom_call.1
= control target key start
LH: loop header
LB: loop body
LE: loop exit
PB: predicated region body
PF: predicated region fallthrough
CT: control target
= control target key end

     0   :  { %13 = vsyncpa [#allocation3], 0  ;;  %s6497_s0 = inlined_call_operand.vmem [shape: f32[1,8,4], index: 0, kind: input, shape index: {}]   ;;  %s6498_s1 = inlined_call_operand.vmem [shape: f32[1,8,4], index: 1, kind: input, shape index: {}]   ;;  %s6499_s2 = inlined_call_operand.vmem [shape: f32[1,8,4], index: 2, kind: input, shape index: {}]   ;;  %s6500_s3 = inlined_call_operand.hbm [shape: f32[3,4,512], index: 3, kind: input, shape index: {}]   ;;  %s6501_s4 = inlined_call_operand.hbm [shape: bf16[3,128,512], index: 4, kind: input, shape index: {}]   ;;  %s6502_s5 = inlined_call_operand.vmem [shape: f32[3,1,512], index: 5, kind: input, shape index: {}]   ;;  %s6503_s6 = inlined_call_operand.hbm [shape: f32[3,128,128], index: 6, kind: input, shape index: {}]   ;;  %s6504_s7 = inlined_call_operand.vmem [shape: f32[1,128], index: 7, kind: input, shape index: {}]   ;;  %s6505_s8 = inlined_call_operand.hbm [shape: f32[1,128], index: 8, kind: output, shape index: {}]  }
   0x1   :  { %14 = vsyncpa [#allocation6], 0 }
   0x2   :  { %15 = vsyncpa [#allocation4], 0  ;;  %s39_s29 = sshll.u32 %s6501_s4, 4  ;;  %s5168_s30 = smov [#allocation5]   ;;  %s40_s29 = int_to_ptr.hbm [resolvable:$true] %s39_s29 }
   0x3   :  { %s41_s9 = sshll.u32 %s5168_s30, 4  ;;  %s26_s12 = sshll.u32 %s6500_s3, 4  ;;  %s42_s9 = int_to_ptr.vmem [resolvable:$true] %s41_s9  ;;  %s27_s12 = int_to_ptr.hbm [resolvable:$true] %s26_s12 }
   0x4   :  { %s5169_s13 = smov 256   ;;  %s5170_s14 = smov 16  }
   0x5   :  { %47 = dma.hbm_to_vmem [thread:$0]  %s40_s29, 12288, %s42_s9, [#allocation6], %s5169_s13, %s5169_s13, %s5170_s14  }
   0x6   :  { %s5171_s15 = smov [#allocation2]   ;;  %s54_s19 = sshll.u32 %s6503_s6, 4  ;;  %s55_s19 = int_to_ptr.hbm [resolvable:$true] %s54_s19 }
   0x7   :  { %s28_s16 = sshll.u32 %s5171_s15, 4  ;;  %s5172_s4 = smov [#allocation7]   ;;  %s29_s16 = int_to_ptr.vmem [resolvable:$true] %s28_s16 }
   0x8   :  { %34 = dma.hbm_to_vmem [thread:$0]  %s27_s12, 768, %s29_s16, [#allocation3], %s5169_s13, %s5169_s13, %s5170_s14  }
   0x9   :  { %s56_s20 = sshll.u32 %s5172_s4, 4  ;;  %s5173_s21 = smov 128   ;;  %s57_s20 = int_to_ptr.vmem [resolvable:$true] %s56_s20 }
   0xa   :  { %s5174_s22 = smov 8  }
   0xb   :  { %62 = dma.hbm_to_vmem [thread:$0]  %s55_s19, 6144, %s57_s20, [#allocation6], %s5173_s21, %s5173_s21, %s5174_s22  }
   0xc   :  { %5162 = dma.done.wait [#allocation3], 768  }
   0xd   :  { %5163 = vsyncadd [#allocation3], 4294966528 }
   0xe   :  { %5164 = dma.done.wait [#allocation6], 18432  }
   0xf   :  { %5165 = vsyncadd [#allocation6], 4294948864  ;;  %v79_v0 = vld [vmem:[#allocation2] sm:$0xff]  ;;  %v80_v1 = vld [vmem:[#allocation2 + $0x8] sm:$0xff]  ;;  %vm104_vm0 = vcmask 1043456   ;;  %vm100_vm1 = vcmask 31744  }
  0x10   :  { %93 = vst [vmem:[#allocation1] ss:$2 sm:$0xff] %v79_v0  ;;  %v4217_v2 = vld [vmem:[#allocation5 + $0xe0] sm:$0xf]  ;;  %v4607_v3 = vld [vmem:[#allocation5 + $0xec] sm:$0xf0] }
  0x11   :  { %95 = vst [vmem:[#allocation1 + $0x10] ss:$2 sm:$0xff] %v80_v1  ;;  %v4605_v4 = vld [vmem:[#allocation5 + $0xe4] sm:$0xf]  ;;  %v4219_v5 = vld [vmem:[#allocation5 + $0xf0] sm:$0xf0]  ;;  %v5231_v11 = vor.u32 %v4607_v3, %v4217_v2 }
  0x12   :  { %v4225_v6 = vld [vmem:[#allocation5 + $0xe8] sm:$0xf]  ;;  %v4608_v7 = vld [vmem:[#allocation5 + $0xf4] sm:$0xf0]  ;;  %v1390_v8 = vld [vmem:[#allocation2 + $0x10] sm:$0xff]  ;;  %v5233_v16 = vor.u32 %v4605_v4, %v4219_v5  ;;  %s5176_s9 = smov [#allocation8]  }
  0x13   :  { %v4201_v9 = vld [vmem:[#allocation5 + $0xc0] sm:$0xf]  ;;  %v4603_v10 = vld [vmem:[#allocation5 + $0xcc] sm:$0xf0]  ;;  %v4601_v12 = vld [vmem:[#allocation5 + $0xc4] sm:$0xf]  ;;  %v5235_v17 = vor.u32 %v4608_v7, %v4225_v6 }
  0x14   :  { %v4203_v13 = vld [vmem:[#allocation5 + $0xd0] sm:$0xf0]  ;;  %v4606_v14 = vld [vmem:[#allocation5 + $0xec] sm:$0xf]  ;;  %v4227_v15 = vld [vmem:[#allocation5 + $0xf8] sm:$0xf0]  ;;  %v5246_v28 = vor.u32 %v4603_v10, %v4201_v9 }
  0x15   :  { %v4209_v18 = vld [vmem:[#allocation5 + $0xc8] sm:$0xf]  ;;  %v4604_v19 = vld [vmem:[#allocation5 + $0xd4] sm:$0xf0]  ;;  %v5239_v24 = vor.u32 %v4606_v14, %v4227_v15  ;;  %v4185_v25 = vld [vmem:[#allocation5 + $0xa0] sm:$0xf]  ;;  %v5250_v31 = vor.u32 %v4601_v12, %v4203_v13 }
  0x16   :  { %v1391_v20 = vld [vmem:[#allocation2 + $0x18] sm:$0xff]  ;;  %v4599_v26 = vld [vmem:[#allocation5 + $0xac] sm:$0xf0]  ;;  %v4597_v30 = vld [vmem:[#allocation5 + $0xa4] sm:$0xf]  ;;  %v5252_v32 = vor.u32 %v4604_v19, %v4209_v18  ;;  %s4082_s10 = sshll.u32 %s5176_s9, 4  ;;  %s4083_s10 = int_to_ptr.vmem [resolvable:$true] %s4082_s10 }
  0x17   :  { %v96_v21 = vld.sshfl [vmem:[#allocation1] sm:$0xff pattern:$0x75316420]  ;;  %v97_v22 = vld.sshfl [vmem:[#allocation1 + $0x8] sm:$0xff pattern:$0x75316420]  ;;  %v5261_v39 = vor.u32 %v4599_v26, %v4185_v25 }
  0x18   :  { %4095 = vmatpush.msk.msra.mxu0 %vm104_vm0, %v96_v21  ;;  %4097 = vmatpush.msk.msra.mxu1 %vm104_vm0, %v97_v22  ;;  %1405 = vst [vmem:[#allocation1] ss:$2 sm:$0xff] %v1390_v8  ;;  %v98_v23 = vld.sshfl [vmem:[#allocation1 + $0x10] sm:$0xff pattern:$0x75316420]  ;;  %v78_v27 = vld [vmem:[%s6497_s0] sm:$0xff] }
  0x19   :  { %4099 = vmatpush.msk.msra.mxu2 %vm104_vm0, %v98_v23  ;;  %v99_v29 = vld.sshfl [vmem:[#allocation1 + $0x18] sm:$0xff pattern:$0x75316420]  ;;  %v4187_v33 = vld [vmem:[#allocation5 + $0xb0] sm:$0xf0]  ;;  %4096 = vmatmul.msk.f32.vlgmr.msra.gmra.mxu0 %vm100_vm1, %v78_v27  ;;  %s4084_s13 = sshll.u32 %s6505_s8, 4  ;;  %s4085_s13 = int_to_ptr.hbm [resolvable:$true] %s4084_s13 }
  0x1a   :  { %385 = vmatpush.bf16.msrb.mxu0 %v5231_v11  ;;  %398 = vmatpush.bf16.msrb.mxu1 %v5233_v16  ;;  %1407 = vst [vmem:[#allocation1 + $0x10] ss:$2 sm:$0xff] %v1391_v20  ;;  %v4602_v34 = vld [vmem:[#allocation5 + $0xcc] sm:$0xf]  ;;  %v4193_v35 = vld [vmem:[#allocation5 + $0xa8] sm:$0xf]  ;;  %v5266_v42 = vor.u32 %v4597_v30, %v4187_v33 }
  0x1b   :  { %411 = vmatpush.bf16.msrb.mxu2 %v5235_v17  ;;  %4101 = vmatpush.msk.msra.mxu3 %vm104_vm0, %v99_v29  ;;  %v4600_v36 = vld [vmem:[#allocation5 + $0xb4] sm:$0xf0]  ;;  %v4211_v37 = vld [vmem:[#allocation5 + $0xd8] sm:$0xf0]  ;;  %v4598_v40 = vld [vmem:[#allocation5 + $0xac] sm:$0xf] }
  0x1c   :  { %v5257_v38 = vor.u32 %v4602_v34, %v4211_v37  ;;  %4098 = vmatmul.msk.f32.vlgmr.msra.gmra.mxu1 %vm100_vm1, %v78_v27  ;;  %v4195_v41 = vld [vmem:[#allocation5 + $0xb8] sm:$0xf0]  ;;  %4100 = vmatmul.msk.f32.vlgmr.msra.gmra.mxu2 %vm100_vm1, %v78_v27  ;;  %v5268_v43 = vor.u32 %v4600_v36, %v4193_v35  ;;  %v4169_v44 = vld [vmem:[#allocation5 + $0x80] sm:$0xf]  ;;  %v4595_v45 = vld [vmem:[#allocation5 + $0x8c] sm:$0xf0] }
  0x1d   :  { %424 = vmatpush.bf16.msrb.mxu3 %v5239_v24  ;;  %v4593_v46 = vld [vmem:[#allocation5 + $0x84] sm:$0xf]  ;;  %v4171_v47 = vld [vmem:[#allocation5 + $0x90] sm:$0xf0]  ;;  %v4177_v48 = vld [vmem:[#allocation5 + $0x88] sm:$0xf]  ;;  %v5272_v50 = vor.u32 %v4598_v40, %v4195_v41  ;;  %v5275_v51 = vor.u32 %v4595_v45, %v4169_v44 }
  0x1e   :  { %386 = vmatpush.bf16.msrb.mxu0 %v5246_v28  ;;  %399 = vmatpush.bf16.msrb.mxu1 %v5250_v31  ;;  %v4596_v49 = vld [vmem:[#allocation5 + $0x94] sm:$0xf0]  ;;  %v4594_v52 = vld [vmem:[#allocation5 + $0x8c] sm:$0xf]  ;;  %v4179_v53 = vld [vmem:[#allocation5 + $0x98] sm:$0xf0]  ;;  %v5279_v54 = vor.u32 %v4593_v46, %v4171_v47 }
  0x1f   :  { %412 = vmatpush.bf16.msrb.mxu2 %v5252_v32  ;;  %4102 = vmatmul.msk.f32.vlgmr.msra.gmra.mxu3 %vm100_vm1, %v78_v27  ;;  %v5281_v55 = vor.u32 %v4596_v49, %v4177_v48  ;;  %v4153_v56 = vld [vmem:[#allocation5 + $0x60] sm:$0xf]  ;;  %v4591_v57 = vld [vmem:[#allocation5 + $0x6c] sm:$0xf0]  ;;  %v4589_v58 = vld [vmem:[#allocation5 + $0x64] sm:$0xf]  ;;  %v5284_v62 = vor.u32 %v4594_v52, %v4179_v53 }
  0x20   :  { %v4155_v59 = vld [vmem:[#allocation5 + $0x70] sm:$0xf0]  ;;  %v4161_v60 = vld [vmem:[#allocation5 + $0x68] sm:$0xf]  ;;  %v4592_v61 = vld [vmem:[#allocation5 + $0x74] sm:$0xf0]  ;;  %v5287_v63 = vor.u32 %v4591_v57, %v4153_v56 }
  0x21   :  { %425 = vmatpush.bf16.msrb.mxu3 %v5257_v38  ;;  %v4590_v0 = vld [vmem:[#allocation5 + $0x6c] sm:$0xf]  ;;  %v4163_v1 = vld [vmem:[#allocation5 + $0x78] sm:$0xf0]  ;;  %v5291_v2 = vor.u32 %v4589_v58, %v4155_v59  ;;  %v5293_v3 = vor.u32 %v4592_v61, %v4161_v60  ;;  %v4137_v4 = vld [vmem:[#allocation5 + $0x40] sm:$0xf] }
  0x22   :  { %387 = vmatpush.bf16.msrb.mxu0 %v5261_v39  ;;  %400 = vmatpush.bf16.msrb.mxu1 %v5266_v42  ;;  %v4587_v5 = vld [vmem:[#allocation5 + $0x4c] sm:$0xf0]  ;;  %v4585_v6 = vld [vmem:[#allocation5 + $0x44] sm:$0xf]  ;;  %v4139_v7 = vld [vmem:[#allocation5 + $0x50] sm:$0xf0]  ;;  %v5296_v10 = vor.u32 %v4590_v0, %v4163_v1 }
  0x23   :  { %413 = vmatpush.bf16.msrb.mxu2 %v5268_v43  ;;  %v4145_v8 = vld [vmem:[#allocation5 + $0x48] sm:$0xf]  ;;  %v4588_v9 = vld [vmem:[#allocation5 + $0x54] sm:$0xf0]  ;;  %v5299_v12 = vor.u32 %v4587_v5, %v4137_v4  ;;  %v4586_v13 = vld [vmem:[#allocation5 + $0x4c] sm:$0xf]  ;;  %v5303_v15 = vor.u32 %v4585_v6, %v4139_v7 }
  0x24   :  { %v4147_v14 = vld [vmem:[#allocation5 + $0x58] sm:$0xf0]  ;;  %v5305_v18 = vor.u32 %v4588_v9, %v4145_v8  ;;  %v4121_v19 = vld [vmem:[#allocation5 + $0x20] sm:$0xf]  ;;  %v4583_v20 = vld [vmem:[#allocation5 + $0x2c] sm:$0xf0] }
  0x25   :  { %426 = vmatpush.bf16.msrb.mxu3 %v5272_v50  ;;  %v4581_v21 = vld [vmem:[#allocation5 + $0x24] sm:$0xf]  ;;  %v4123_v22 = vld [vmem:[#allocation5 + $0x30] sm:$0xf0]  ;;  %v4129_v23 = vld [vmem:[#allocation5 + $0x28] sm:$0xf]  ;;  %v5308_v26 = vor.u32 %v4586_v13, %v4147_v14  ;;  %v5311_v27 = vor.u32 %v4583_v20, %v4121_v19 }
  0x26   :  { %388 = vmatpush.bf16.msrb.mxu0 %v5275_v51  ;;  %401 = vmatpush.bf16.msrb.mxu1 %v5279_v54  ;;  %v4584_v25 = vld [vmem:[#allocation5 + $0x34] sm:$0xf0]  ;;  %v4582_v29 = vld [vmem:[#allocation5 + $0x2c] sm:$0xf]  ;;  %v4131_v30 = vld [vmem:[#allocation5 + $0x38] sm:$0xf0]  ;;  %v5315_v33 = vor.u32 %v4581_v21, %v4123_v22 }
  0x27   :  { %414 = vmatpush.bf16.msrb.mxu2 %v5281_v55  ;;  %v5317_v34 = vor.u32 %v4584_v25, %v4129_v23  ;;  %v4105_v35 = vld [vmem:[#allocation5] sm:$0xf]  ;;  %v4579_v36 = vld [vmem:[#allocation5 + $0xc] sm:$0xf0]  ;;  %v4577_v37 = vld [vmem:[#allocation5 + $0x4] sm:$0xf]  ;;  %v5320_v45 = vor.u32 %v4582_v29, %v4131_v30 }
  0x28   :  { %v4107_v40 = vld [vmem:[#allocation5 + $0x10] sm:$0xf0]  ;;  %v4113_v41 = vld [vmem:[#allocation5 + $0x8] sm:$0xf]  ;;  %v4580_v44 = vld [vmem:[#allocation5 + $0x14] sm:$0xf0]  ;;  %v5323_v46 = vor.u32 %v4579_v36, %v4105_v35 }
  0x29   :  { %427 = vmatpush.bf16.msrb.mxu3 %v5284_v62  ;;  %v4578_v47 = vld [vmem:[#allocation5 + $0xc] sm:$0xf]  ;;  %v4115_v48 = vld [vmem:[#allocation5 + $0x18] sm:$0xf0]  ;;  %v5327_v49 = vor.u32 %v4577_v37, %v4107_v40  ;;  %v5329_v52 = vor.u32 %v4580_v44, %v4113_v41  ;;  %v6506_v56 = vmov 0  }
  0x2a   :  { %389 = vmatpush.bf16.msrb.mxu0 %v5287_v63  ;;  %402 = vmatpush.bf16.msrb.mxu1 %v5291_v2  ;;  %v5332_v53 = vor.u32 %v4578_v47, %v4115_v48  ;;  %v81_v59 = vld [vmem:[%s6502_s5] sm:$0xf] }
  0x2b   :  { %415 = vmatpush.bf16.msrb.mxu2 %v5293_v3  ;;  %v83_v60 = vperm.slane %v81_v59, 0  ;;  %v84_v61 = vperm.slane %v81_v59, 1  ;;  %v85_v6 = vperm.slane %v81_v59, 2  ;;  %v86_v40 = vperm.slane %v81_v59, 3 }
  0x2d   :  { %428 = vmatpush.bf16.msrb.mxu3 %v5296_v10 }
  0x2e   :  { %390 = vmatpush.bf16.msrb.mxu0 %v5299_v12  ;;  %403 = vmatpush.bf16.msrb.mxu1 %v5303_v15 }
  0x2f   :  { %416 = vmatpush.bf16.msrb.mxu2 %v5305_v18 }
  0x31   :  { %429 = vmatpush.bf16.msrb.mxu3 %v5308_v26 }
  0x32   :  { %391 = vmatpush.bf16.msrb.mxu0 %v5311_v27  ;;  %404 = vmatpush.bf16.msrb.mxu1 %v5315_v33 }
  0x33   :  { %417 = vmatpush.bf16.msrb.mxu2 %v5317_v34 }
  0x35   :  { %430 = vmatpush.bf16.msrb.mxu3 %v5320_v45 }
  0x36   :  { %392 = vmatpush.bf16.msrb.mxu0 %v5323_v46  ;;  %405 = vmatpush.bf16.msrb.mxu1 %v5327_v49 }
  0x37   :  { %418 = vmatpush.bf16.msrb.mxu2 %v5329_v52 }
  0x39   :  { %393 = vmatmul.bf16.vlgmr.msrb.gmra.mxu0 %v6506_v56  ;;  %431 = vmatpush.bf16.msrb.mxu3 %v5332_v53 }
  0x3a   :  { %513 = vmatpush.bf16.msra.mxu0 %v5231_v11  ;;  %526 = vmatpush.bf16.msra.mxu1 %v5233_v16 }
  0x3b   :  { %406 = vmatmul.bf16.vlgmr.msrb.gmra.mxu1 %v6506_v56  ;;  %419 = vmatmul.bf16.vlgmr.msrb.gmra.mxu2 %v6506_v56 }
  0x3c   :  { %539 = vmatpush.bf16.msra.mxu2 %v5235_v17  ;;  %432 = vmatmul.bf16.vlgmr.msrb.gmra.mxu3 %v6506_v56 }
  0x3d   :  { %552 = vmatpush.bf16.msra.mxu3 %v5239_v24 }
  0x3e   :  { %514 = vmatpush.bf16.msra.mxu0 %v5246_v28  ;;  %527 = vmatpush.bf16.msra.mxu1 %v5250_v31 }
  0x40   :  { %540 = vmatpush.bf16.msra.mxu2 %v5252_v32 }
  0x41   :  { %553 = vmatpush.bf16.msra.mxu3 %v5257_v38 }
  0x42   :  { %515 = vmatpush.bf16.msra.mxu0 %v5261_v39  ;;  %528 = vmatpush.bf16.msra.mxu1 %v5266_v42 }
  0x44   :  { %541 = vmatpush.bf16.msra.mxu2 %v5268_v43 }
  0x45   :  { %554 = vmatpush.bf16.msra.mxu3 %v5272_v50 }
  0x46   :  { %516 = vmatpush.bf16.msra.mxu0 %v5275_v51  ;;  %529 = vmatpush.bf16.msra.mxu1 %v5279_v54 }
  0x48   :  { %542 = vmatpush.bf16.msra.mxu2 %v5281_v55 }
  0x49   :  { %555 = vmatpush.bf16.msra.mxu3 %v5284_v62 }
  0x4a   :  { %517 = vmatpush.bf16.msra.mxu0 %v5287_v63  ;;  %530 = vmatpush.bf16.msra.mxu1 %v5291_v2 }
  0x4c   :  { %543 = vmatpush.bf16.msra.mxu2 %v5293_v3 }
  0x4d   :  { %556 = vmatpush.bf16.msra.mxu3 %v5296_v10 }
  0x4e   :  { %518 = vmatpush.bf16.msra.mxu0 %v5299_v12  ;;  %531 = vmatpush.bf16.msra.mxu1 %v5303_v15 }
  0x50   :  { %544 = vmatpush.bf16.msra.mxu2 %v5305_v18 }
  0x51   :  { %557 = vmatpush.bf16.msra.mxu3 %v5308_v26 }
  0x52   :  { %519 = vmatpush.bf16.msra.mxu0 %v5311_v27  ;;  %532 = vmatpush.bf16.msra.mxu1 %v5315_v33 }
  0x54   :  { %545 = vmatpush.bf16.msra.mxu2 %v5317_v34 }
  0x55   :  { %558 = vmatpush.bf16.msra.mxu3 %v5320_v45 }
  0x56   :  { %520 = vmatpush.bf16.msra.mxu0 %v5323_v46  ;;  %533 = vmatpush.bf16.msra.mxu1 %v5327_v49 }
  0x58   :  { %546 = vmatpush.bf16.msra.mxu2 %v5329_v52 }
  0x59   :  { %559 = vmatpush.bf16.msra.mxu3 %v5332_v53 }
  0x5a   :  { %637 = vmatpush.bf16.msrb.mxu0 %v5231_v11  ;;  %650 = vmatpush.bf16.msrb.mxu1 %v5233_v16 }
  0x5c   :  { %663 = vmatpush.bf16.msrb.mxu2 %v5235_v17 }
  0x5d   :  { %676 = vmatpush.bf16.msrb.mxu3 %v5239_v24 }
  0x5e   :  { %638 = vmatpush.bf16.msrb.mxu0 %v5246_v28  ;;  %651 = vmatpush.bf16.msrb.mxu1 %v5250_v31 }
  0x60   :  { %664 = vmatpush.bf16.msrb.mxu2 %v5252_v32 }
  0x61   :  { %677 = vmatpush.bf16.msrb.mxu3 %v5257_v38 }
  0x62   :  { %639 = vmatpush.bf16.msrb.mxu0 %v5261_v39  ;;  %652 = vmatpush.bf16.msrb.mxu1 %v5266_v42 }
  0x64   :  { %665 = vmatpush.bf16.msrb.mxu2 %v5268_v43 }
  0x65   :  { %678 = vmatpush.bf16.msrb.mxu3 %v5272_v50 }
  0x66   :  { %640 = vmatpush.bf16.msrb.mxu0 %v5275_v51  ;;  %653 = vmatpush.bf16.msrb.mxu1 %v5279_v54 }
  0x68   :  { %666 = vmatpush.bf16.msrb.mxu2 %v5281_v55 }
  0x69   :  { %679 = vmatpush.bf16.msrb.mxu3 %v5284_v62 }
  0x6a   :  { %641 = vmatpush.bf16.msrb.mxu0 %v5287_v63  ;;  %654 = vmatpush.bf16.msrb.mxu1 %v5291_v2 }
  0x6c   :  { %667 = vmatpush.bf16.msrb.mxu2 %v5293_v3 }
  0x6d   :  { %680 = vmatpush.bf16.msrb.mxu3 %v5296_v10 }
  0x6e   :  { %642 = vmatpush.bf16.msrb.mxu0 %v5299_v12  ;;  %655 = vmatpush.bf16.msrb.mxu1 %v5303_v15 }
  0x70   :  { %668 = vmatpush.bf16.msrb.mxu2 %v5305_v18 }
  0x71   :  { %681 = vmatpush.bf16.msrb.mxu3 %v5308_v26 }
  0x72   :  { %643 = vmatpush.bf16.msrb.mxu0 %v5311_v27  ;;  %656 = vmatpush.bf16.msrb.mxu1 %v5315_v33 }
  0x74   :  { %669 = vmatpush.bf16.msrb.mxu2 %v5317_v34 }
  0x75   :  { %682 = vmatpush.bf16.msrb.mxu3 %v5320_v45 }
  0x76   :  { %644 = vmatpush.bf16.msrb.mxu0 %v5323_v46  ;;  %657 = vmatpush.bf16.msrb.mxu1 %v5327_v49 }
  0x78   :  { %670 = vmatpush.bf16.msrb.mxu2 %v5329_v52 }
  0x79   :  { %683 = vmatpush.bf16.msrb.mxu3 %v5332_v53 }
  0x96   :  { %v130_v57 = vpop.f32.mrf.mxu0 }
  0x97   :  { %v5409_v1 = vadd.f32 %v130_v57, %v83_v60 }
  0x99   :  { %v150_v58 = vpop.f32.mrf.mxu1 }
  0x9a   :  { %v5411_v5 = vadd.f32 %v150_v58, %v84_v61 }
  0x9f   :  { %v170_v0 = vpop.f32.mrf.mxu2 }
  0xa0   :  { %v5415_v19 = vadd.f32 %v170_v0, %v85_v6 }
  0xa2   :  { %v190_v4 = vpop.f32.mrf.mxu3 }
  0xa3   :  { %v5418_v47 = vadd.f32 %v190_v4, %v86_v40 }
  0xb6   :  { %v394_v7 = vpop.f32.mrf.mxu0 }
  0xb7   :  { %v395_v8 = vadd.f32 %v394_v7, %v5409_v1 }
  0xb8   :  { %v407_v9 = vpop.f32.mrf.mxu1 }
  0xb9   :  { %v408_v13 = vadd.f32 %v407_v9, %v5411_v5  ;;  %v4231_v14 = vmul.f32 -1.442695, %v395_v8 }
  0xbb   :  { %v4232_v20 = vmul.f32 -1.442695, %v408_v13  ;;  %4682 = vpow2.f32 %v4231_v14 }
  0xbd   :  { %4684 = vpow2.f32 %v4232_v20 }
  0xbe   :  { %v420_v21 = vpop.f32.mrf.mxu2  ;;  %v396_v23 = vpop.f32.mrf.mxu0 }
  0xbf   :  { %v421_v22 = vadd.f32 %v420_v21, %v5415_v19  ;;  %v433_v29 = vpop.f32.mrf.mxu3 }
  0xc0   :  { %v409_v25 = vpop.f32.mrf.mxu1  ;;  %v434_v61 = vadd.f32 %v433_v29, %v5418_v47 }
  0xc1   :  { %v4233_v30 = vmul.f32 -1.442695, %v421_v22  ;;  %v4683_v35 = vpop.eup %4682 }
  0xc2   :  { %v446_v37 = vadd.f32 1.0, %v4683_v35 }
  0xc3   :  { %v4685_v36 = vpop.eup %4684  ;;  %4686 = vpow2.f32 %v4233_v30 }
  0xc4   :  { %v447_v41 = vadd.f32 1.0, %v4685_v36  ;;  %4688 = vrcp.f32 %v446_v37  ;;  %v460_v59 = vand.u32 2147483648, %v446_v37  ;;  %v458_v20 = vand.u32 2147483647, %v446_v37 }
  0xc5   :  { %vm454_vm4 = vweird.f32 %v446_v37 }
  0xc6   :  { %4690 = vrcp.f32 %v447_v41  ;;  %v422_v44 = vpop.f32.mrf.mxu2  ;;  %v475_v13 = vand.u32 2147483648, %v447_v41  ;;  %v473_v21 = vand.u32 2147483647, %v447_v41  ;;  %vm469_vm5 = vweird.f32 %v447_v41 }
  0xc7   :  { %v435_v48 = vpop.f32.mrf.mxu3  ;;  %v461_v29 = vor.u32 1.1754944e-38, %v460_v59  ;;  %vm459_vm7 = vcmp.eq.f32.partialorder %v458_v20, 8.507059e+37 }
  0xc8   :  { %v476_v36 = vor.u32 1.1754944e-38, %v475_v13  ;;  %vm474_vm9 = vcmp.eq.f32.partialorder %v473_v21, 8.507059e+37  ;;  %v506_v21 = vrot.slane %v5411_v5, 1 }
  0xc9   :  { %v4687_v57 = vpop.eup %4686 }
  0xca   :  { %v448_v58 = vadd.f32 1.0, %v4687_v57  ;;  %v4689_v60 = vpop.eup %4688 }
  0xcb   :  { %v450_v6 = vmul.f32 %v4689_v60, %v446_v37  ;;  %vm455_vm2 = vweird.f32 %v4689_v60 }
  0xcc   :  { %v4691_v0 = vpop.eup %4690  ;;  %4692 = vrcp.f32 %v448_v58  ;;  %vm456_vm6 = vmor %vm454_vm4, %vm455_vm2  ;;  %vm484_vm11 = vweird.f32 %v448_v58 }
  0xcd   :  { %v465_v7 = vmul.f32 %v4691_v0, %v447_v41  ;;  %v451_v8 = vsub.f32 1.0, %v450_v6  ;;  %4694 = vtanh.f32 %v434_v61  ;;  %vm470_vm3 = vweird.f32 %v4691_v0 }
  0xce   :  { %vm471_vm8 = vmor %vm469_vm5, %vm470_vm3  ;;  %v490_v41 = vand.u32 2147483648, %v448_v58 }
  0xcf   :  { %v466_v9 = vsub.f32 1.0, %v465_v7  ;;  %v452_v14 = vmul.f32 %v4689_v60, %v451_v8 }
  0xd0   :  { %v491_v13 = vor.u32 1.1754944e-38, %v490_v41 }
  0xd1   :  { %v467_v4 = vmul.f32 %v4691_v0, %v466_v9  ;;  %v453_v23 = vadd.f32 %v4689_v60, %v452_v14 }
  0xd2   :  { %v4693_v22 = vpop.eup %4692 }
  0xd3   :  { %v480_v25 = vmul.f32 %v4693_v22, %v448_v58  ;;  %v468_v30 = vadd.f32 %v4691_v0, %v467_v4  ;;  %v457_v35 = vsel %vm456_vm6, %v4689_v60, %v453_v23  ;;  %v4695_v40 = vpop.eup %4694  ;;  %vm485_vm10 = vweird.f32 %v4693_v22 }
  0xd4   :  { %v462_v48 = vsel %vm459_vm7, %v461_v29, %v457_v35  ;;  %v488_v60 = vand.u32 2147483647, %v448_v58  ;;  %vm486_vm12 = vmor %vm484_vm11, %vm485_vm10  ;;  %v505_v58 = vrot.slane %v5409_v1, 1 }
  0xd5   :  { %v481_v44 = vsub.f32 1.0, %v480_v25  ;;  %v472_v57 = vsel %vm471_vm8, %v4691_v0, %v468_v30  ;;  %v496_v6 = vmul.f32 %v4695_v40, %v462_v48 }
  0xd6   :  { %v477_v61 = vsel %vm474_vm9, %v476_v36, %v472_v57  ;;  %vm489_vm13 = vcmp.eq.f32.partialorder %v488_v60, 8.507059e+37  ;;  %v507_v36 = vrot.slane %v5415_v19, 1 }
  0xd7   :  { %v495_v7 = vmul.f32 0.0, %v477_v61  ;;  %v482_v8 = vmul.f32 %v4693_v22, %v481_v44 }
  0xd9   :  { %v5421_v9 = vadd.f32 %v496_v6, %v495_v7  ;;  %v483_v37 = vadd.f32 %v4693_v22, %v482_v8 }
  0xdb   :  { %4696 = vtanh.f32 %v5421_v9  ;;  %v487_v59 = vsel %vm486_vm12, %v4693_v22, %v483_v37 }
  0xdc   :  { %v492_v0 = vsel %vm489_vm13, %v491_v13, %v487_v59 }
  0xe1   :  { %v4697_v14 = vpop.eup %4696 }
  0xe2   :  { %v499_v20 = vmul.f32 %v4697_v14, %v492_v0  ;;  %v508_v14 = vrot.slane %v5418_v47, 1 }
  0xe4   :  { %v500_v4 = vpack.c.bf16 %v499_v20, %v499_v20 }
  0xe6   :  { %521 = vmatmul.bf16.vlgmr.msra.gmra.mxu0 %v500_v4  ;;  %534 = vmatmul.bf16.vlgmr.msra.gmra.mxu1 %v500_v4 }
  0xe7   :  { %547 = vmatmul.bf16.vlgmr.msra.gmra.mxu2 %v500_v4  ;;  %560 = vmatmul.bf16.vlgmr.msra.gmra.mxu3 %v500_v4 }
  0xe8   :  { %761 = vmatpush.bf16.msra.mxu0 %v5231_v11  ;;  %774 = vmatpush.bf16.msra.mxu1 %v5233_v16 }
  0xe9   :  { %787 = vmatpush.bf16.msra.mxu2 %v5235_v17  ;;  %800 = vmatpush.bf16.msra.mxu3 %v5239_v24 }
  0xec   :  { %762 = vmatpush.bf16.msra.mxu0 %v5246_v28  ;;  %775 = vmatpush.bf16.msra.mxu1 %v5250_v31 }
  0xed   :  { %788 = vmatpush.bf16.msra.mxu2 %v5252_v32  ;;  %801 = vmatpush.bf16.msra.mxu3 %v5257_v38 }
  0xf0   :  { %763 = vmatpush.bf16.msra.mxu0 %v5261_v39  ;;  %776 = vmatpush.bf16.msra.mxu1 %v5266_v42 }
  0xf1   :  { %789 = vmatpush.bf16.msra.mxu2 %v5268_v43  ;;  %802 = vmatpush.bf16.msra.mxu3 %v5272_v50 }
  0xf4   :  { %764 = vmatpush.bf16.msra.mxu0 %v5275_v51  ;;  %777 = vmatpush.bf16.msra.mxu1 %v5279_v54 }
  0xf5   :  { %790 = vmatpush.bf16.msra.mxu2 %v5281_v55  ;;  %803 = vmatpush.bf16.msra.mxu3 %v5284_v62 }
  0xf8   :  { %765 = vmatpush.bf16.msra.mxu0 %v5287_v63  ;;  %778 = vmatpush.bf16.msra.mxu1 %v5291_v2 }
  0xf9   :  { %791 = vmatpush.bf16.msra.mxu2 %v5293_v3  ;;  %804 = vmatpush.bf16.msra.mxu3 %v5296_v10 }
  0xfc   :  { %766 = vmatpush.bf16.msra.mxu0 %v5299_v12  ;;  %779 = vmatpush.bf16.msra.mxu1 %v5303_v15 }
  0xfd   :  { %792 = vmatpush.bf16.msra.mxu2 %v5305_v18  ;;  %805 = vmatpush.bf16.msra.mxu3 %v5308_v26 }
 0x100   :  { %767 = vmatpush.bf16.msra.mxu0 %v5311_v27  ;;  %780 = vmatpush.bf16.msra.mxu1 %v5315_v33 }
 0x101   :  { %793 = vmatpush.bf16.msra.mxu2 %v5317_v34  ;;  %806 = vmatpush.bf16.msra.mxu3 %v5320_v45 }
 0x104   :  { %768 = vmatpush.bf16.msra.mxu0 %v5323_v46  ;;  %781 = vmatpush.bf16.msra.mxu1 %v5327_v49 }
 0x105   :  { %794 = vmatpush.bf16.msra.mxu2 %v5329_v52  ;;  %807 = vmatpush.bf16.msra.mxu3 %v5332_v53 }
 0x163   :  { %v522_v22 = vpop.f32.mrf.mxu0  ;;  %v535_v23 = vpop.f32.mrf.mxu1 }
 0x164   :  { %v523_v25 = vadd.f32 %v522_v22, %v505_v58  ;;  %v536_v29 = vadd.f32 %v535_v23, %v506_v21 }
 0x166   :  { %v4234_v30 = vmul.f32 -1.442695, %v523_v25  ;;  %v4235_v35 = vmul.f32 -1.442695, %v536_v29 }
 0x168   :  { %4698 = vpow2.f32 %v4234_v30 }
 0x169   :  { %4700 = vpow2.f32 %v4235_v35 }
 0x16a   :  { %v548_v40 = vpop.f32.mrf.mxu2  ;;  %v561_v44 = vpop.f32.mrf.mxu3 }
 0x16b   :  { %v549_v48 = vadd.f32 %v548_v40, %v507_v36  ;;  %v524_v57 = vpop.f32.mrf.mxu0  ;;  %v537_v61 = vpop.f32.mrf.mxu1  ;;  %v562_v4 = vadd.f32 %v561_v44, %v508_v14 }
 0x16d   :  { %v4236_v6 = vmul.f32 -1.442695, %v549_v48 }
 0x16e   :  { %v4699_v7 = vpop.eup %4698 }
 0x16f   :  { %v4701_v8 = vpop.eup %4700  ;;  %v574_v37 = vadd.f32 1.0, %v4699_v7  ;;  %4702 = vpow2.f32 %v4236_v6 }
 0x170   :  { %v575_v41 = vadd.f32 1.0, %v4701_v8 }
 0x171   :  { %4704 = vrcp.f32 %v574_v37  ;;  %v588_v29 = vand.u32 2147483648, %v574_v37  ;;  %v586_v36 = vand.u32 2147483647, %v574_v37  ;;  %vm582_vm2 = vweird.f32 %v574_v37 }
 0x172   :  { %4706 = vrcp.f32 %v575_v41  ;;  %v550_v60 = vpop.f32.mrf.mxu2  ;;  %v563_v59 = vpop.f32.mrf.mxu3  ;;  %v603_v30 = vand.u32 2147483648, %v575_v41  ;;  %v601_v48 = vand.u32 2147483647, %v575_v41  ;;  %vm597_vm3 = vweird.f32 %v575_v41 }
 0x173   :  { %v589_v6 = vor.u32 1.1754944e-38, %v588_v29  ;;  %vm587_vm5 = vcmp.eq.f32.partialorder %v586_v36, 8.507059e+37 }
 0x174   :  { %v604_v60 = vor.u32 1.1754944e-38, %v603_v30  ;;  %vm602_vm7 = vcmp.eq.f32.partialorder %v601_v48, 8.507059e+37 }
 0x175   :  { %v4703_v13 = vpop.eup %4702 }
 0x176   :  { %v576_v0 = vadd.f32 1.0, %v4703_v13 }
 0x177   :  { %v4705_v20 = vpop.eup %4704 }
 0x178   :  { %v4707_v58 = vpop.eup %4706  ;;  %v578_v21 = vmul.f32 %v4705_v20, %v574_v37  ;;  %4708 = vrcp.f32 %v576_v0  ;;  %vm583_vm14 = vweird.f32 %v4705_v20  ;;  %vm612_vm9 = vweird.f32 %v576_v0 }
 0x179   :  { %v593_v22 = vmul.f32 %v4707_v58, %v575_v41  ;;  %4710 = vtanh.f32 %v562_v4  ;;  %vm598_vm15 = vweird.f32 %v4707_v58  ;;  %vm584_vm4 = vmor %vm582_vm2, %vm583_vm14  ;;  %v616_v29 = vand.u32 2147483647, %v576_v0 }
 0x17a   :  { %v579_v23 = vsub.f32 1.0, %v578_v21  ;;  %vm599_vm6 = vmor %vm597_vm3, %vm598_vm15 }
 0x17b   :  { %v594_v25 = vsub.f32 1.0, %v593_v22  ;;  %vm617_vm11 = vcmp.eq.f32.partialorder %v616_v29, 8.507059e+37 }
 0x17c   :  { %v580_v35 = vmul.f32 %v4705_v20, %v579_v23 }
 0x17d   :  { %v595_v40 = vmul.f32 %v4707_v58, %v594_v25 }
 0x17e   :  { %v4709_v57 = vpop.eup %4708  ;;  %v581_v61 = vadd.f32 %v4705_v20, %v580_v35 }
 0x17f   :  { %v608_v44 = vmul.f32 %v4709_v57, %v576_v0  ;;  %v596_v7 = vadd.f32 %v4707_v58, %v595_v40  ;;  %v4711_v59 = vpop.eup %4710  ;;  %vm613_vm8 = vweird.f32 %v4709_v57 }
 0x180   :  { %v585_v8 = vsel %vm584_vm4, %v4705_v20, %v581_v61  ;;  %v618_v20 = vand.u32 2147483648, %v576_v0  ;;  %vm614_vm10 = vmor %vm612_vm9, %vm613_vm8  ;;  %v630_v0 = vrot.slane %v5411_v5, 2 }
 0x181   :  { %v609_v13 = vsub.f32 1.0, %v608_v44  ;;  %v590_v14 = vsel %vm587_vm5, %v589_v6, %v585_v8  ;;  %v600_v4 = vsel %vm599_vm6, %v4707_v58, %v596_v7 }
 0x182   :  { %v605_v21 = vsel %vm602_vm7, %v604_v60, %v600_v4  ;;  %v624_v22 = vmul.f32 %v4711_v59, %v590_v14  ;;  %v619_v35 = vor.u32 1.1754944e-38, %v618_v20  ;;  %v631_v60 = vrot.slane %v5415_v19, 2 }
 0x183   :  { %v623_v23 = vmul.f32 %v605_v21, %v5421_v9  ;;  %v610_v25 = vmul.f32 %v4709_v57, %v609_v13  ;;  %v629_v9 = vrot.slane %v5409_v1, 2 }
 0x185   :  { %v5461_v37 = vadd.f32 %v624_v22, %v623_v23  ;;  %v611_v41 = vadd.f32 %v4709_v57, %v610_v25 }
 0x187   :  { %4712 = vtanh.f32 %v5461_v37  ;;  %v615_v30 = vsel %vm614_vm10, %v4709_v57, %v611_v41 }
 0x188   :  { %v620_v36 = vsel %vm617_vm11, %v619_v35, %v615_v30 }
 0x18d   :  { %v4713_v58 = vpop.eup %4712 }
 0x18e   :  { %v627_v40 = vmul.f32 %v4713_v58, %v620_v36  ;;  %v632_v58 = vrot.slane %v5418_v47, 2 }
 0x190   :  { %v628_v48 = vpack.c.bf16 %v627_v40, %v627_v40 }
 0x192   :  { %645 = vmatmul.bf16.vlgmr.msrb.gmra.mxu0 %v628_v48  ;;  %658 = vmatmul.bf16.vlgmr.msrb.gmra.mxu1 %v628_v48 }
 0x193   :  { %671 = vmatmul.bf16.vlgmr.msrb.gmra.mxu2 %v628_v48  ;;  %684 = vmatmul.bf16.vlgmr.msrb.gmra.mxu3 %v628_v48 }
 0x194   :  { %885 = vmatpush.bf16.msrb.mxu0 %v5231_v11  ;;  %898 = vmatpush.bf16.msrb.mxu1 %v5233_v16 }
 0x195   :  { %911 = vmatpush.bf16.msrb.mxu2 %v5235_v17  ;;  %924 = vmatpush.bf16.msrb.mxu3 %v5239_v24 }
 0x198   :  { %886 = vmatpush.bf16.msrb.mxu0 %v5246_v28  ;;  %899 = vmatpush.bf16.msrb.mxu1 %v5250_v31 }
 0x199   :  { %912 = vmatpush.bf16.msrb.mxu2 %v5252_v32  ;;  %925 = vmatpush.bf16.msrb.mxu3 %v5257_v38 }
 0x19c   :  { %887 = vmatpush.bf16.msrb.mxu0 %v5261_v39  ;;  %900 = vmatpush.bf16.msrb.mxu1 %v5266_v42 }
 0x19d   :  { %913 = vmatpush.bf16.msrb.mxu2 %v5268_v43  ;;  %926 = vmatpush.bf16.msrb.mxu3 %v5272_v50 }
 0x1a0   :  { %888 = vmatpush.bf16.msrb.mxu0 %v5275_v51  ;;  %901 = vmatpush.bf16.msrb.mxu1 %v5279_v54 }
 0x1a1   :  { %914 = vmatpush.bf16.msrb.mxu2 %v5281_v55  ;;  %927 = vmatpush.bf16.msrb.mxu3 %v5284_v62 }
 0x1a4   :  { %889 = vmatpush.bf16.msrb.mxu0 %v5287_v63  ;;  %902 = vmatpush.bf16.msrb.mxu1 %v5291_v2 }
 0x1a5   :  { %915 = vmatpush.bf16.msrb.mxu2 %v5293_v3  ;;  %928 = vmatpush.bf16.msrb.mxu3 %v5296_v10 }
 0x1a8   :  { %890 = vmatpush.bf16.msrb.mxu0 %v5299_v12  ;;  %903 = vmatpush.bf16.msrb.mxu1 %v5303_v15 }
 0x1a9   :  { %916 = vmatpush.bf16.msrb.mxu2 %v5305_v18  ;;  %929 = vmatpush.bf16.msrb.mxu3 %v5308_v26 }
 0x1ac   :  { %891 = vmatpush.bf16.msrb.mxu0 %v5311_v27  ;;  %904 = vmatpush.bf16.msrb.mxu1 %v5315_v33 }
 0x1ad   :  { %917 = vmatpush.bf16.msrb.mxu2 %v5317_v34  ;;  %930 = vmatpush.bf16.msrb.mxu3 %v5320_v45 }
 0x1b0   :  { %892 = vmatpush.bf16.msrb.mxu0 %v5323_v46  ;;  %905 = vmatpush.bf16.msrb.mxu1 %v5327_v49 }
 0x1b1   :  { %918 = vmatpush.bf16.msrb.mxu2 %v5329_v52  ;;  %931 = vmatpush.bf16.msrb.mxu3 %v5332_v53 }
 0x20f   :  { %v646_v57 = vpop.f32.mrf.mxu0  ;;  %v659_v61 = vpop.f32.mrf.mxu1 }
 0x210   :  { %v647_v44 = vadd.f32 %v646_v57, %v629_v9  ;;  %v660_v6 = vadd.f32 %v659_v61, %v630_v0 }
 0x212   :  { %v4237_v7 = vmul.f32 -1.442695, %v647_v44  ;;  %v4238_v8 = vmul.f32 -1.442695, %v660_v6 }
 0x214   :  { %4714 = vpow2.f32 %v4237_v7 }
 0x215   :  { %4716 = vpow2.f32 %v4238_v8 }
 0x216   :  { %v672_v59 = vpop.f32.mrf.mxu2  ;;  %v685_v13 = vpop.f32.mrf.mxu3 }
 0x217   :  { %v673_v14 = vadd.f32 %v672_v59, %v631_v60  ;;  %v648_v4 = vpop.f32.mrf.mxu0  ;;  %v661_v21 = vpop.f32.mrf.mxu1  ;;  %v686_v48 = vadd.f32 %v685_v13, %v632_v58 }
 0x219   :  { %v4239_v22 = vmul.f32 -1.442695, %v673_v14 }
 0x21a   :  { %v4715_v23 = vpop.eup %4714 }
 0x21b   :  { %v4717_v25 = vpop.eup %4716  ;;  %v698_v41 = vadd.f32 1.0, %v4715_v23  ;;  %4718 = vpow2.f32 %v4239_v22 }
 0x21c   :  { %v699_v20 = vadd.f32 1.0, %v4717_v25 }
 0x21d   :  { %4720 = vrcp.f32 %v698_v41  ;;  %v712_v6 = vand.u32 2147483648, %v698_v41  ;;  %v710_v60 = vand.u32 2147483647, %v698_v41  ;;  %vm706_vm14 = vweird.f32 %v698_v41 }
 0x21e   :  { %4722 = vrcp.f32 %v699_v20  ;;  %v674_v29 = vpop.f32.mrf.mxu2  ;;  %v687_v30 = vpop.f32.mrf.mxu3  ;;  %v727_v7 = vand.u32 2147483648, %v699_v20  ;;  %v725_v14 = vand.u32 2147483647, %v699_v20  ;;  %vm721_vm15 = vweird.f32 %v699_v20 }
 0x21f   :  { %v713_v22 = vor.u32 1.1754944e-38, %v712_v6  ;;  %vm711_vm3 = vcmp.eq.f32.partialorder %v710_v60, 8.507059e+37 }
 0x220   :  { %v728_v29 = vor.u32 1.1754944e-38, %v727_v7  ;;  %vm726_vm5 = vcmp.eq.f32.partialorder %v725_v14, 8.507059e+37 }
 0x221   :  { %v4719_v35 = vpop.eup %4718 }
 0x222   :  { %v700_v36 = vadd.f32 1.0, %v4719_v35 }
 0x223   :  { %v4721_v40 = vpop.eup %4720 }
 0x224   :  { %v4723_v9 = vpop.eup %4722  ;;  %v702_v0 = vmul.f32 %v4721_v40, %v698_v41  ;;  %4724 = vrcp.f32 %v700_v36  ;;  %vm707_vm12 = vweird.f32 %v4721_v40  ;;  %vm736_vm7 = vweird.f32 %v700_v36 }
 0x225   :  { %v717_v57 = vmul.f32 %v4723_v9, %v699_v20  ;;  %4726 = vtanh.f32 %v686_v48  ;;  %vm722_vm13 = vweird.f32 %v4723_v9  ;;  %vm708_vm2 = vmor %vm706_vm14, %vm707_vm12  ;;  %v740_v6 = vand.u32 2147483647, %v700_v36 }
 0x226   :  { %v703_v61 = vsub.f32 1.0, %v702_v0  ;;  %vm723_vm4 = vmor %vm721_vm15, %vm722_vm13 }
 0x227   :  { %v718_v44 = vsub.f32 1.0, %v717_v57  ;;  %vm741_vm9 = vcmp.eq.f32.partialorder %v740_v6, 8.507059e+37 }
 0x228   :  { %v704_v8 = vmul.f32 %v4721_v40, %v703_v61 }
 0x229   :  { %v719_v59 = vmul.f32 %v4723_v9, %v718_v44 }
 0x22a   :  { %v4725_v4 = vpop.eup %4724  ;;  %v705_v21 = vadd.f32 %v4721_v40, %v704_v8 }
 0x22b   :  { %v732_v13 = vmul.f32 %v4725_v4, %v700_v36  ;;  %v720_v23 = vadd.f32 %v4723_v9, %v719_v59  ;;  %v4727_v30 = vpop.eup %4726  ;;  %vm737_vm6 = vweird.f32 %v4725_v4 }
 0x22c   :  { %v709_v25 = vsel %vm708_vm2, %v4721_v40, %v705_v21  ;;  %v742_v40 = vand.u32 2147483648, %v700_v36  ;;  %vm738_vm8 = vmor %vm736_vm7, %vm737_vm6  ;;  %v754_v36 = vrot.slane %v5411_v5, 3 }
 0x22d   :  { %v733_v35 = vsub.f32 1.0, %v732_v13  ;;  %v714_v58 = vsel %vm711_vm3, %v713_v22, %v709_v25  ;;  %v724_v48 = vsel %vm723_vm4, %v4723_v9, %v720_v23 }
 0x22e   :  { %v729_v0 = vsel %vm726_vm5, %v728_v29, %v724_v48  ;;  %v748_v57 = vmul.f32 %v4727_v30, %v714_v58  ;;  %v743_v8 = vor.u32 1.1754944e-38, %v742_v40  ;;  %v755_v29 = vrot.slane %v5415_v19, 3 }
 0x22f   :  { %v747_v61 = vmul.f32 %v729_v0, %v5461_v37  ;;  %v734_v44 = vmul.f32 %v4725_v4, %v733_v35  ;;  %v753_v37 = vrot.slane %v5409_v1, 3 }
 0x231   :  { %v5501_v41 = vadd.f32 %v748_v57, %v747_v61  ;;  %v735_v20 = vadd.f32 %v4725_v4, %v734_v44 }
 0x233   :  { %4728 = vtanh.f32 %v5501_v41  ;;  %v739_v7 = vsel %vm738_vm8, %v4725_v4, %v735_v20 }
 0x234   :  { %v744_v60 = vsel %vm741_vm9, %v743_v8, %v739_v7 }
 0x239   :  { %v4729_v9 = vpop.eup %4728 }
 0x23a   :  { %v751_v59 = vmul.f32 %v4729_v9, %v744_v60  ;;  %v756_v9 = vrot.slane %v5418_v47, 3 }
 0x23c   :  { %v752_v14 = vpack.c.bf16 %v751_v59, %v751_v59 }
 0x23e   :  { %769 = vmatmul.bf16.vlgmr.msra.gmra.mxu0 %v752_v14  ;;  %782 = vmatmul.bf16.vlgmr.msra.gmra.mxu1 %v752_v14 }
 0x23f   :  { %795 = vmatmul.bf16.vlgmr.msra.gmra.mxu2 %v752_v14  ;;  %808 = vmatmul.bf16.vlgmr.msra.gmra.mxu3 %v752_v14 }
 0x240   :  { %1009 = vmatpush.bf16.msra.mxu0 %v5231_v11  ;;  %1022 = vmatpush.bf16.msra.mxu1 %v5233_v16 }
 0x241   :  { %1035 = vmatpush.bf16.msra.mxu2 %v5235_v17  ;;  %1048 = vmatpush.bf16.msra.mxu3 %v5239_v24 }
 0x244   :  { %1010 = vmatpush.bf16.msra.mxu0 %v5246_v28  ;;  %1023 = vmatpush.bf16.msra.mxu1 %v5250_v31 }
 0x245   :  { %1036 = vmatpush.bf16.msra.mxu2 %v5252_v32  ;;  %1049 = vmatpush.bf16.msra.mxu3 %v5257_v38 }
 0x248   :  { %1011 = vmatpush.bf16.msra.mxu0 %v5261_v39  ;;  %1024 = vmatpush.bf16.msra.mxu1 %v5266_v42 }
 0x249   :  { %1037 = vmatpush.bf16.msra.mxu2 %v5268_v43  ;;  %1050 = vmatpush.bf16.msra.mxu3 %v5272_v50 }
 0x24c   :  { %1012 = vmatpush.bf16.msra.mxu0 %v5275_v51  ;;  %1025 = vmatpush.bf16.msra.mxu1 %v5279_v54 }
 0x24d   :  { %1038 = vmatpush.bf16.msra.mxu2 %v5281_v55  ;;  %1051 = vmatpush.bf16.msra.mxu3 %v5284_v62 }
 0x250   :  { %1013 = vmatpush.bf16.msra.mxu0 %v5287_v63  ;;  %1026 = vmatpush.bf16.msra.mxu1 %v5291_v2 }
 0x251   :  { %1039 = vmatpush.bf16.msra.mxu2 %v5293_v3  ;;  %1052 = vmatpush.bf16.msra.mxu3 %v5296_v10 }
 0x254   :  { %1014 = vmatpush.bf16.msra.mxu0 %v5299_v12  ;;  %1027 = vmatpush.bf16.msra.mxu1 %v5303_v15 }
 0x255   :  { %1040 = vmatpush.bf16.msra.mxu2 %v5305_v18  ;;  %1053 = vmatpush.bf16.msra.mxu3 %v5308_v26 }
 0x258   :  { %1015 = vmatpush.bf16.msra.mxu0 %v5311_v27  ;;  %1028 = vmatpush.bf16.msra.mxu1 %v5315_v33 }
 0x259   :  { %1041 = vmatpush.bf16.msra.mxu2 %v5317_v34  ;;  %1054 = vmatpush.bf16.msra.mxu3 %v5320_v45 }
 0x25c   :  { %1016 = vmatpush.bf16.msra.mxu0 %v5323_v46  ;;  %1029 = vmatpush.bf16.msra.mxu1 %v5327_v49 }
 0x25d   :  { %1042 = vmatpush.bf16.msra.mxu2 %v5329_v52  ;;  %1055 = vmatpush.bf16.msra.mxu3 %v5332_v53 }
 0x2bb   :  { %v770_v4 = vpop.f32.mrf.mxu0  ;;  %v783_v21 = vpop.f32.mrf.mxu1 }
 0x2bc   :  { %v771_v13 = vadd.f32 %v770_v4, %v753_v37  ;;  %v784_v22 = vadd.f32 %v783_v21, %v754_v36 }
 0x2be   :  { %v4240_v23 = vmul.f32 -1.442695, %v771_v13  ;;  %v4241_v25 = vmul.f32 -1.442695, %v784_v22 }
 0x2c0   :  { %4730 = vpow2.f32 %v4240_v23 }
 0x2c1   :  { %4732 = vpow2.f32 %v4241_v25 }
 0x2c2   :  { %v796_v30 = vpop.f32.mrf.mxu2  ;;  %v809_v35 = vpop.f32.mrf.mxu3 }
 0x2c3   :  { %v797_v58 = vadd.f32 %v796_v30, %v755_v29  ;;  %v772_v48 = vpop.f32.mrf.mxu0  ;;  %v785_v0 = vpop.f32.mrf.mxu1  ;;  %v810_v14 = vadd.f32 %v809_v35, %v756_v9 }
 0x2c5   :  { %v4242_v57 = vmul.f32 -1.442695, %v797_v58 }
 0x2c6   :  { %v4731_v61 = vpop.eup %4730 }
 0x2c7   :  { %v4733_v44 = vpop.eup %4732  ;;  %v822_v20 = vadd.f32 1.0, %v4731_v61  ;;  %4734 = vpow2.f32 %v4242_v57 }
 0x2c8   :  { %v823_v40 = vadd.f32 1.0, %v4733_v44 }
 0x2c9   :  { %4736 = vrcp.f32 %v822_v20  ;;  %v836_v22 = vand.u32 2147483648, %v822_v20  ;;  %v834_v29 = vand.u32 2147483647, %v822_v20  ;;  %vm830_vm12 = vweird.f32 %v822_v20 }
 0x2ca   :  { %4738 = vrcp.f32 %v823_v40  ;;  %v798_v6 = vpop.f32.mrf.mxu2  ;;  %v811_v7 = vpop.f32.mrf.mxu3  ;;  %v851_v23 = vand.u32 2147483648, %v823_v40  ;;  %v849_v58 = vand.u32 2147483647, %v823_v40  ;;  %vm845_vm13 = vweird.f32 %v823_v40 }
 0x2cb   :  { %v837_v57 = vor.u32 1.1754944e-38, %v836_v22  ;;  %vm835_vm15 = vcmp.eq.f32.partialorder %v834_v29, 8.507059e+37 }
 0x2cc   :  { %v852_v6 = vor.u32 1.1754944e-38, %v851_v23  ;;  %vm850_vm3 = vcmp.eq.f32.partialorder %v849_v58, 8.507059e+37 }
 0x2cd   :  { %v4735_v8 = vpop.eup %4734 }
 0x2ce   :  { %v824_v60 = vadd.f32 1.0, %v4735_v8 }
 0x2cf   :  { %v4737_v59 = vpop.eup %4736 }
 0x2d0   :  { %v4739_v37 = vpop.eup %4738  ;;  %v826_v36 = vmul.f32 %v4737_v59, %v822_v20  ;;  %4740 = vrcp.f32 %v824_v60  ;;  %vm831_vm10 = vweird.f32 %v4737_v59  ;;  %vm860_vm5 = vweird.f32 %v824_v60 }
 0x2d1   :  { %v841_v4 = vmul.f32 %v4739_v37, %v823_v40  ;;  %4742 = vtanh.f32 %v810_v14  ;;  %vm846_vm11 = vweird.f32 %v4739_v37  ;;  %vm832_vm14 = vmor %vm830_vm12, %vm831_vm10  ;;  %v864_v22 = vand.u32 2147483647, %v824_v60 }
 0x2d2   :  { %v827_v21 = vsub.f32 1.0, %v826_v36  ;;  %vm847_vm2 = vmor %vm845_vm13, %vm846_vm11 }
 0x2d3   :  { %v842_v13 = vsub.f32 1.0, %v841_v4  ;;  %vm865_vm7 = vcmp.eq.f32.partialorder %v864_v22, 8.507059e+37 }
 0x2d4   :  { %v828_v25 = vmul.f32 %v4737_v59, %v827_v21 }
 0x2d5   :  { %v843_v30 = vmul.f32 %v4739_v37, %v842_v13 }
 0x2d6   :  { %v4741_v48 = vpop.eup %4740  ;;  %v829_v0 = vadd.f32 %v4737_v59, %v828_v25 }
 0x2d7   :  { %v856_v35 = vmul.f32 %v4741_v48, %v824_v60  ;;  %v844_v61 = vadd.f32 %v4739_v37, %v843_v30  ;;  %v4743_v7 = vpop.eup %4742  ;;  %vm861_vm4 = vweird.f32 %v4741_v48 }
 0x2d8   :  { %v833_v44 = vsel %vm832_vm14, %v4737_v59, %v829_v0  ;;  %v866_v59 = vand.u32 2147483648, %v824_v60  ;;  %vm862_vm6 = vmor %vm860_vm5, %vm861_vm4  ;;  %v878_v60 = vrot.slane %v5411_v5, 4 }
 0x2d9   :  { %v857_v8 = vsub.f32 1.0, %v856_v35  ;;  %v838_v9 = vsel %vm835_vm15, %v837_v57, %v833_v44  ;;  %v848_v14 = vsel %vm847_vm2, %v4739_v37, %v844_v61 }
 0x2da   :  { %v853_v36 = vsel %vm850_vm3, %v852_v6, %v848_v14  ;;  %v872_v4 = vmul.f32 %v4743_v7, %v838_v9  ;;  %v867_v25 = vor.u32 1.1754944e-38, %v866_v59  ;;  %v879_v6 = vrot.slane %v5415_v19, 4 }
 0x2db   :  { %v871_v21 = vmul.f32 %v853_v36, %v5501_v41  ;;  %v858_v13 = vmul.f32 %v4741_v48, %v857_v8  ;;  %v877_v41 = vrot.slane %v5409_v1, 4 }
 0x2dd   :  { %v5541_v20 = vadd.f32 %v872_v4, %v871_v21  ;;  %v859_v40 = vadd.f32 %v4741_v48, %v858_v13 }
 0x2df   :  { %4744 = vtanh.f32 %v5541_v20  ;;  %v863_v23 = vsel %vm862_vm6, %v4741_v48, %v859_v40 }
 0x2e0   :  { %v868_v29 = vsel %vm865_vm7, %v867_v25, %v863_v23 }
 0x2e5   :  { %v4745_v37 = vpop.eup %4744 }
 0x2e6   :  { %v875_v30 = vmul.f32 %v4745_v37, %v868_v29  ;;  %v880_v37 = vrot.slane %v5418_v47, 4 }
 0x2e8   :  { %v876_v58 = vpack.c.bf16 %v875_v30, %v875_v30 }
 0x2ea   :  { %893 = vmatmul.bf16.vlgmr.msrb.gmra.mxu0 %v876_v58  ;;  %906 = vmatmul.bf16.vlgmr.msrb.gmra.mxu1 %v876_v58 }
 0x2eb   :  { %919 = vmatmul.bf16.vlgmr.msrb.gmra.mxu2 %v876_v58  ;;  %932 = vmatmul.bf16.vlgmr.msrb.gmra.mxu3 %v876_v58 }
 0x2ec   :  { %1133 = vmatpush.bf16.msrb.mxu0 %v5231_v11  ;;  %1146 = vmatpush.bf16.msrb.mxu1 %v5233_v16 }
 0x2ed   :  { %1159 = vmatpush.bf16.msrb.mxu2 %v5235_v17  ;;  %1172 = vmatpush.bf16.msrb.mxu3 %v5239_v24 }
 0x2f0   :  { %1134 = vmatpush.bf16.msrb.mxu0 %v5246_v28  ;;  %1147 = vmatpush.bf16.msrb.mxu1 %v5250_v31 }
 0x2f1   :  { %1160 = vmatpush.bf16.msrb.mxu2 %v5252_v32  ;;  %1173 = vmatpush.bf16.msrb.mxu3 %v5257_v38 }
 0x2f4   :  { %1135 = vmatpush.bf16.msrb.mxu0 %v5261_v39  ;;  %1148 = vmatpush.bf16.msrb.mxu1 %v5266_v42 }
 0x2f5   :  { %1161 = vmatpush.bf16.msrb.mxu2 %v5268_v43  ;;  %1174 = vmatpush.bf16.msrb.mxu3 %v5272_v50 }
 0x2f8   :  { %1136 = vmatpush.bf16.msrb.mxu0 %v5275_v51  ;;  %1149 = vmatpush.bf16.msrb.mxu1 %v5279_v54 }
 0x2f9   :  { %1162 = vmatpush.bf16.msrb.mxu2 %v5281_v55  ;;  %1175 = vmatpush.bf16.msrb.mxu3 %v5284_v62 }
 0x2fc   :  { %1137 = vmatpush.bf16.msrb.mxu0 %v5287_v63  ;;  %1150 = vmatpush.bf16.msrb.mxu1 %v5291_v2 }
 0x2fd   :  { %1163 = vmatpush.bf16.msrb.mxu2 %v5293_v3  ;;  %1176 = vmatpush.bf16.msrb.mxu3 %v5296_v10 }
 0x300   :  { %1138 = vmatpush.bf16.msrb.mxu0 %v5299_v12  ;;  %1151 = vmatpush.bf16.msrb.mxu1 %v5303_v15 }
 0x301   :  { %1164 = vmatpush.bf16.msrb.mxu2 %v5305_v18  ;;  %1177 = vmatpush.bf16.msrb.mxu3 %v5308_v26 }
 0x304   :  { %1139 = vmatpush.bf16.msrb.mxu0 %v5311_v27  ;;  %1152 = vmatpush.bf16.msrb.mxu1 %v5315_v33 }
 0x305   :  { %1165 = vmatpush.bf16.msrb.mxu2 %v5317_v34  ;;  %1178 = vmatpush.bf16.msrb.mxu3 %v5320_v45 }
 0x308   :  { %1140 = vmatpush.bf16.msrb.mxu0 %v5323_v46  ;;  %1153 = vmatpush.bf16.msrb.mxu1 %v5327_v49 }
 0x309   :  { %1166 = vmatpush.bf16.msrb.mxu2 %v5329_v52  ;;  %1179 = vmatpush.bf16.msrb.mxu3 %v5332_v53 }
 0x367   :  { %v894_v48 = vpop.f32.mrf.mxu0  ;;  %v907_v0 = vpop.f32.mrf.mxu1 }
 0x368   :  { %v895_v35 = vadd.f32 %v894_v48, %v877_v41  ;;  %v908_v57 = vadd.f32 %v907_v0, %v878_v60 }
 0x36a   :  { %v4243_v61 = vmul.f32 -1.442695, %v895_v35  ;;  %v4244_v44 = vmul.f32 -1.442695, %v908_v57 }
 0x36c   :  { %4746 = vpow2.f32 %v4243_v61 }
 0x36d   :  { %4748 = vpow2.f32 %v4244_v44 }
 0x36e   :  { %v920_v7 = vpop.f32.mrf.mxu2  ;;  %v933_v8 = vpop.f32.mrf.mxu3 }
 0x36f   :  { %v921_v9 = vadd.f32 %v920_v7, %v879_v6  ;;  %v896_v14 = vpop.f32.mrf.mxu0  ;;  %v909_v36 = vpop.f32.mrf.mxu1  ;;  %v934_v58 = vadd.f32 %v933_v8, %v880_v37 }
 0x371   :  { %v4245_v4 = vmul.f32 -1.442695, %v921_v9 }
 0x372   :  { %v4747_v21 = vpop.eup %4746 }
 0x373   :  { %v4749_v13 = vpop.eup %4748  ;;  %v946_v40 = vadd.f32 1.0, %v4747_v21  ;;  %4750 = vpow2.f32 %v4245_v4 }
 0x374   :  { %v947_v59 = vadd.f32 1.0, %v4749_v13 }
 0x375   :  { %4752 = vrcp.f32 %v946_v40  ;;  %v960_v57 = vand.u32 2147483648, %v946_v40  ;;  %v958_v6 = vand.u32 2147483647, %v946_v40  ;;  %vm954_vm10 = vweird.f32 %v946_v40 }
 0x376   :  { %4754 = vrcp.f32 %v947_v59  ;;  %v922_v22 = vpop.f32.mrf.mxu2  ;;  %v935_v23 = vpop.f32.mrf.mxu3  ;;  %v975_v61 = vand.u32 2147483648, %v947_v59  ;;  %v973_v9 = vand.u32 2147483647, %v947_v59  ;;  %vm969_vm11 = vweird.f32 %v947_v59 }
 0x377   :  { %v961_v4 = vor.u32 1.1754944e-38, %v960_v57  ;;  %vm959_vm13 = vcmp.eq.f32.partialorder %v958_v6, 8.507059e+37 }
 0x378   :  { %v976_v22 = vor.u32 1.1754944e-38, %v975_v61  ;;  %vm974_vm15 = vcmp.eq.f32.partialorder %v973_v9, 8.507059e+37 }
 0x379   :  { %v4751_v25 = vpop.eup %4750 }
 0x37a   :  { %v948_v29 = vadd.f32 1.0, %v4751_v25 }
 0x37b   :  { %v4753_v30 = vpop.eup %4752 }
 0x37c   :  { %v4755_v41 = vpop.eup %4754  ;;  %v950_v60 = vmul.f32 %v4753_v30, %v946_v40  ;;  %4756 = vrcp.f32 %v948_v29  ;;  %vm955_vm8 = vweird.f32 %v4753_v30  ;;  %vm984_vm3 = vweird.f32 %v948_v29 }
 0x37d   :  { %v965_v48 = vmul.f32 %v4755_v41, %v947_v59  ;;  %4758 = vtanh.f32 %v934_v58  ;;  %vm970_vm9 = vweird.f32 %v4755_v41  ;;  %vm956_vm12 = vmor %vm954_vm10, %vm955_vm8  ;;  %v988_v57 = vand.u32 2147483647, %v948_v29 }
 0x37e   :  { %v951_v0 = vsub.f32 1.0, %v950_v60  ;;  %vm971_vm14 = vmor %vm969_vm11, %vm970_vm9 }
 0x37f   :  { %v966_v35 = vsub.f32 1.0, %v965_v48  ;;  %vm989_vm5 = vcmp.eq.f32.partialorder %v988_v57, 8.507059e+37 }
 0x380   :  { %v952_v44 = vmul.f32 %v4753_v30, %v951_v0 }
 0x381   :  { %v967_v7 = vmul.f32 %v4755_v41, %v966_v35 }
 0x382   :  { %v4757_v14 = vpop.eup %4756  ;;  %v953_v36 = vadd.f32 %v4753_v30, %v952_v44 }
 0x383   :  { %v980_v8 = vmul.f32 %v4757_v14, %v948_v29  ;;  %v968_v21 = vadd.f32 %v4755_v41, %v967_v7  ;;  %v4759_v23 = vpop.eup %4758  ;;  %vm985_vm2 = vweird.f32 %v4757_v14 }
 0x384   :  { %v957_v13 = vsel %vm956_vm12, %v4753_v30, %v953_v36  ;;  %v990_v30 = vand.u32 2147483648, %v948_v29  ;;  %vm986_vm4 = vmor %vm984_vm3, %vm985_vm2 }
 0x385   :  { %v981_v25 = vsub.f32 1.0, %v980_v8  ;;  %v962_v37 = vsel %vm959_vm13, %v961_v4, %v957_v13  ;;  %v972_v58 = vsel %vm971_vm14, %v4755_v41, %v968_v21 }
 0x386   :  { %v977_v60 = vsel %vm974_vm15, %v976_v22, %v972_v58  ;;  %v996_v48 = vmul.f32 %v4759_v23, %v962_v37  ;;  %v991_v44 = vor.u32 1.1754944e-38, %v990_v30 }
 0x387   :  { %v995_v0 = vmul.f32 %v977_v60, %v5541_v20  ;;  %v982_v35 = vmul.f32 %v4757_v14, %v981_v25 }
 0x389   :  { %v5581_v40 = vadd.f32 %v996_v48, %v995_v0  ;;  %v983_v59 = vadd.f32 %v4757_v14, %v982_v35 }
 0x38b   :  { %4760 = vtanh.f32 %v5581_v40  ;;  %v987_v61 = vsel %vm986_vm4, %v4757_v14, %v983_v59 }
 0x38c   :  { %v992_v6 = vsel %vm989_vm5, %v991_v44, %v987_v61 }
 0x391   :  { %v4761_v41 = vpop.eup %4760 }
 0x392   :  { %v999_v7 = vmul.f32 %v4761_v41, %v992_v6 }
 0x394   :  { %v1000_v9 = vpack.c.bf16 %v999_v7, %v999_v7 }
 0x396   :  { %1017 = vmatmul.bf16.vlgmr.msra.gmra.mxu0 %v1000_v9  ;;  %1030 = vmatmul.bf16.vlgmr.msra.gmra.mxu1 %v1000_v9 }
 0x397   :  { %1043 = vmatmul.bf16.vlgmr.msra.gmra.mxu2 %v1000_v9  ;;  %1056 = vmatmul.bf16.vlgmr.msra.gmra.mxu3 %v1000_v9 }
 0x398   :  { %1283 = vmatpush.bf16.msra.mxu2 %v5235_v17  ;;  %1257 = vmatpush.bf16.msra.mxu0 %v5231_v11  ;;  %v1001_v11 = vrot.slane %v5409_v1, 5 }
 0x399   :  { %1270 = vmatpush.bf16.msra.mxu1 %v5233_v16  ;;  %1296 = vmatpush.bf16.msra.mxu3 %v5239_v24  ;;  %v1002_v16 = vrot.slane %v5411_v5, 5 }
 0x39c   :  { %1284 = vmatpush.bf16.msra.mxu2 %v5252_v32  ;;  %1258 = vmatpush.bf16.msra.mxu0 %v5246_v28 }
 0x39d   :  { %1271 = vmatpush.bf16.msra.mxu1 %v5250_v31  ;;  %1297 = vmatpush.bf16.msra.mxu3 %v5257_v38 }
 0x3a0   :  { %1285 = vmatpush.bf16.msra.mxu2 %v5268_v43  ;;  %1259 = vmatpush.bf16.msra.mxu0 %v5261_v39  ;;  %v1003_v39 = vrot.slane %v5415_v19, 5 }
 0x3a1   :  { %1272 = vmatpush.bf16.msra.mxu1 %v5266_v42  ;;  %1298 = vmatpush.bf16.msra.mxu3 %v5272_v50 }
 0x3a4   :  { %1286 = vmatpush.bf16.msra.mxu2 %v5281_v55  ;;  %1260 = vmatpush.bf16.msra.mxu0 %v5275_v51 }
 0x3a5   :  { %1273 = vmatpush.bf16.msra.mxu1 %v5279_v54  ;;  %1299 = vmatpush.bf16.msra.mxu3 %v5284_v62 }
 0x3a8   :  { %1287 = vmatpush.bf16.msra.mxu2 %v5293_v3  ;;  %1261 = vmatpush.bf16.msra.mxu0 %v5287_v63 }
 0x3a9   :  { %1274 = vmatpush.bf16.msra.mxu1 %v5291_v2  ;;  %1300 = vmatpush.bf16.msra.mxu3 %v5296_v10 }
 0x3ac   :  { %1288 = vmatpush.bf16.msra.mxu2 %v5305_v18  ;;  %1262 = vmatpush.bf16.msra.mxu0 %v5299_v12  ;;  %v1004_v18 = vrot.slane %v5418_v47, 5 }
 0x3ad   :  { %1275 = vmatpush.bf16.msra.mxu1 %v5303_v15  ;;  %1301 = vmatpush.bf16.msra.mxu3 %v5308_v26 }
 0x3b0   :  { %1289 = vmatpush.bf16.msra.mxu2 %v5317_v34  ;;  %1263 = vmatpush.bf16.msra.mxu0 %v5311_v27 }
 0x3b1   :  { %1276 = vmatpush.bf16.msra.mxu1 %v5315_v33  ;;  %1302 = vmatpush.bf16.msra.mxu3 %v5320_v45 }
 0x3b4   :  { %1290 = vmatpush.bf16.msra.mxu2 %v5329_v52  ;;  %1264 = vmatpush.bf16.msra.mxu0 %v5323_v46 }
 0x3b5   :  { %1277 = vmatpush.bf16.msra.mxu1 %v5327_v49  ;;  %1303 = vmatpush.bf16.msra.mxu3 %v5332_v53 }
 0x413   :  { %v1018_v17 = vpop.f32.mrf.mxu0  ;;  %v1031_v24 = vpop.f32.mrf.mxu1 }
 0x414   :  { %v1019_v28 = vadd.f32 %v1018_v17, %v1001_v11  ;;  %v1032_v31 = vadd.f32 %v1031_v24, %v1002_v16 }
 0x416   :  { %v4246_v32 = vmul.f32 -1.442695, %v1019_v28  ;;  %v4247_v38 = vmul.f32 -1.442695, %v1032_v31  ;;  %v1126_v28 = vrot.slane %v5411_v5, 6 }
 0x417   :  { %v4386_v31 = vld [vmem:[#allocation5 + $0x1e8] sm:$0xf] }
 0x418   :  { %4762 = vpow2.f32 %v4246_v32  ;;  %v4640_v32 = vld [vmem:[#allocation5 + $0x1f4] sm:$0xf0] }
 0x419   :  { %4764 = vpow2.f32 %v4247_v38 }
 0x41a   :  { %v1044_v42 = vpop.f32.mrf.mxu2  ;;  %v1057_v43 = vpop.f32.mrf.mxu3 }
 0x41b   :  { %v1045_v50 = vadd.f32 %v1044_v42, %v1003_v39  ;;  %v1020_v51 = vpop.f32.mrf.mxu0  ;;  %v1033_v54 = vpop.f32.mrf.mxu1  ;;  %v1058_v33 = vadd.f32 %v1057_v43, %v1004_v18  ;;  %v5626_v42 = vor.u32 %v4640_v32, %v4386_v31  ;;  %v2742_v18 = vld [vmem:[#allocation2 + $0x20] sm:$0xff] }
 0x41d   :  { %v4248_v55 = vmul.f32 -1.442695, %v1045_v50 }
 0x41e   :  { %v4763_v62 = vpop.eup %4762 }
 0x41f   :  { %v4765_v63 = vpop.eup %4764  ;;  %v1070_v2 = vadd.f32 1.0, %v4763_v62  ;;  %4766 = vpow2.f32 %v4248_v55  ;;  %v4370_v55 = vld [vmem:[#allocation5 + $0x1c8] sm:$0xf]  ;;  %v4636_v62 = vld [vmem:[#allocation5 + $0x1d4] sm:$0xf0] }
 0x420   :  { %v1071_v3 = vadd.f32 1.0, %v4765_v63  ;;  %v4354_v63 = vld [vmem:[#allocation5 + $0x1a8] sm:$0xf] }
 0x421   :  { %4768 = vrcp.f32 %v1070_v2  ;;  %v1084_v53 = vand.u32 2147483648, %v1070_v2  ;;  %v1082_v14 = vand.u32 2147483647, %v1070_v2  ;;  %vm1078_vm8 = vweird.f32 %v1070_v2 }
 0x422   :  { %4770 = vrcp.f32 %v1071_v3  ;;  %v1046_v10 = vpop.f32.mrf.mxu2  ;;  %v1059_v12 = vpop.f32.mrf.mxu3  ;;  %v1099_v29 = vand.u32 2147483648, %v1071_v3  ;;  %v1097_v8 = vand.u32 2147483647, %v1071_v3  ;;  %vm1093_vm9 = vweird.f32 %v1071_v3 }
 0x423   :  { %v1085_v23 = vor.u32 1.1754944e-38, %v1084_v53  ;;  %vm1083_vm12 = vcmp.eq.f32.partialorder %v1082_v14, 8.507059e+37  ;;  %v1408_v10 = vld.sshfl [vmem:[#allocation1] sm:$0xff pattern:$0x75316420] }
 0x424   :  { %v1100_v25 = vor.u32 1.1754944e-38, %v1099_v29  ;;  %vm1098_vm13 = vcmp.eq.f32.partialorder %v1097_v8, 8.507059e+37  ;;  %v1409_v12 = vld.sshfl [vmem:[#allocation1 + $0x8] sm:$0xff pattern:$0x75316420] }
 0x425   :  { %v4767_v15 = vpop.eup %4766  ;;  %2757 = vst [vmem:[#allocation1] ss:$2 sm:$0xff] %v2742_v18  ;;  %v4274_v18 = vld [vmem:[#allocation5 + $0x108] sm:$0xf] }
 0x426   :  { %v1072_v26 = vadd.f32 1.0, %v4767_v15  ;;  %v1127_v15 = vrot.slane %v5415_v19, 6 }
 0x427   :  { %v4769_v27 = vpop.eup %4768 }
 0x428   :  { %v4771_v34 = vpop.eup %4770  ;;  %v1074_v45 = vmul.f32 %v4769_v27, %v1070_v2  ;;  %4772 = vrcp.f32 %v1072_v26  ;;  %vm1079_vm6 = vweird.f32 %v4769_v27  ;;  %v1114_v41 = vand.u32 2147483648, %v1072_v26  ;;  %v4632_v2 = vld [vmem:[#allocation5 + $0x1b4] sm:$0xf0] }
 0x429   :  { %v1089_v46 = vmul.f32 %v4771_v34, %v1071_v3  ;;  %4774 = vtanh.f32 %v1058_v33  ;;  %vm1094_vm7 = vweird.f32 %v4771_v34  ;;  %vm1080_vm10 = vmor %vm1078_vm8, %vm1079_vm6  ;;  %vm1108_vm15 = vweird.f32 %v1072_v26 }
 0x42a   :  { %v1075_v49 = vsub.f32 1.0, %v1074_v45  ;;  %vm1095_vm11 = vmor %vm1093_vm9, %vm1094_vm7  ;;  %v1112_v6 = vand.u32 2147483647, %v1072_v26  ;;  %v1115_v9 = vor.u32 1.1754944e-38, %v1114_v41  ;;  %v5629_v3 = vor.u32 %v4636_v62, %v4370_v55 }
 0x42b   :  { %v1090_v52 = vsub.f32 1.0, %v1089_v46  ;;  %v5635_v33 = vor.u32 %v4632_v2, %v4354_v63  ;;  %v1411_v62 = vld.sshfl [vmem:[#allocation1 + $0x18] sm:$0xff pattern:$0x75316420]  ;;  %v2743_v63 = vld [vmem:[#allocation2 + $0x28] sm:$0xff] }
 0x42c   :  { %v1076_v20 = vmul.f32 %v4769_v27, %v1075_v49  ;;  %vm1113_vm3 = vcmp.eq.f32.partialorder %v1112_v6, 8.507059e+37  ;;  %v4338_v49 = vld [vmem:[#allocation5 + $0x188] sm:$0xf] }
 0x42d   :  { %v1091_v36 = vmul.f32 %v4771_v34, %v1090_v52  ;;  %v4628_v52 = vld [vmem:[#allocation5 + $0x194] sm:$0xf0] }
 0x42e   :  { %v4773_v4 = vpop.eup %4772  ;;  %v1077_v21 = vadd.f32 %v4769_v27, %v1076_v20  ;;  %v5638_v29 = vor.u32 %v4628_v52, %v4338_v49 }
 0x42f   :  { %v1092_v13 = vadd.f32 %v4771_v34, %v1091_v36  ;;  %v1104_v22 = vmul.f32 %v4773_v4, %v1072_v26  ;;  %v4775_v58 = vpop.eup %4774  ;;  %vm1109_vm14 = vweird.f32 %v4773_v4 }
 0x430   :  { %v1081_v37 = vsel %vm1080_vm10, %v4769_v27, %v1077_v21  ;;  %vm1110_vm2 = vmor %vm1108_vm15, %vm1109_vm14 }
 0x431   :  { %v1105_v60 = vsub.f32 1.0, %v1104_v22  ;;  %v1086_v48 = vsel %vm1083_vm12, %v1085_v23, %v1081_v37  ;;  %v1096_v0 = vsel %vm1095_vm11, %v4771_v34, %v1092_v13  ;;  %v1410_v13 = vld.sshfl [vmem:[#allocation1 + $0x10] sm:$0xff pattern:$0x75316420]  ;;  %v4322_v22 = vld [vmem:[#allocation5 + $0x168] sm:$0xf] }
 0x432   :  { %v1101_v35 = vsel %vm1098_vm13, %v1100_v25, %v1096_v0  ;;  %v1120_v59 = vmul.f32 %v4775_v58, %v1086_v48  ;;  %v4624_v23 = vld [vmem:[#allocation5 + $0x174] sm:$0xf0]  ;;  %v1128_v37 = vrot.slane %v5418_v47, 6  ;;  %2759 = vst [vmem:[#allocation1 + $0x10] ss:$2 sm:$0xff] %v2743_v63  ;;  %v1388_v63 = vld [vmem:[%s6498_s1] sm:$0xff] }
 0x433   :  { %v1119_v30 = vmul.f32 %v1101_v35, %v5581_v40  ;;  %v1106_v57 = vmul.f32 %v4773_v4, %v1105_v60  ;;  %v1125_v40 = vrot.slane %v5409_v1, 6  ;;  %v5643_v58 = vor.u32 %v4624_v23, %v4322_v22  ;;  %v4637_v22 = vld [vmem:[#allocation5 + $0x1e4] sm:$0xf]  ;;  %v4380_v23 = vld [vmem:[#allocation5 + $0x1f0] sm:$0xf0] }
 0x435   :  { %v5621_v61 = vadd.f32 %v1120_v59, %v1119_v30  ;;  %v1107_v44 = vadd.f32 %v4773_v4, %v1106_v57  ;;  %v4306_v30 = vld [vmem:[#allocation5 + $0x148] sm:$0xf]  ;;  %v4620_v57 = vld [vmem:[#allocation5 + $0x154] sm:$0xf0] }
 0x436   :  { %v5649_v6 = vor.u32 %v4620_v57, %v4306_v30  ;;  %v4633_v30 = vld [vmem:[#allocation5 + $0x1c4] sm:$0xf] }
 0x437   :  { %4776 = vtanh.f32 %v5621_v61  ;;  %v1111_v7 = vsel %vm1110_vm2, %v4773_v4, %v1107_v44 }
 0x438   :  { %v1116_v16 = vsel %vm1113_vm3, %v1115_v9, %v1111_v7 }
 0x43d   :  { %v4777_v11 = vpop.eup %4776 }
 0x43e   :  { %v1123_v17 = vmul.f32 %v4777_v11, %v1116_v16 }
 0x440   :  { %v1124_v24 = vpack.c.bf16 %v1123_v17, %v1123_v17 }
 0x442   :  { %1141 = vmatmul.bf16.vlgmr.msrb.gmra.mxu0 %v1124_v24  ;;  %1154 = vmatmul.bf16.vlgmr.msrb.gmra.mxu1 %v1124_v24 }
 0x443   :  { %1167 = vmatmul.bf16.vlgmr.msrb.gmra.mxu2 %v1124_v24  ;;  %1180 = vmatmul.bf16.vlgmr.msrb.gmra.mxu3 %v1124_v24  ;;  %v4290_v24 = vld [vmem:[#allocation5 + $0x128] sm:$0xf] }
 0x444   :  { %1722 = vmatpush.bf16.msrb.mxu2 %v5626_v42  ;;  %4256 = vmatpush.msk.msrb.mxu0 %vm104_vm0, %v1408_v10 }
 0x445   :  { %4258 = vmatpush.msk.msrb.mxu1 %vm104_vm0, %v1409_v12  ;;  %4260 = vmatpush.msk.msrb.mxu3 %vm104_vm0, %v1410_v13  ;;  %v4639_v13 = vld [vmem:[#allocation5 + $0x1ec] sm:$0xf0] }
 0x448   :  { %1723 = vmatpush.bf16.msrb.mxu2 %v5629_v3 }
 0x44c   :  { %1724 = vmatpush.bf16.msrb.mxu2 %v5635_v33 }
 0x450   :  { %1725 = vmatpush.bf16.msrb.mxu2 %v5638_v29 }
 0x454   :  { %1726 = vmatpush.bf16.msrb.mxu2 %v5643_v58 }
 0x458   :  { %1727 = vmatpush.bf16.msrb.mxu2 %v5649_v6 }
 0x4bf   :  { %v1142_v38 = vpop.f32.mrf.mxu0  ;;  %v1155_v39 = vpop.f32.mrf.mxu1 }
 0x4c0   :  { %v1143_v43 = vadd.f32 %v1142_v38, %v1125_v40  ;;  %v1156_v50 = vadd.f32 %v1155_v39, %v1126_v28  ;;  %v4616_v40 = vld [vmem:[#allocation5 + $0x134] sm:$0xf0] }
 0x4c1   :  { %v5652_v32 = vor.u32 %v4616_v40, %v4290_v24  ;;  %v4330_v24 = vld [vmem:[#allocation5 + $0x180] sm:$0xf]  ;;  %v4627_v40 = vld [vmem:[#allocation5 + $0x18c] sm:$0xf0] }
 0x4c2   :  { %v4249_v51 = vmul.f32 -1.442695, %v1143_v43  ;;  %v4250_v54 = vmul.f32 -1.442695, %v1156_v50 }
 0x4c3   :  { %1728 = vmatpush.bf16.msrb.mxu2 %v5652_v32 }
 0x4c4   :  { %4778 = vpow2.f32 %v4249_v51 }
 0x4c5   :  { %4780 = vpow2.f32 %v4250_v54 }
 0x4c6   :  { %v1168_v26 = vpop.f32.mrf.mxu2  ;;  %v1181_v27 = vpop.f32.mrf.mxu3 }
 0x4c7   :  { %v1169_v34 = vadd.f32 %v1168_v26, %v1127_v15  ;;  %v1144_v45 = vpop.f32.mrf.mxu0  ;;  %v1157_v46 = vpop.f32.mrf.mxu1  ;;  %v1182_v0 = vadd.f32 %v1181_v27, %v1128_v37 }
 0x4c9   :  { %v4251_v53 = vmul.f32 -1.442695, %v1169_v34  ;;  %v4612_v34 = vld [vmem:[#allocation5 + $0x114] sm:$0xf0] }
 0x4ca   :  { %v4779_v20 = vpop.eup %4778  ;;  %v5657_v49 = vor.u32 %v4612_v34, %v4274_v18  ;;  %v4619_v18 = vld [vmem:[#allocation5 + $0x14c] sm:$0xf0]  ;;  %v4634_v34 = vld [vmem:[#allocation5 + $0x1cc] sm:$0xf] }
 0x4cb   :  { %v4781_v14 = vpop.eup %4780  ;;  %v1194_v36 = vadd.f32 1.0, %v4779_v20  ;;  %4782 = vpow2.f32 %v4251_v53 }
 0x4cc   :  { %v1195_v8 = vadd.f32 1.0, %v4781_v14  ;;  %1729 = vmatpush.bf16.msrb.mxu2 %v5657_v49 }
 0x4cd   :  { %4784 = vrcp.f32 %v1194_v36  ;;  %v1206_v9 = vand.u32 2147483647, %v1194_v36  ;;  %v1208_v11 = vand.u32 2147483648, %v1194_v36  ;;  %vm1202_vm6 = vweird.f32 %v1194_v36 }
 0x4ce   :  { %4786 = vrcp.f32 %v1195_v8  ;;  %v1170_v4 = vpop.f32.mrf.mxu2  ;;  %v1183_v21 = vpop.f32.mrf.mxu3  ;;  %v1223_v16 = vand.u32 2147483648, %v1195_v8  ;;  %v1221_v31 = vand.u32 2147483647, %v1195_v8  ;;  %vm1217_vm7 = vweird.f32 %v1195_v8 }
 0x4cf   :  { %v1209_v50 = vor.u32 1.1754944e-38, %v1208_v11  ;;  %vm1207_vm10 = vcmp.eq.f32.partialorder %v1206_v9, 8.507059e+37  ;;  %v4629_v9 = vld [vmem:[#allocation5 + $0x1a4] sm:$0xf]  ;;  %v4348_v11 = vld [vmem:[#allocation5 + $0x1b0] sm:$0xf0] }
 0x4d0   :  { %v1224_v54 = vor.u32 1.1754944e-38, %v1223_v16  ;;  %vm1222_vm11 = vcmp.eq.f32.partialorder %v1221_v31, 8.507059e+37  ;;  %v4332_v31 = vld [vmem:[#allocation5 + $0x190] sm:$0xf0] }
 0x4d1   :  { %v4783_v25 = vpop.eup %4782 }
 0x4d2   :  { %v5645_v60 = vadd.f32 1.0, %v4783_v25 }
 0x4d3   :  { %v4785_v48 = vpop.eup %4784 }
 0x4d4   :  { %v4787_v35 = vpop.eup %4786  ;;  %v1198_v59 = vmul.f32 %v4785_v48, %v1194_v36  ;;  %4788 = vrcp.f32 %v5645_v60  ;;  %vm1203_vm4 = vweird.f32 %v4785_v48  ;;  %v1238_v20 = vand.u32 2147483648, %v5645_v60 }
 0x4d5   :  { %v1213_v44 = vmul.f32 %v4787_v35, %v1195_v8  ;;  %4790 = vtanh.f32 %v1182_v0  ;;  %vm1218_vm5 = vweird.f32 %v4787_v35  ;;  %vm1204_vm8 = vmor %vm1202_vm6, %vm1203_vm4  ;;  %vm1232_vm13 = vweird.f32 %v5645_v60  ;;  %v4378_v8 = vld [vmem:[#allocation5 + $0x1e0] sm:$0xf] }
 0x4d6   :  { %v1199_v41 = vsub.f32 1.0, %v1198_v59  ;;  %vm1219_vm9 = vmor %vm1217_vm7, %vm1218_vm5  ;;  %v1236_v14 = vand.u32 2147483647, %v5645_v60  ;;  %v5668_v0 = vor.u32 %v4637_v22, %v4380_v23  ;;  %v4635_v59 = vld [vmem:[#allocation5 + $0x1cc] sm:$0xf0] }
 0x4d7   :  { %v1214_v7 = vsub.f32 1.0, %v1213_v44  ;;  %v4266_v23 = vld [vmem:[#allocation5 + $0x100] sm:$0xf] }
 0x4d8   :  { %v1200_v17 = vmul.f32 %v4785_v48, %v1199_v41  ;;  %vm1237_vm15 = vcmp.eq.f32.partialorder %v1236_v14, 8.507059e+37  ;;  %v4346_v41 = vld [vmem:[#allocation5 + $0x1a0] sm:$0xf] }
 0x4d9   :  { %v1215_v28 = vmul.f32 %v4787_v35, %v1214_v7  ;;  %v4631_v7 = vld [vmem:[#allocation5 + $0x1ac] sm:$0xf0] }
 0x4da   :  { %v4789_v38 = vpop.eup %4788  ;;  %v1201_v39 = vadd.f32 %v4785_v48, %v1200_v17  ;;  %v5680_v16 = vor.u32 %v4631_v7, %v4346_v41  ;;  %v5682_v17 = vor.u32 %v4629_v9, %v4348_v11  ;;  %v4622_v11 = vld [vmem:[#allocation5 + $0x16c] sm:$0xf] }
 0x4db   :  { %v1228_v43 = vmul.f32 %v4789_v38, %v5645_v60  ;;  %v1216_v51 = vadd.f32 %v4787_v35, %v1215_v28  ;;  %v4791_v2 = vpop.eup %4790  ;;  %vm1233_vm12 = vweird.f32 %v4789_v38  ;;  %v4364_v60 = vld [vmem:[#allocation5 + $0x1d0] sm:$0xf0]  ;;  %v4625_v28 = vld [vmem:[#allocation5 + $0x184] sm:$0xf] }
 0x4dc   :  { %v1205_v55 = vsel %vm1204_vm8, %v4785_v48, %v1201_v39  ;;  %vm1234_vm14 = vmor %vm1232_vm13, %vm1233_vm12  ;;  %v5666_v48 = vor.u32 %v4639_v13, %v4378_v8  ;;  %v5674_v44 = vor.u32 %v4633_v30, %v4364_v60  ;;  %v5689_v39 = vor.u32 %v4625_v28, %v4332_v31  ;;  %v4284_v8 = vld [vmem:[#allocation5 + $0x130] sm:$0xf0]  ;;  %v4626_v30 = vld [vmem:[#allocation5 + $0x18c] sm:$0xf] }
 0x4dd   :  { %v1229_v10 = vsub.f32 1.0, %v1228_v43  ;;  %v1210_v12 = vsel %vm1207_vm10, %v1209_v50, %v1205_v55  ;;  %v1220_v15 = vsel %vm1219_vm9, %v4787_v35, %v1216_v51  ;;  %v4362_v35 = vld [vmem:[#allocation5 + $0x1c0] sm:$0xf]  ;;  %v4623_v50 = vld [vmem:[#allocation5 + $0x16c] sm:$0xf0] }
 0x4de   :  { %v1225_v26 = vsel %vm1222_vm11, %v1224_v54, %v1220_v15  ;;  %v1244_v27 = vmul.f32 %v4791_v2, %v1210_v12  ;;  %v5672_v57 = vor.u32 %v4635_v59, %v4362_v35  ;;  %v4314_v43 = vld [vmem:[#allocation5 + $0x160] sm:$0xf]  ;;  %v4621_v51 = vld [vmem:[#allocation5 + $0x164] sm:$0xf]  ;;  %v4316_v54 = vld [vmem:[#allocation5 + $0x170] sm:$0xf0] }
 0x4df   :  { %v1243_v45 = vmul.f32 %v1225_v26, %v5621_v61  ;;  %v1230_v46 = vmul.f32 %v4789_v38, %v1229_v10  ;;  %v1239_v61 = vor.u32 1.1754944e-38, %v1238_v20  ;;  %v4638_v55 = vld [vmem:[#allocation5 + $0x1ec] sm:$0xf]  ;;  %v5697_v2 = vor.u32 %v4623_v50, %v4314_v43  ;;  %v4298_v12 = vld [vmem:[#allocation5 + $0x140] sm:$0xf] }
 0x4e0   :  { %v5699_v10 = vor.u32 %v4621_v51, %v4316_v54  ;;  %v4617_v26 = vld [vmem:[#allocation5 + $0x144] sm:$0xf]  ;;  %v4282_v20 = vld [vmem:[#allocation5 + $0x120] sm:$0xf]  ;;  %v4268_v59 = vld [vmem:[#allocation5 + $0x110] sm:$0xf0] }
 0x4e1   :  { %v5659_v52 = vadd.f32 %v1244_v27, %v1243_v45  ;;  %v1231_v53 = vadd.f32 %v4789_v38, %v1230_v46  ;;  %v4300_v27 = vld [vmem:[#allocation5 + $0x150] sm:$0xf0]  ;;  %v4372_v45 = vld [vmem:[#allocation5 + $0x1d8] sm:$0xf0]  ;;  %v5710_v46 = vor.u32 %v4619_v18, %v4298_v12  ;;  %v4609_v35 = vld [vmem:[#allocation5 + $0x104] sm:$0xf] }
 0x4e2   :  { %v5715_v14 = vor.u32 %v4634_v34, %v4372_v45  ;;  %v4340_v60 = vld [vmem:[#allocation5 + $0x198] sm:$0xf0]  ;;  %v5733_v7 = vor.u32 %v4609_v35, %v4268_v59  ;;  %v4618_v28 = vld [vmem:[#allocation5 + $0x14c] sm:$0xf]  ;;  %v1249_v12 = vrot.slane %v5409_v1, 7  ;;  %v1250_v18 = vrot.slane %v5411_v5, 7 }
 0x4e3   :  { %4792 = vtanh.f32 %v5659_v52  ;;  %v1235_v36 = vsel %vm1234_vm14, %v4789_v38, %v1231_v53  ;;  %v5687_v38 = vor.u32 %v4627_v40, %v4330_v24  ;;  %v5712_v53 = vor.u32 %v4617_v26, %v4300_v27  ;;  %v4324_v24 = vld [vmem:[#allocation5 + $0x178] sm:$0xf0]  ;;  %v4614_v50 = vld [vmem:[#allocation5 + $0x12c] sm:$0xf] }
 0x4e4   :  { %v1240_v21 = vsel %vm1237_vm15, %v1239_v61, %v1235_v36  ;;  %v4615_v36 = vld [vmem:[#allocation5 + $0x12c] sm:$0xf0]  ;;  %v4613_v61 = vld [vmem:[#allocation5 + $0x124] sm:$0xf]  ;;  %v5736_v9 = vor.u32 %v4626_v30, %v4340_v60  ;;  %v5742_v40 = vor.u32 %v4622_v11, %v4324_v24  ;;  %v4308_v31 = vld [vmem:[#allocation5 + $0x158] sm:$0xf0] }
 0x4e5   :  { %v5720_v13 = vor.u32 %v4615_v36, %v4282_v20  ;;  %v5722_v22 = vor.u32 %v4613_v61, %v4284_v8  ;;  %v5751_v43 = vor.u32 %v4618_v28, %v4308_v31  ;;  %v4292_v51 = vld [vmem:[#allocation5 + $0x138] sm:$0xf0]  ;;  %v1251_v61 = vrot.slane %v5415_v19, 7  ;;  %v5821_v19 = vld [vmem:[%s6502_s5 + $0x4] sm:$0xf] }
 0x4e6   :  { %v5757_v54 = vor.u32 %v4614_v50, %v4292_v51  ;;  %v1252_v8 = vrot.slane %v5418_v47, 7  ;;  %v1397_v51 = vperm.slane %v5821_v19, 2 }
 0x4e9   :  { %v4793_v4 = vpop.eup %4792 }
 0x4ea   :  { %v1247_v25 = vmul.f32 %v4793_v4, %v1240_v21  ;;  %v4630_v4 = vld [vmem:[#allocation5 + $0x1ac] sm:$0xf]  ;;  %v4356_v21 = vld [vmem:[#allocation5 + $0x1b8] sm:$0xf0] }
 0x4ec   :  { %v1248_v37 = vpack.c.bf16 %v1247_v25, %v1247_v25  ;;  %v5725_v25 = vor.u32 %v4630_v4, %v4356_v21 }
 0x4ee   :  { %1265 = vmatmul.bf16.vlgmr.msra.gmra.mxu0 %v1248_v37  ;;  %1278 = vmatmul.bf16.vlgmr.msra.gmra.mxu1 %v1248_v37 }
 0x4ef   :  { %1291 = vmatmul.bf16.vlgmr.msra.gmra.mxu2 %v1248_v37  ;;  %1304 = vmatmul.bf16.vlgmr.msra.gmra.mxu3 %v1248_v37  ;;  %v4611_v37 = vld [vmem:[#allocation5 + $0x10c] sm:$0xf0] }
 0x4f0   :  { %1696 = vmatpush.bf16.msra.mxu0 %v5666_v48  ;;  %1709 = vmatpush.bf16.msra.mxu1 %v5668_v0  ;;  %v5731_v41 = vor.u32 %v4611_v37, %v4266_v23 }
 0x4f1   :  { %4262 = vmatpush.msk.msra.mxu3 %vm104_vm0, %v1411_v62  ;;  %1850 = vmatpush.bf16.msra.mxu2 %v5626_v42  ;;  %v4388_v62 = vld [vmem:[#allocation5 + $0x1f8] sm:$0xf0] }
 0x4f2   :  { %v5701_v15 = vor.u32 %v4638_v55, %v4388_v62  ;;  %v4610_v55 = vld [vmem:[#allocation5 + $0x10c] sm:$0xf]  ;;  %v4276_v62 = vld [vmem:[#allocation5 + $0x118] sm:$0xf0] }
 0x4f4   :  { %1697 = vmatpush.bf16.msra.mxu0 %v5672_v57  ;;  %1710 = vmatpush.bf16.msra.mxu1 %v5674_v44 }
 0x4f5   :  { %1851 = vmatpush.bf16.msra.mxu2 %v5629_v3 }
 0x4f8   :  { %1698 = vmatpush.bf16.msra.mxu0 %v5680_v16  ;;  %1711 = vmatpush.bf16.msra.mxu1 %v5682_v17 }
 0x4f9   :  { %1852 = vmatpush.bf16.msra.mxu2 %v5635_v33 }
 0x4fc   :  { %1699 = vmatpush.bf16.msra.mxu0 %v5687_v38  ;;  %1712 = vmatpush.bf16.msra.mxu1 %v5689_v39 }
 0x4fd   :  { %1853 = vmatpush.bf16.msra.mxu2 %v5638_v29 }
 0x4fe   :  { %4257 = vmatmul.msk.f32.vlgmr.msrb.gmra.mxu0 %vm100_vm1, %v1388_v63  ;;  %4259 = vmatmul.msk.f32.vlgmr.msrb.gmra.mxu1 %vm100_vm1, %v1388_v63 }
 0x4ff   :  { %4261 = vmatmul.msk.f32.vlgmr.msrb.gmra.mxu3 %vm100_vm1, %v1388_v63  ;;  %1730 = vmatmul.bf16.vlgmr.msrb.gmra.mxu2 %v6506_v56 }
 0x500   :  { %1700 = vmatpush.bf16.msra.mxu0 %v5697_v2  ;;  %1713 = vmatpush.bf16.msra.mxu1 %v5699_v10 }
 0x501   :  { %1735 = vmatpush.bf16.msrb.mxu3 %v5701_v15  ;;  %1854 = vmatpush.bf16.msra.mxu2 %v5643_v58 }
 0x504   :  { %1701 = vmatpush.bf16.msra.mxu0 %v5710_v46  ;;  %1714 = vmatpush.bf16.msra.mxu1 %v5712_v53 }
 0x505   :  { %1736 = vmatpush.bf16.msrb.mxu3 %v5715_v14  ;;  %1855 = vmatpush.bf16.msra.mxu2 %v5649_v6 }
 0x507   :  { %4263 = vmatmul.msk.f32.vlgmr.msra.gmra.mxu3 %vm100_vm1, %v1388_v63  ;;  %v5763_v63 = vor.u32 %v4610_v55, %v4276_v62 }
 0x508   :  { %1702 = vmatpush.bf16.msra.mxu0 %v5720_v13  ;;  %1715 = vmatpush.bf16.msra.mxu1 %v5722_v22 }
 0x509   :  { %1737 = vmatpush.bf16.msrb.mxu3 %v5725_v25  ;;  %1856 = vmatpush.bf16.msra.mxu2 %v5652_v32  ;;  %6512 = vst [vmem:[#allocation12_spill] sm:$0xff] %v5763_v63 }
 0x50c   :  { %1703 = vmatpush.bf16.msra.mxu0 %v5731_v41  ;;  %1716 = vmatpush.bf16.msra.mxu1 %v5733_v7 }
 0x50d   :  { %1738 = vmatpush.bf16.msrb.mxu3 %v5736_v9  ;;  %1857 = vmatpush.bf16.msra.mxu2 %v5657_v49 }
 0x50f   :  { %1704 = vmatmul.bf16.vlgmr.msra.gmra.mxu0 %v6506_v56  ;;  %1717 = vmatmul.bf16.vlgmr.msra.gmra.mxu1 %v6506_v56 }
 0x510   :  { %1824 = vmatpush.bf16.msrb.mxu0 %v5666_v48  ;;  %1837 = vmatpush.bf16.msrb.mxu1 %v5668_v0 }
 0x511   :  { %1974 = vmatpush.bf16.msrb.mxu2 %v5626_v42  ;;  %1739 = vmatpush.bf16.msrb.mxu3 %v5742_v40 }
 0x514   :  { %1825 = vmatpush.bf16.msrb.mxu0 %v5672_v57  ;;  %1838 = vmatpush.bf16.msrb.mxu1 %v5674_v44 }
 0x515   :  { %1975 = vmatpush.bf16.msrb.mxu2 %v5629_v3  ;;  %1740 = vmatpush.bf16.msrb.mxu3 %v5751_v43 }
 0x518   :  { %1826 = vmatpush.bf16.msrb.mxu0 %v5680_v16  ;;  %1839 = vmatpush.bf16.msrb.mxu1 %v5682_v17 }
 0x519   :  { %1976 = vmatpush.bf16.msrb.mxu2 %v5635_v33  ;;  %1741 = vmatpush.bf16.msrb.mxu3 %v5757_v54 }
 0x51c   :  { %1827 = vmatpush.bf16.msrb.mxu0 %v5687_v38  ;;  %1840 = vmatpush.bf16.msrb.mxu1 %v5689_v39 }
 0x51d   :  { %1977 = vmatpush.bf16.msrb.mxu2 %v5638_v29  ;;  %1742 = vmatpush.bf16.msrb.mxu3 %v5763_v63 }
 0x520   :  { %1828 = vmatpush.bf16.msrb.mxu0 %v5697_v2  ;;  %1841 = vmatpush.bf16.msrb.mxu1 %v5699_v10 }
 0x521   :  { %1863 = vmatpush.bf16.msra.mxu3 %v5701_v15  ;;  %1978 = vmatpush.bf16.msrb.mxu2 %v5643_v58 }
 0x522   :  { %1743 = vmatmul.bf16.vlgmr.msrb.gmra.mxu3 %v6506_v56 }
 0x524   :  { %1829 = vmatpush.bf16.msrb.mxu0 %v5710_v46  ;;  %1842 = vmatpush.bf16.msrb.mxu1 %v5712_v53 }
 0x525   :  { %1864 = vmatpush.bf16.msra.mxu3 %v5715_v14  ;;  %1979 = vmatpush.bf16.msrb.mxu2 %v5649_v6 }
 0x528   :  { %1830 = vmatpush.bf16.msrb.mxu0 %v5720_v13  ;;  %1843 = vmatpush.bf16.msrb.mxu1 %v5722_v22 }
 0x529   :  { %1865 = vmatpush.bf16.msra.mxu3 %v5725_v25  ;;  %1980 = vmatpush.bf16.msrb.mxu2 %v5652_v32 }
 0x52c   :  { %1831 = vmatpush.bf16.msrb.mxu0 %v5731_v41  ;;  %1844 = vmatpush.bf16.msrb.mxu1 %v5733_v7 }
 0x52d   :  { %1866 = vmatpush.bf16.msra.mxu3 %v5736_v9  ;;  %1981 = vmatpush.bf16.msrb.mxu2 %v5657_v49 }
 0x530   :  { %1948 = vmatpush.bf16.msra.mxu0 %v5666_v48  ;;  %1961 = vmatpush.bf16.msra.mxu1 %v5668_v0 }
 0x531   :  { %1867 = vmatpush.bf16.msra.mxu3 %v5742_v40 }
 0x534   :  { %1949 = vmatpush.bf16.msra.mxu0 %v5672_v57  ;;  %1962 = vmatpush.bf16.msra.mxu1 %v5674_v44 }
 0x535   :  { %1868 = vmatpush.bf16.msra.mxu3 %v5751_v43 }
 0x538   :  { %1950 = vmatpush.bf16.msra.mxu0 %v5680_v16  ;;  %1963 = vmatpush.bf16.msra.mxu1 %v5682_v17 }
 0x539   :  { %1869 = vmatpush.bf16.msra.mxu3 %v5757_v54 }
 0x53c   :  { %1951 = vmatpush.bf16.msra.mxu0 %v5687_v38  ;;  %1964 = vmatpush.bf16.msra.mxu1 %v5689_v39 }
 0x53d   :  { %1870 = vmatpush.bf16.msra.mxu3 %v5763_v63 }
 0x540   :  { %1952 = vmatpush.bf16.msra.mxu0 %v5697_v2  ;;  %1965 = vmatpush.bf16.msra.mxu1 %v5699_v10 }
 0x541   :  { %1987 = vmatpush.bf16.msrb.mxu3 %v5701_v15 }
 0x544   :  { %1953 = vmatpush.bf16.msra.mxu0 %v5710_v46  ;;  %1966 = vmatpush.bf16.msra.mxu1 %v5712_v53 }
 0x545   :  { %1988 = vmatpush.bf16.msrb.mxu3 %v5715_v14 }
 0x548   :  { %1954 = vmatpush.bf16.msra.mxu0 %v5720_v13  ;;  %1967 = vmatpush.bf16.msra.mxu1 %v5722_v22 }
 0x549   :  { %1989 = vmatpush.bf16.msrb.mxu3 %v5725_v25 }
 0x54c   :  { %1955 = vmatpush.bf16.msra.mxu0 %v5731_v41  ;;  %1968 = vmatpush.bf16.msra.mxu1 %v5733_v7 }
 0x54d   :  { %1990 = vmatpush.bf16.msrb.mxu3 %v5736_v9 }
 0x551   :  { %1991 = vmatpush.bf16.msrb.mxu3 %v5742_v40 }
 0x555   :  { %1992 = vmatpush.bf16.msrb.mxu3 %v5751_v43 }
 0x559   :  { %1993 = vmatpush.bf16.msrb.mxu3 %v5757_v54 }
 0x55d   :  { %1994 = vmatpush.bf16.msrb.mxu3 %v5763_v63 }
 0x56b   :  { %v1266_v26 = vpop.f32.mrf.mxu0  ;;  %v1279_v27 = vpop.f32.mrf.mxu1 }
 0x56c   :  { %v1267_v34 = vadd.f32 %v1266_v26, %v1249_v12  ;;  %v1280_v45 = vadd.f32 %v1279_v27, %v1250_v18 }
 0x56e   :  { %v4252_v20 = vmul.f32 -1.442695, %v1267_v34  ;;  %v4253_v36 = vmul.f32 -1.442695, %v1280_v45 }
 0x570   :  { %4794 = vpow2.f32 %v4252_v20 }
 0x571   :  { %4796 = vpow2.f32 %v4253_v36 }
 0x572   :  { %v1292_v4 = vpop.f32.mrf.mxu2  ;;  %v1305_v21 = vpop.f32.mrf.mxu3 }
 0x573   :  { %v1293_v23 = vadd.f32 %v1292_v4, %v1251_v61  ;;  %v1306_v37 = vadd.f32 %v1305_v21, %v1252_v8  ;;  %v1268_v35 = vpop.f32.mrf.mxu0  ;;  %v1281_v1 = vpop.f32.mrf.mxu1 }
 0x574   :  { %v1395_v1 = vperm.slane %v5821_v19, 0 }
 0x575   :  { %v4254_v59 = vmul.f32 -1.442695, %v1293_v23 }
 0x576   :  { %v4795_v5 = vpop.eup %4794 }
 0x577   :  { %v4797_v30 = vpop.eup %4796  ;;  %v1318_v60 = vadd.f32 1.0, %v4795_v5  ;;  %4798 = vpow2.f32 %v4254_v59 }
 0x578   :  { %v1319_v11 = vadd.f32 1.0, %v4797_v30  ;;  %v1396_v30 = vperm.slane %v5821_v19, 1 }
 0x579   :  { %4800 = vrcp.f32 %v1318_v60  ;;  %v1332_v36 = vand.u32 2147483648, %v1318_v60  ;;  %v1330_v21 = vand.u32 2147483647, %v1318_v60  ;;  %vm1326_vm4 = vweird.f32 %v1318_v60 }
 0x57a   :  { %4802 = vrcp.f32 %v1319_v11  ;;  %v1294_v24 = vpop.f32.mrf.mxu2  ;;  %v1307_v28 = vpop.f32.mrf.mxu3  ;;  %v1347_v8 = vand.u32 2147483648, %v1319_v11  ;;  %v1345_v35 = vand.u32 2147483647, %v1319_v11  ;;  %vm1341_vm5 = vweird.f32 %v1319_v11 }
 0x57b   :  { %v1440_v18 = vpop.f32.mrf.mxu0  ;;  %v1460_v26 = vpop.f32.mrf.mxu1  ;;  %v1333_v28 = vor.u32 1.1754944e-38, %v1332_v36  ;;  %vm1331_vm8 = vcmp.eq.f32.partialorder %v1330_v21, 8.507059e+37 }
 0x57c   :  { %vm1346_vm9 = vcmp.eq.f32.partialorder %v1345_v35, 8.507059e+37 }
 0x57d   :  { %v4799_v47 = vpop.eup %4798 }
 0x57e   :  { %v5823_v31 = vadd.f32 1.0, %v4799_v47 }
 0x57f   :  { %v4801_v50 = vpop.eup %4800 }
 0x580   :  { %v4803_v55 = vpop.eup %4802  ;;  %v1322_v62 = vmul.f32 %v4801_v50, %v1318_v60  ;;  %4804 = vrcp.f32 %v5823_v31  ;;  %vm1327_vm2 = vweird.f32 %v4801_v50  ;;  %vm1356_vm11 = vweird.f32 %v5823_v31 }
 0x581   :  { %v1337_v12 = vmul.f32 %v4803_v55, %v1319_v11  ;;  %4806 = vtanh.f32 %v1306_v37  ;;  %vm1342_vm3 = vweird.f32 %v4803_v55  ;;  %vm1328_vm6 = vmor %vm1326_vm4, %vm1327_vm2 }
 0x582   :  { %v1323_v27 = vsub.f32 1.0, %v1322_v62  ;;  %v1480_v34 = vpop.f32.mrf.mxu3  ;;  %v1731_v45 = vpop.f32.mrf.mxu2  ;;  %vm1343_vm7 = vmor %vm1341_vm5, %vm1342_vm3 }
 0x583   :  { %v1338_v20 = vsub.f32 1.0, %v1337_v12  ;;  %v5827_v61 = vadd.f32 %v1480_v34, %v1397_v51  ;;  %v1348_v51 = vor.u32 1.1754944e-38, %v1347_v8 }
 0x584   :  { %v1324_v4 = vmul.f32 %v4801_v50, %v1323_v27 }
 0x585   :  { %6513 = vst [vmem:[#allocation13_spill] sm:$0xff] %v5827_v61  ;;  %v1339_v23 = vmul.f32 %v4803_v55, %v1338_v20  ;;  %v1732_v24 = vadd.f32 %v1731_v45, %v5827_v61  ;;  %v5834_v45 = vadd.f32 %v1440_v18, %v1395_v1  ;;  %v5836_v61 = vadd.f32 %v1460_v26, %v1396_v30 }
 0x586   :  { %v4805_v59 = vpop.eup %4804  ;;  %v1325_v5 = vadd.f32 %v4801_v50, %v1324_v4  ;;  %v1360_v18 = vand.u32 2147483647, %v5823_v31 }
 0x587   :  { %v1352_v37 = vmul.f32 %v4805_v59, %v5823_v31  ;;  %v1340_v47 = vadd.f32 %v4803_v55, %v1339_v23  ;;  %v4807_v12 = vpop.eup %4806  ;;  %v4394_v56 = vmul.f32 -1.442695, %v1732_v24  ;;  %vm1357_vm10 = vweird.f32 %v4805_v59 }
 0x588   :  { %v1329_v62 = vsel %vm1328_vm6, %v4801_v50, %v1325_v5  ;;  %vm1358_vm12 = vmor %vm1356_vm11, %vm1357_vm10  ;;  %vm1361_vm13 = vcmp.eq.f32.partialorder %v1360_v18, 8.507059e+37 }
 0x589   :  { %v1353_v27 = vsub.f32 1.0, %v1352_v37  ;;  %v1334_v34 = vsel %vm1331_vm8, %v1333_v28, %v1329_v62  ;;  %v1344_v20 = vsel %vm1343_vm7, %v4803_v55, %v1340_v47  ;;  %v1362_v55 = vand.u32 2147483648, %v5823_v31 }
 0x58a   :  { %v1349_v60 = vsel %vm1346_vm9, %v1348_v51, %v1344_v20  ;;  %v1368_v4 = vmul.f32 %v4807_v12, %v1334_v34  ;;  %v1733_v63 = vpop.f32.mrf.mxu2  ;;  %4808 = vpow2.f32 %v4394_v56  ;;  %v1500_v34 = vpop.f32.mrf.mxu3  ;;  %v1398_v20 = vperm.slane %v5821_v19, 3 }
 0x58b   :  { %v1367_v11 = vmul.f32 %v1349_v60, %v5659_v52  ;;  %v1354_v36 = vmul.f32 %v4805_v59, %v1353_v27  ;;  %v1363_v26 = vor.u32 1.1754944e-38, %v1362_v55 }
 0x58c   :  { %v1705_v23 = vpop.f32.mrf.mxu0  ;;  %v1718_v8 = vpop.f32.mrf.mxu1 }
 0x58d   :  { %v1369_v50 = vadd.f32 %v1368_v4, %v1367_v11  ;;  %v1706_v21 = vadd.f32 %v1705_v23, %v5834_v45  ;;  %v1719_v5 = vadd.f32 %v1718_v8, %v5836_v61  ;;  %v1355_v52 = vadd.f32 %v4805_v59, %v1354_v36 }
 0x58e   :  { %v5846_v36 = vadd.f32 %v1500_v34, %v1398_v20 }
 0x58f   :  { %4810 = vtanh.f32 %v1369_v50  ;;  %v4392_v63 = vmul.f32 -1.442695, %v1706_v21  ;;  %v4393_v35 = vmul.f32 -1.442695, %v1719_v5  ;;  %v1359_v1 = vsel %vm1358_vm12, %v4805_v59, %v1355_v52 }
 0x590   :  { %v4809_v30 = vpop.eup %4808  ;;  %v1364_v56 = vsel %vm1361_vm13, %v1363_v26, %v1359_v1 }
 0x591   :  { %4812 = vpow2.f32 %v4392_v63  ;;  %v1759_v62 = vadd.f32 1.0, %v4809_v30 }
 0x592   :  { %4814 = vpow2.f32 %v4393_v35 }
 0x593   :  { %vm1795_vm9 = vweird.f32 %v1759_v62 }
 0x594   :  { %v1707_v24 = vpop.f32.mrf.mxu0  ;;  %v1720_v37 = vpop.f32.mrf.mxu1 }
 0x595   :  { %v4811_v28 = vpop.eup %4810 }
 0x596   :  { %v5843_v47 = vmul.f32 %v4811_v28, %v1364_v56 }
 0x597   :  { %v4813_v51 = vpop.eup %4812 }
 0x598   :  { %v1757_v12 = vadd.f32 1.0, %v4813_v51  ;;  %v4815_v27 = vpop.eup %4814 }
 0x599   :  { %v1758_v31 = vadd.f32 1.0, %v4815_v27 }
 0x59a   :  { %4816 = vrcp.f32 %v1757_v12  ;;  %v1771_v55 = vand.u32 2147483648, %v1757_v12  ;;  %v1769_v52 = vand.u32 2147483647, %v1757_v12  ;;  %vm1765_vm15 = vweird.f32 %v1757_v12 }
 0x59b   :  { %4818 = vrcp.f32 %v1759_v62  ;;  %v1786_v18 = vand.u32 2147483648, %v1758_v31  ;;  %v1784_v1 = vand.u32 2147483647, %v1758_v31  ;;  %vm1780_vm4 = vweird.f32 %v1758_v31 }
 0x59c   :  { %4820 = vrcp.f32 %v1758_v31  ;;  %v1772_v24 = vor.u32 1.1754944e-38, %v1771_v55  ;;  %vm1770_vm5 = vcmp.eq.f32.partialorder %v1769_v52, 8.507059e+37 }
 0x59d   :  { %v1787_v51 = vor.u32 1.1754944e-38, %v1786_v18  ;;  %vm1785_vm7 = vcmp.eq.f32.partialorder %v1784_v1, 8.507059e+37  ;;  %v1817_v18 = vrot.slane %v5836_v61, 1 }
 0x5a0   :  { %v4817_v59 = vpop.eup %4816 }
 0x5a1   :  { %v4819_v60 = vpop.eup %4818  ;;  %v1761_v4 = vmul.f32 %v4817_v59, %v1757_v12  ;;  %vm1766_vm14 = vweird.f32 %v4817_v59 }
 0x5a2   :  { %v4821_v11 = vpop.eup %4820  ;;  %v1791_v21 = vmul.f32 %v4819_v60, %v1759_v62  ;;  %vm1767_vm3 = vmor %vm1765_vm15, %vm1766_vm14  ;;  %vm1796_vm8 = vweird.f32 %v4819_v60 }
 0x5a3   :  { %v1762_v23 = vsub.f32 1.0, %v1761_v4  ;;  %v1776_v8 = vmul.f32 %v4821_v11, %v1758_v31  ;;  %vm1781_vm2 = vweird.f32 %v4821_v11  ;;  %v1801_v31 = vand.u32 2147483648, %v1759_v62  ;;  %vm1797_vm10 = vmor %vm1795_vm9, %vm1796_vm8 }
 0x5a4   :  { %v1792_v30 = vsub.f32 1.0, %v1791_v21  ;;  %vm1782_vm6 = vmor %vm1780_vm4, %vm1781_vm2 }
 0x5a5   :  { %v1744_v50 = vpop.f32.mrf.mxu3  ;;  %v1777_v63 = vsub.f32 1.0, %v1776_v8  ;;  %v1763_v35 = vmul.f32 %v4817_v59, %v1762_v23  ;;  %v1802_v55 = vor.u32 1.1754944e-38, %v1801_v31 }
 0x5a6   :  { %v1745_v5 = vadd.f32 %v1744_v50, %v5846_v36  ;;  %v1793_v4 = vmul.f32 %v4819_v60, %v1792_v30 }
 0x5a7   :  { %v1778_v19 = vmul.f32 %v4821_v11, %v1777_v63  ;;  %v1764_v26 = vadd.f32 %v4817_v59, %v1763_v35 }
 0x5a8   :  { %4822 = vtanh.f32 %v1745_v5  ;;  %v1794_v21 = vadd.f32 %v4819_v60, %v1793_v4 }
 0x5a9   :  { %v1768_v37 = vsel %vm1767_vm3, %v4817_v59, %v1764_v26  ;;  %v1779_v28 = vadd.f32 %v4821_v11, %v1778_v19  ;;  %v1799_v59 = vand.u32 2147483647, %v1759_v62  ;;  %v6514_v62 = vld [vmem:[#allocation12_spill] sm:$0xff] }
 0x5aa   :  { %v1773_v56 = vsel %vm1770_vm5, %v1772_v24, %v1768_v37  ;;  %v1798_v5 = vsel %vm1797_vm10, %v4819_v60, %v1794_v21  ;;  %v1816_v60 = vrot.slane %v5834_v45, 1 }
 0x5ab   :  { %v1783_v27 = vsel %vm1782_vm6, %v4821_v11, %v1779_v28  ;;  %vm1800_vm11 = vcmp.eq.f32.partialorder %v1799_v59, 8.507059e+37  ;;  %v6515_v28 = vld [vmem:[#allocation13_spill] sm:$0xff] }
 0x5ac   :  { %v1788_v12 = vsel %vm1785_vm7, %v1787_v51, %v1783_v27  ;;  %v1803_v63 = vsel %vm1800_vm11, %v1802_v55, %v1798_v5 }
 0x5ad   :  { %v1746_v34 = vpop.f32.mrf.mxu3  ;;  %v1806_v23 = vmul.f32 0.0, %v1788_v12 }
 0x5ae   :  { %v4823_v20 = vpop.eup %4822 }
 0x5af   :  { %v1807_v8 = vmul.f32 %v4823_v20, %v1773_v56  ;;  %v1818_v56 = vrot.slane %v6515_v28, 1 }
 0x5b1   :  { %v5849_v50 = vadd.f32 %v1807_v8, %v1806_v23 }
 0x5b3   :  { %4824 = vtanh.f32 %v5849_v50 }
 0x5b9   :  { %v4825_v11 = vpop.eup %4824 }
 0x5ba   :  { %v1810_v35 = vmul.f32 %v4825_v11, %v1803_v63  ;;  %v1819_v11 = vrot.slane %v5846_v36, 1 }
 0x5bc   :  { %v1811_v52 = vpack.c.bf16 %v1810_v35, %v1810_v35 }
 0x5be   :  { %1832 = vmatmul.bf16.vlgmr.msrb.gmra.mxu0 %v1811_v52  ;;  %1845 = vmatmul.bf16.vlgmr.msrb.gmra.mxu1 %v1811_v52 }
 0x5bf   :  { %1858 = vmatmul.bf16.vlgmr.msra.gmra.mxu2 %v1811_v52  ;;  %1871 = vmatmul.bf16.vlgmr.msra.gmra.mxu3 %v1811_v52 }
 0x5c0   :  { %2072 = vmatpush.bf16.msrb.mxu0 %v5666_v48  ;;  %2085 = vmatpush.bf16.msrb.mxu1 %v5668_v0 }
 0x5c1   :  { %2098 = vmatpush.bf16.msra.mxu2 %v5626_v42  ;;  %2111 = vmatpush.bf16.msra.mxu3 %v5701_v15 }
 0x5c4   :  { %2073 = vmatpush.bf16.msrb.mxu0 %v5672_v57  ;;  %2086 = vmatpush.bf16.msrb.mxu1 %v5674_v44 }
 0x5c5   :  { %2099 = vmatpush.bf16.msra.mxu2 %v5629_v3  ;;  %2112 = vmatpush.bf16.msra.mxu3 %v5715_v14 }
 0x5c8   :  { %2074 = vmatpush.bf16.msrb.mxu0 %v5680_v16  ;;  %2087 = vmatpush.bf16.msrb.mxu1 %v5682_v17 }
 0x5c9   :  { %2100 = vmatpush.bf16.msra.mxu2 %v5635_v33  ;;  %2113 = vmatpush.bf16.msra.mxu3 %v5725_v25 }
 0x5cc   :  { %2075 = vmatpush.bf16.msrb.mxu0 %v5687_v38  ;;  %2088 = vmatpush.bf16.msrb.mxu1 %v5689_v39 }
 0x5cd   :  { %2101 = vmatpush.bf16.msra.mxu2 %v5638_v29  ;;  %2114 = vmatpush.bf16.msra.mxu3 %v5736_v9 }
 0x5d0   :  { %2076 = vmatpush.bf16.msrb.mxu0 %v5697_v2  ;;  %2089 = vmatpush.bf16.msrb.mxu1 %v5699_v10 }
 0x5d1   :  { %2102 = vmatpush.bf16.msra.mxu2 %v5643_v58  ;;  %2115 = vmatpush.bf16.msra.mxu3 %v5742_v40 }
 0x5d4   :  { %2077 = vmatpush.bf16.msrb.mxu0 %v5710_v46  ;;  %2090 = vmatpush.bf16.msrb.mxu1 %v5712_v53 }
 0x5d5   :  { %2103 = vmatpush.bf16.msra.mxu2 %v5649_v6  ;;  %2116 = vmatpush.bf16.msra.mxu3 %v5751_v43 }
 0x5d8   :  { %2078 = vmatpush.bf16.msrb.mxu0 %v5720_v13  ;;  %2091 = vmatpush.bf16.msrb.mxu1 %v5722_v22 }
 0x5d9   :  { %2104 = vmatpush.bf16.msra.mxu2 %v5652_v32  ;;  %2117 = vmatpush.bf16.msra.mxu3 %v5757_v54 }
 0x5dc   :  { %2079 = vmatpush.bf16.msrb.mxu0 %v5731_v41  ;;  %2092 = vmatpush.bf16.msrb.mxu1 %v5733_v7 }
 0x5dd   :  { %2105 = vmatpush.bf16.msra.mxu2 %v5657_v49  ;;  %2118 = vmatpush.bf16.msra.mxu3 %v6514_v62 }
 0x63b   :  { %v1833_v19 = vpop.f32.mrf.mxu0  ;;  %v1846_v26 = vpop.f32.mrf.mxu1 }
 0x63c   :  { %v1834_v1 = vadd.f32 %v1833_v19, %v1816_v60  ;;  %v1847_v30 = vadd.f32 %v1846_v26, %v1817_v18 }
 0x63e   :  { %v4395_v24 = vmul.f32 -1.442695, %v1834_v1  ;;  %v4396_v37 = vmul.f32 -1.442695, %v1847_v30 }
 0x640   :  { %4826 = vpow2.f32 %v4395_v24 }
 0x641   :  { %4828 = vpow2.f32 %v4396_v37 }
 0x642   :  { %v1859_v51 = vpop.f32.mrf.mxu2  ;;  %v1872_v27 = vpop.f32.mrf.mxu3 }
 0x643   :  { %v1860_v34 = vadd.f32 %v1859_v51, %v1818_v56  ;;  %v1835_v20 = vpop.f32.mrf.mxu0  ;;  %v1848_v12 = vpop.f32.mrf.mxu1  ;;  %v1873_v52 = vadd.f32 %v1872_v27, %v1819_v11 }
 0x645   :  { %v4397_v4 = vmul.f32 -1.442695, %v1860_v34 }
 0x646   :  { %v4827_v23 = vpop.eup %4826 }
 0x647   :  { %v4829_v8 = vpop.eup %4828  ;;  %v1885_v21 = vadd.f32 1.0, %v4827_v23  ;;  %4830 = vpow2.f32 %v4397_v4 }
 0x648   :  { %v1886_v31 = vadd.f32 1.0, %v4829_v8 }
 0x649   :  { %4832 = vrcp.f32 %v1885_v21  ;;  %v1899_v30 = vand.u32 2147483648, %v1885_v21  ;;  %v1897_v56 = vand.u32 2147483647, %v1885_v21  ;;  %vm1893_vm14 = vweird.f32 %v1885_v21 }
 0x64a   :  { %4834 = vrcp.f32 %v1886_v31  ;;  %v1861_v59 = vpop.f32.mrf.mxu2  ;;  %v1874_v5 = vpop.f32.mrf.mxu3  ;;  %v1914_v24 = vand.u32 2147483648, %v1886_v31  ;;  %v1912_v34 = vand.u32 2147483647, %v1886_v31  ;;  %vm1908_vm15 = vweird.f32 %v1886_v31 }
 0x64b   :  { %v1900_v4 = vor.u32 1.1754944e-38, %v1899_v30  ;;  %vm1898_vm3 = vcmp.eq.f32.partialorder %v1897_v56, 8.507059e+37 }
 0x64c   :  { %v1915_v59 = vor.u32 1.1754944e-38, %v1914_v24  ;;  %vm1913_vm5 = vcmp.eq.f32.partialorder %v1912_v34, 8.507059e+37 }
 0x64d   :  { %v4831_v55 = vpop.eup %4830 }
 0x64e   :  { %v1887_v63 = vadd.f32 1.0, %v4831_v55 }
 0x64f   :  { %v4833_v35 = vpop.eup %4832 }
 0x650   :  { %v4835_v60 = vpop.eup %4834  ;;  %v1889_v18 = vmul.f32 %v4833_v35, %v1885_v21  ;;  %4836 = vrcp.f32 %v1887_v63  ;;  %vm1894_vm12 = vweird.f32 %v4833_v35  ;;  %vm1923_vm7 = vweird.f32 %v1887_v63 }
 0x651   :  { %v1904_v19 = vmul.f32 %v4835_v60, %v1886_v31  ;;  %4838 = vtanh.f32 %v1873_v52  ;;  %vm1909_vm13 = vweird.f32 %v4835_v60  ;;  %vm1895_vm2 = vmor %vm1893_vm14, %vm1894_vm12  ;;  %v1927_v30 = vand.u32 2147483647, %v1887_v63 }
 0x652   :  { %v1890_v26 = vsub.f32 1.0, %v1889_v18  ;;  %vm1910_vm4 = vmor %vm1908_vm15, %vm1909_vm13 }
 0x653   :  { %v1905_v1 = vsub.f32 1.0, %v1904_v19  ;;  %vm1928_vm9 = vcmp.eq.f32.partialorder %v1927_v30, 8.507059e+37 }
 0x654   :  { %v1891_v37 = vmul.f32 %v4833_v35, %v1890_v26 }
 0x655   :  { %v1906_v51 = vmul.f32 %v4835_v60, %v1905_v1 }
 0x656   :  { %v4837_v20 = vpop.eup %4836  ;;  %v1892_v12 = vadd.f32 %v4833_v35, %v1891_v37 }
 0x657   :  { %v1919_v27 = vmul.f32 %v4837_v20, %v1887_v63  ;;  %v1907_v23 = vadd.f32 %v4835_v60, %v1906_v51  ;;  %v4839_v5 = vpop.eup %4838  ;;  %vm1924_vm6 = vweird.f32 %v4837_v20 }
 0x658   :  { %v1896_v8 = vsel %vm1895_vm2, %v4833_v35, %v1892_v12  ;;  %v1929_v35 = vand.u32 2147483648, %v1887_v63  ;;  %vm1925_vm8 = vmor %vm1923_vm7, %vm1924_vm6  ;;  %v1941_v63 = vrot.slane %v5836_v61, 2 }
 0x659   :  { %v1920_v55 = vsub.f32 1.0, %v1919_v27  ;;  %v1901_v11 = vsel %vm1898_vm3, %v1900_v4, %v1896_v8  ;;  %v1911_v52 = vsel %vm1910_vm4, %v4835_v60, %v1907_v23 }
 0x65a   :  { %v1916_v18 = vsel %vm1913_vm5, %v1915_v59, %v1911_v52  ;;  %v1935_v19 = vmul.f32 %v4839_v5, %v1901_v11  ;;  %v1930_v37 = vor.u32 1.1754944e-38, %v1929_v35  ;;  %v1942_v59 = vrot.slane %v6515_v28, 2 }
 0x65b   :  { %v1934_v26 = vmul.f32 %v1916_v18, %v5849_v50  ;;  %v1921_v1 = vmul.f32 %v4837_v20, %v1920_v55  ;;  %v1940_v50 = vrot.slane %v5834_v45, 2 }
 0x65d   :  { %v5889_v21 = vadd.f32 %v1935_v19, %v1934_v26  ;;  %v1922_v31 = vadd.f32 %v4837_v20, %v1921_v1 }
 0x65f   :  { %4840 = vtanh.f32 %v5889_v21  ;;  %v1926_v24 = vsel %vm1925_vm8, %v4837_v20, %v1922_v31 }
 0x660   :  { %v1931_v56 = vsel %vm1928_vm9, %v1930_v37, %v1926_v24 }
 0x665   :  { %v4841_v60 = vpop.eup %4840 }
 0x666   :  { %v1938_v51 = vmul.f32 %v4841_v60, %v1931_v56  ;;  %v1943_v60 = vrot.slane %v5846_v36, 2 }
 0x668   :  { %v1939_v34 = vpack.c.bf16 %v1938_v51, %v1938_v51 }
 0x66a   :  { %1956 = vmatmul.bf16.vlgmr.msra.gmra.mxu0 %v1939_v34  ;;  %1969 = vmatmul.bf16.vlgmr.msra.gmra.mxu1 %v1939_v34 }
 0x66b   :  { %1982 = vmatmul.bf16.vlgmr.msrb.gmra.mxu2 %v1939_v34  ;;  %1995 = vmatmul.bf16.vlgmr.msrb.gmra.mxu3 %v1939_v34 }
 0x66c   :  { %2196 = vmatpush.bf16.msra.mxu0 %v5666_v48  ;;  %2209 = vmatpush.bf16.msra.mxu1 %v5668_v0 }
 0x66d   :  { %2222 = vmatpush.bf16.msrb.mxu2 %v5626_v42  ;;  %2235 = vmatpush.bf16.msrb.mxu3 %v5701_v15 }
 0x670   :  { %2197 = vmatpush.bf16.msra.mxu0 %v5672_v57  ;;  %2210 = vmatpush.bf16.msra.mxu1 %v5674_v44 }
 0x671   :  { %2223 = vmatpush.bf16.msrb.mxu2 %v5629_v3  ;;  %2236 = vmatpush.bf16.msrb.mxu3 %v5715_v14 }
 0x674   :  { %2198 = vmatpush.bf16.msra.mxu0 %v5680_v16  ;;  %2211 = vmatpush.bf16.msra.mxu1 %v5682_v17 }
 0x675   :  { %2224 = vmatpush.bf16.msrb.mxu2 %v5635_v33  ;;  %2237 = vmatpush.bf16.msrb.mxu3 %v5725_v25 }
 0x678   :  { %2199 = vmatpush.bf16.msra.mxu0 %v5687_v38  ;;  %2212 = vmatpush.bf16.msra.mxu1 %v5689_v39 }
 0x679   :  { %2225 = vmatpush.bf16.msrb.mxu2 %v5638_v29  ;;  %2238 = vmatpush.bf16.msrb.mxu3 %v5736_v9 }
 0x67c   :  { %2200 = vmatpush.bf16.msra.mxu0 %v5697_v2  ;;  %2213 = vmatpush.bf16.msra.mxu1 %v5699_v10 }
 0x67d   :  { %2226 = vmatpush.bf16.msrb.mxu2 %v5643_v58  ;;  %2239 = vmatpush.bf16.msrb.mxu3 %v5742_v40 }
 0x680   :  { %2201 = vmatpush.bf16.msra.mxu0 %v5710_v46  ;;  %2214 = vmatpush.bf16.msra.mxu1 %v5712_v53 }
 0x681   :  { %2227 = vmatpush.bf16.msrb.mxu2 %v5649_v6  ;;  %2240 = vmatpush.bf16.msrb.mxu3 %v5751_v43 }
 0x684   :  { %2202 = vmatpush.bf16.msra.mxu0 %v5720_v13  ;;  %2215 = vmatpush.bf16.msra.mxu1 %v5722_v22 }
 0x685   :  { %2228 = vmatpush.bf16.msrb.mxu2 %v5652_v32  ;;  %2241 = vmatpush.bf16.msrb.mxu3 %v5757_v54 }
 0x688   :  { %2203 = vmatpush.bf16.msra.mxu0 %v5731_v41  ;;  %2216 = vmatpush.bf16.msra.mxu1 %v5733_v7 }
 0x689   :  { %2229 = vmatpush.bf16.msrb.mxu2 %v5657_v49  ;;  %2242 = vmatpush.bf16.msrb.mxu3 %v6514_v62 }
 0x6e7   :  { %v1957_v20 = vpop.f32.mrf.mxu0  ;;  %v1970_v12 = vpop.f32.mrf.mxu1 }
 0x6e8   :  { %v1958_v27 = vadd.f32 %v1957_v20, %v1940_v50  ;;  %v1971_v4 = vadd.f32 %v1970_v12, %v1941_v63 }
 0x6ea   :  { %v4398_v23 = vmul.f32 -1.442695, %v1958_v27  ;;  %v4399_v8 = vmul.f32 -1.442695, %v1971_v4 }
 0x6ec   :  { %4842 = vpow2.f32 %v4398_v23 }
 0x6ed   :  { %4844 = vpow2.f32 %v4399_v8 }
 0x6ee   :  { %v1983_v5 = vpop.f32.mrf.mxu2  ;;  %v1996_v55 = vpop.f32.mrf.mxu3 }
 0x6ef   :  { %v1984_v11 = vadd.f32 %v1983_v5, %v1942_v59  ;;  %v1959_v52 = vpop.f32.mrf.mxu0  ;;  %v1972_v18 = vpop.f32.mrf.mxu1  ;;  %v1997_v34 = vadd.f32 %v1996_v55, %v1943_v60 }
 0x6f1   :  { %v4400_v19 = vmul.f32 -1.442695, %v1984_v11 }
 0x6f2   :  { %v4843_v26 = vpop.eup %4842 }
 0x6f3   :  { %v4845_v1 = vpop.eup %4844  ;;  %v2009_v31 = vadd.f32 1.0, %v4843_v26  ;;  %4846 = vpow2.f32 %v4400_v19 }
 0x6f4   :  { %v2010_v35 = vadd.f32 1.0, %v4845_v1 }
 0x6f5   :  { %4848 = vrcp.f32 %v2009_v31  ;;  %v2023_v4 = vand.u32 2147483648, %v2009_v31  ;;  %v2021_v59 = vand.u32 2147483647, %v2009_v31  ;;  %vm2017_vm12 = vweird.f32 %v2009_v31 }
 0x6f6   :  { %4850 = vrcp.f32 %v2010_v35  ;;  %v1985_v30 = vpop.f32.mrf.mxu2  ;;  %v1998_v24 = vpop.f32.mrf.mxu3  ;;  %v2038_v23 = vand.u32 2147483648, %v2010_v35  ;;  %v2036_v11 = vand.u32 2147483647, %v2010_v35  ;;  %vm2032_vm13 = vweird.f32 %v2010_v35 }
 0x6f7   :  { %v2024_v19 = vor.u32 1.1754944e-38, %v2023_v4  ;;  %vm2022_vm15 = vcmp.eq.f32.partialorder %v2021_v59, 8.507059e+37 }
 0x6f8   :  { %v2039_v30 = vor.u32 1.1754944e-38, %v2038_v23  ;;  %vm2037_vm3 = vcmp.eq.f32.partialorder %v2036_v11, 8.507059e+37 }
 0x6f9   :  { %v4847_v37 = vpop.eup %4846 }
 0x6fa   :  { %v2011_v56 = vadd.f32 1.0, %v4847_v37 }
 0x6fb   :  { %v4849_v51 = vpop.eup %4848 }
 0x6fc   :  { %v4851_v50 = vpop.eup %4850  ;;  %v2013_v63 = vmul.f32 %v4849_v51, %v2009_v31  ;;  %4852 = vrcp.f32 %v2011_v56  ;;  %vm2018_vm10 = vweird.f32 %v4849_v51  ;;  %v2053_v4 = vand.u32 2147483648, %v2011_v56 }
 0x6fd   :  { %v2028_v20 = vmul.f32 %v4851_v50, %v2010_v35  ;;  %4854 = vtanh.f32 %v1997_v34  ;;  %vm2033_vm11 = vweird.f32 %v4851_v50  ;;  %vm2019_vm14 = vmor %vm2017_vm12, %vm2018_vm10  ;;  %vm2047_vm5 = vweird.f32 %v2011_v56 }
 0x6fe   :  { %v2014_v12 = vsub.f32 1.0, %v2013_v63  ;;  %vm2034_vm2 = vmor %vm2032_vm13, %vm2033_vm11 }
 0x6ff   :  { %v2029_v27 = vsub.f32 1.0, %v2028_v20 }
 0x700   :  { %v2015_v8 = vmul.f32 %v4849_v51, %v2014_v12 }
 0x701   :  { %v2030_v5 = vmul.f32 %v4851_v50, %v2029_v27 }
 0x702   :  { %v4853_v52 = vpop.eup %4852  ;;  %v2016_v18 = vadd.f32 %v4849_v51, %v2015_v8  ;;  %v2054_v8 = vor.u32 1.1754944e-38, %v2053_v4 }
 0x703   :  { %v2043_v55 = vmul.f32 %v4853_v52, %v2011_v56  ;;  %v2031_v26 = vadd.f32 %v4851_v50, %v2030_v5  ;;  %v4855_v24 = vpop.eup %4854  ;;  %vm2048_vm4 = vweird.f32 %v4853_v52 }
 0x704   :  { %v2020_v1 = vsel %vm2019_vm14, %v4849_v51, %v2016_v18  ;;  %v2051_v51 = vand.u32 2147483647, %v2011_v56  ;;  %vm2049_vm6 = vmor %vm2047_vm5, %vm2048_vm4  ;;  %v2065_v56 = vrot.slane %v5836_v61, 3 }
 0x705   :  { %v2044_v37 = vsub.f32 1.0, %v2043_v55  ;;  %v2025_v60 = vsel %vm2022_vm15, %v2024_v19, %v2020_v1  ;;  %v2035_v34 = vsel %vm2034_vm2, %v4851_v50, %v2031_v26 }
 0x706   :  { %v2040_v63 = vsel %vm2037_vm3, %v2039_v30, %v2035_v34  ;;  %v2059_v20 = vmul.f32 %v4855_v24, %v2025_v60  ;;  %vm2052_vm7 = vcmp.eq.f32.partialorder %v2051_v51, 8.507059e+37  ;;  %v2066_v30 = vrot.slane %v6515_v28, 3 }
 0x707   :  { %v2045_v12 = vmul.f32 %v4853_v52, %v2044_v37  ;;  %v2058_v27 = vmul.f32 %v2040_v63, %v5889_v21  ;;  %v2064_v21 = vrot.slane %v5834_v45, 3 }
 0x709   :  { %v5929_v31 = vadd.f32 %v2059_v20, %v2058_v27  ;;  %v2046_v35 = vadd.f32 %v4853_v52, %v2045_v12 }
 0x70b   :  { %4856 = vtanh.f32 %v5929_v31  ;;  %v2050_v23 = vsel %vm2049_vm6, %v4853_v52, %v2046_v35 }
 0x70c   :  { %v2055_v59 = vsel %vm2052_vm7, %v2054_v8, %v2050_v23 }
 0x711   :  { %v4857_v50 = vpop.eup %4856 }
 0x712   :  { %v2062_v5 = vmul.f32 %v4857_v50, %v2055_v59  ;;  %v2067_v50 = vrot.slane %v5846_v36, 3 }
 0x714   :  { %v2063_v11 = vpack.c.bf16 %v2062_v5, %v2062_v5 }
 0x716   :  { %2080 = vmatmul.bf16.vlgmr.msrb.gmra.mxu0 %v2063_v11  ;;  %2093 = vmatmul.bf16.vlgmr.msrb.gmra.mxu1 %v2063_v11 }
 0x717   :  { %2106 = vmatmul.bf16.vlgmr.msra.gmra.mxu2 %v2063_v11  ;;  %2119 = vmatmul.bf16.vlgmr.msra.gmra.mxu3 %v2063_v11 }
 0x718   :  { %2320 = vmatpush.bf16.msrb.mxu0 %v5666_v48  ;;  %2333 = vmatpush.bf16.msrb.mxu1 %v5668_v0 }
 0x719   :  { %2346 = vmatpush.bf16.msra.mxu2 %v5626_v42  ;;  %2359 = vmatpush.bf16.msra.mxu3 %v5701_v15 }
 0x71c   :  { %2321 = vmatpush.bf16.msrb.mxu0 %v5672_v57  ;;  %2334 = vmatpush.bf16.msrb.mxu1 %v5674_v44 }
 0x71d   :  { %2347 = vmatpush.bf16.msra.mxu2 %v5629_v3  ;;  %2360 = vmatpush.bf16.msra.mxu3 %v5715_v14 }
 0x720   :  { %2322 = vmatpush.bf16.msrb.mxu0 %v5680_v16  ;;  %2335 = vmatpush.bf16.msrb.mxu1 %v5682_v17 }
 0x721   :  { %2348 = vmatpush.bf16.msra.mxu2 %v5635_v33  ;;  %2361 = vmatpush.bf16.msra.mxu3 %v5725_v25 }
 0x724   :  { %2323 = vmatpush.bf16.msrb.mxu0 %v5687_v38  ;;  %2336 = vmatpush.bf16.msrb.mxu1 %v5689_v39 }
 0x725   :  { %2349 = vmatpush.bf16.msra.mxu2 %v5638_v29  ;;  %2362 = vmatpush.bf16.msra.mxu3 %v5736_v9 }
 0x728   :  { %2324 = vmatpush.bf16.msrb.mxu0 %v5697_v2  ;;  %2337 = vmatpush.bf16.msrb.mxu1 %v5699_v10 }
 0x729   :  { %2350 = vmatpush.bf16.msra.mxu2 %v5643_v58  ;;  %2363 = vmatpush.bf16.msra.mxu3 %v5742_v40 }
 0x72c   :  { %2325 = vmatpush.bf16.msrb.mxu0 %v5710_v46  ;;  %2338 = vmatpush.bf16.msrb.mxu1 %v5712_v53 }
 0x72d   :  { %2351 = vmatpush.bf16.msra.mxu2 %v5649_v6  ;;  %2364 = vmatpush.bf16.msra.mxu3 %v5751_v43 }
 0x730   :  { %2326 = vmatpush.bf16.msrb.mxu0 %v5720_v13  ;;  %2339 = vmatpush.bf16.msrb.mxu1 %v5722_v22 }
 0x731   :  { %2352 = vmatpush.bf16.msra.mxu2 %v5652_v32  ;;  %2365 = vmatpush.bf16.msra.mxu3 %v5757_v54 }
 0x734   :  { %2327 = vmatpush.bf16.msrb.mxu0 %v5731_v41  ;;  %2340 = vmatpush.bf16.msrb.mxu1 %v5733_v7 }
 0x735   :  { %2353 = vmatpush.bf16.msra.mxu2 %v5657_v49  ;;  %2366 = vmatpush.bf16.msra.mxu3 %v6514_v62 }
 0x793   :  { %v2081_v52 = vpop.f32.mrf.mxu0  ;;  %v2094_v18 = vpop.f32.mrf.mxu1 }
 0x794   :  { %v2082_v55 = vadd.f32 %v2081_v52, %v2064_v21  ;;  %v2095_v19 = vadd.f32 %v2094_v18, %v2065_v56 }
 0x796   :  { %v4401_v26 = vmul.f32 -1.442695, %v2082_v55  ;;  %v4402_v1 = vmul.f32 -1.442695, %v2095_v19 }
 0x798   :  { %4858 = vpow2.f32 %v4401_v26 }
 0x799   :  { %4860 = vpow2.f32 %v4402_v1 }
 0x79a   :  { %v2107_v24 = vpop.f32.mrf.mxu2  ;;  %v2120_v37 = vpop.f32.mrf.mxu3 }
 0x79b   :  { %v2108_v60 = vadd.f32 %v2107_v24, %v2066_v30  ;;  %v2083_v34 = vpop.f32.mrf.mxu0  ;;  %v2096_v63 = vpop.f32.mrf.mxu1  ;;  %v2121_v11 = vadd.f32 %v2120_v37, %v2067_v50 }
 0x79d   :  { %v4403_v20 = vmul.f32 -1.442695, %v2108_v60 }
 0x79e   :  { %v4859_v12 = vpop.eup %4858 }
 0x79f   :  { %v4861_v27 = vpop.eup %4860  ;;  %v2133_v35 = vadd.f32 1.0, %v4859_v12  ;;  %4862 = vpow2.f32 %v4403_v20 }
 0x7a0   :  { %v2134_v4 = vadd.f32 1.0, %v4861_v27 }
 0x7a1   :  { %4864 = vrcp.f32 %v2133_v35  ;;  %v2147_v19 = vand.u32 2147483648, %v2133_v35  ;;  %v2145_v30 = vand.u32 2147483647, %v2133_v35  ;;  %vm2141_vm10 = vweird.f32 %v2133_v35 }
 0x7a2   :  { %4866 = vrcp.f32 %v2134_v4  ;;  %v2109_v51 = vpop.f32.mrf.mxu2  ;;  %v2122_v23 = vpop.f32.mrf.mxu3  ;;  %v2162_v26 = vand.u32 2147483648, %v2134_v4  ;;  %v2160_v60 = vand.u32 2147483647, %v2134_v4  ;;  %vm2156_vm11 = vweird.f32 %v2134_v4 }
 0x7a3   :  { %v2148_v20 = vor.u32 1.1754944e-38, %v2147_v19  ;;  %vm2146_vm13 = vcmp.eq.f32.partialorder %v2145_v30, 8.507059e+37 }
 0x7a4   :  { %v2163_v51 = vor.u32 1.1754944e-38, %v2162_v26  ;;  %vm2161_vm15 = vcmp.eq.f32.partialorder %v2160_v60, 8.507059e+37 }
 0x7a5   :  { %v4863_v8 = vpop.eup %4862 }
 0x7a6   :  { %v2135_v59 = vadd.f32 1.0, %v4863_v8 }
 0x7a7   :  { %v4865_v5 = vpop.eup %4864 }
 0x7a8   :  { %v4867_v21 = vpop.eup %4866  ;;  %v2137_v56 = vmul.f32 %v4865_v5, %v2133_v35  ;;  %4868 = vrcp.f32 %v2135_v59  ;;  %vm2142_vm8 = vweird.f32 %v4865_v5  ;;  %v2177_v19 = vand.u32 2147483648, %v2135_v59 }
 0x7a9   :  { %v2152_v52 = vmul.f32 %v4867_v21, %v2134_v4  ;;  %4870 = vtanh.f32 %v2121_v11  ;;  %vm2157_vm9 = vweird.f32 %v4867_v21  ;;  %vm2143_vm12 = vmor %vm2141_vm10, %vm2142_vm8  ;;  %vm2171_vm3 = vweird.f32 %v2135_v59 }
 0x7aa   :  { %v2138_v18 = vsub.f32 1.0, %v2137_v56  ;;  %vm2158_vm14 = vmor %vm2156_vm11, %vm2157_vm9 }
 0x7ab   :  { %v2153_v55 = vsub.f32 1.0, %v2152_v52 }
 0x7ac   :  { %v2139_v1 = vmul.f32 %v4865_v5, %v2138_v18 }
 0x7ad   :  { %v2154_v24 = vmul.f32 %v4867_v21, %v2153_v55 }
 0x7ae   :  { %v4869_v34 = vpop.eup %4868  ;;  %v2140_v63 = vadd.f32 %v4865_v5, %v2139_v1  ;;  %v2178_v1 = vor.u32 1.1754944e-38, %v2177_v19 }
 0x7af   :  { %v2167_v37 = vmul.f32 %v4869_v34, %v2135_v59  ;;  %v2155_v12 = vadd.f32 %v4867_v21, %v2154_v24  ;;  %v4871_v23 = vpop.eup %4870  ;;  %vm2172_vm2 = vweird.f32 %v4869_v34 }
 0x7b0   :  { %v2144_v27 = vsel %vm2143_vm12, %v4865_v5, %v2140_v63  ;;  %v2175_v5 = vand.u32 2147483647, %v2135_v59  ;;  %vm2173_vm4 = vmor %vm2171_vm3, %vm2172_vm2  ;;  %v2189_v59 = vrot.slane %v5836_v61, 4 }
 0x7b1   :  { %v2168_v8 = vsub.f32 1.0, %v2167_v37  ;;  %v2149_v50 = vsel %vm2146_vm13, %v2148_v20, %v2144_v27  ;;  %v2159_v11 = vsel %vm2158_vm14, %v4867_v21, %v2155_v12 }
 0x7b2   :  { %v2164_v56 = vsel %vm2161_vm15, %v2163_v51, %v2159_v11  ;;  %v2183_v52 = vmul.f32 %v4871_v23, %v2149_v50  ;;  %vm2176_vm5 = vcmp.eq.f32.partialorder %v2175_v5, 8.507059e+37  ;;  %v2190_v51 = vrot.slane %v6515_v28, 4 }
 0x7b3   :  { %v2169_v18 = vmul.f32 %v4869_v34, %v2168_v8  ;;  %v2182_v55 = vmul.f32 %v2164_v56, %v5929_v31  ;;  %v2188_v31 = vrot.slane %v5834_v45, 4 }
 0x7b5   :  { %v5969_v35 = vadd.f32 %v2183_v52, %v2182_v55  ;;  %v2170_v4 = vadd.f32 %v4869_v34, %v2169_v18 }
 0x7b7   :  { %4872 = vtanh.f32 %v5969_v35  ;;  %v2174_v26 = vsel %vm2173_vm4, %v4869_v34, %v2170_v4 }
 0x7b8   :  { %v2179_v30 = vsel %vm2176_vm5, %v2178_v1, %v2174_v26 }
 0x7bd   :  { %v4873_v21 = vpop.eup %4872 }
 0x7be   :  { %v2186_v24 = vmul.f32 %v4873_v21, %v2179_v30  ;;  %v2191_v21 = vrot.slane %v5846_v36, 4 }
 0x7c0   :  { %v2187_v60 = vpack.c.bf16 %v2186_v24, %v2186_v24 }
 0x7c2   :  { %2204 = vmatmul.bf16.vlgmr.msra.gmra.mxu0 %v2187_v60  ;;  %2217 = vmatmul.bf16.vlgmr.msra.gmra.mxu1 %v2187_v60 }
 0x7c3   :  { %2230 = vmatmul.bf16.vlgmr.msrb.gmra.mxu2 %v2187_v60  ;;  %2243 = vmatmul.bf16.vlgmr.msrb.gmra.mxu3 %v2187_v60 }
 0x7c4   :  { %2444 = vmatpush.bf16.msra.mxu0 %v5666_v48  ;;  %2457 = vmatpush.bf16.msra.mxu1 %v5668_v0 }
 0x7c5   :  { %2470 = vmatpush.bf16.msrb.mxu2 %v5626_v42  ;;  %2483 = vmatpush.bf16.msrb.mxu3 %v5701_v15 }
 0x7c8   :  { %2445 = vmatpush.bf16.msra.mxu0 %v5672_v57  ;;  %2458 = vmatpush.bf16.msra.mxu1 %v5674_v44 }
 0x7c9   :  { %2471 = vmatpush.bf16.msrb.mxu2 %v5629_v3  ;;  %2484 = vmatpush.bf16.msrb.mxu3 %v5715_v14 }
 0x7cc   :  { %2446 = vmatpush.bf16.msra.mxu0 %v5680_v16  ;;  %2459 = vmatpush.bf16.msra.mxu1 %v5682_v17 }
 0x7cd   :  { %2472 = vmatpush.bf16.msrb.mxu2 %v5635_v33  ;;  %2485 = vmatpush.bf16.msrb.mxu3 %v5725_v25 }
 0x7d0   :  { %2447 = vmatpush.bf16.msra.mxu0 %v5687_v38  ;;  %2460 = vmatpush.bf16.msra.mxu1 %v5689_v39 }
 0x7d1   :  { %2473 = vmatpush.bf16.msrb.mxu2 %v5638_v29  ;;  %2486 = vmatpush.bf16.msrb.mxu3 %v5736_v9 }
 0x7d4   :  { %2448 = vmatpush.bf16.msra.mxu0 %v5697_v2  ;;  %2461 = vmatpush.bf16.msra.mxu1 %v5699_v10 }
 0x7d5   :  { %2474 = vmatpush.bf16.msrb.mxu2 %v5643_v58  ;;  %2487 = vmatpush.bf16.msrb.mxu3 %v5742_v40 }
 0x7d8   :  { %2449 = vmatpush.bf16.msra.mxu0 %v5710_v46  ;;  %2462 = vmatpush.bf16.msra.mxu1 %v5712_v53 }
 0x7d9   :  { %2475 = vmatpush.bf16.msrb.mxu2 %v5649_v6  ;;  %2488 = vmatpush.bf16.msrb.mxu3 %v5751_v43 }
 0x7dc   :  { %2450 = vmatpush.bf16.msra.mxu0 %v5720_v13  ;;  %2463 = vmatpush.bf16.msra.mxu1 %v5722_v22 }
 0x7dd   :  { %2476 = vmatpush.bf16.msrb.mxu2 %v5652_v32  ;;  %2489 = vmatpush.bf16.msrb.mxu3 %v5757_v54 }
 0x7e0   :  { %2451 = vmatpush.bf16.msra.mxu0 %v5731_v41  ;;  %2464 = vmatpush.bf16.msra.mxu1 %v5733_v7 }
 0x7e1   :  { %2477 = vmatpush.bf16.msrb.mxu2 %v5657_v49  ;;  %2490 = vmatpush.bf16.msrb.mxu3 %v6514_v62 }
 0x83f   :  { %v2205_v34 = vpop.f32.mrf.mxu0  ;;  %v2218_v63 = vpop.f32.mrf.mxu1 }
 0x840   :  { %v2206_v37 = vadd.f32 %v2205_v34, %v2188_v31  ;;  %v2219_v20 = vadd.f32 %v2218_v63, %v2189_v59 }
 0x842   :  { %v4404_v12 = vmul.f32 -1.442695, %v2206_v37  ;;  %v4405_v27 = vmul.f32 -1.442695, %v2219_v20 }
 0x844   :  { %4874 = vpow2.f32 %v4404_v12 }
 0x845   :  { %4876 = vpow2.f32 %v4405_v27 }
 0x846   :  { %v2231_v23 = vpop.f32.mrf.mxu2  ;;  %v2244_v8 = vpop.f32.mrf.mxu3 }
 0x847   :  { %v2232_v50 = vadd.f32 %v2231_v23, %v2190_v51  ;;  %v2207_v11 = vpop.f32.mrf.mxu0  ;;  %v2220_v56 = vpop.f32.mrf.mxu1  ;;  %v2245_v60 = vadd.f32 %v2244_v8, %v2191_v21 }
 0x849   :  { %v4406_v52 = vmul.f32 -1.442695, %v2232_v50 }
 0x84a   :  { %v4875_v18 = vpop.eup %4874 }
 0x84b   :  { %v4877_v55 = vpop.eup %4876  ;;  %v2257_v4 = vadd.f32 1.0, %v4875_v18  ;;  %4878 = vpow2.f32 %v4406_v52 }
 0x84c   :  { %v2258_v19 = vadd.f32 1.0, %v4877_v55 }
 0x84d   :  { %4880 = vrcp.f32 %v2257_v4  ;;  %v2271_v20 = vand.u32 2147483648, %v2257_v4  ;;  %v2269_v51 = vand.u32 2147483647, %v2257_v4  ;;  %vm2265_vm8 = vweird.f32 %v2257_v4 }
 0x84e   :  { %4882 = vrcp.f32 %v2258_v19  ;;  %v2233_v5 = vpop.f32.mrf.mxu2  ;;  %v2246_v26 = vpop.f32.mrf.mxu3  ;;  %v2286_v12 = vand.u32 2147483648, %v2258_v19  ;;  %v2284_v50 = vand.u32 2147483647, %v2258_v19  ;;  %vm2280_vm9 = vweird.f32 %v2258_v19 }
 0x84f   :  { %v2272_v52 = vor.u32 1.1754944e-38, %v2271_v20  ;;  %vm2270_vm11 = vcmp.eq.f32.partialorder %v2269_v51, 8.507059e+37 }
 0x850   :  { %v2287_v5 = vor.u32 1.1754944e-38, %v2286_v12  ;;  %vm2285_vm13 = vcmp.eq.f32.partialorder %v2284_v50, 8.507059e+37 }
 0x851   :  { %v4879_v1 = vpop.eup %4878 }
 0x852   :  { %v2259_v30 = vadd.f32 1.0, %v4879_v1 }
 0x853   :  { %v4881_v24 = vpop.eup %4880 }
 0x854   :  { %v4883_v31 = vpop.eup %4882  ;;  %v2261_v59 = vmul.f32 %v4881_v24, %v2257_v4  ;;  %4884 = vrcp.f32 %v2259_v30  ;;  %vm2266_vm6 = vweird.f32 %v4881_v24  ;;  %v2301_v20 = vand.u32 2147483648, %v2259_v30 }
 0x855   :  { %v2276_v34 = vmul.f32 %v4883_v31, %v2258_v19  ;;  %4886 = vtanh.f32 %v2245_v60  ;;  %vm2281_vm7 = vweird.f32 %v4883_v31  ;;  %vm2267_vm10 = vmor %vm2265_vm8, %vm2266_vm6  ;;  %vm2295_vm15 = vweird.f32 %v2259_v30 }
 0x856   :  { %v2262_v63 = vsub.f32 1.0, %v2261_v59  ;;  %vm2282_vm12 = vmor %vm2280_vm9, %vm2281_vm7 }
 0x857   :  { %v2277_v37 = vsub.f32 1.0, %v2276_v34 }
 0x858   :  { %v2263_v27 = vmul.f32 %v4881_v24, %v2262_v63 }
 0x859   :  { %v2278_v23 = vmul.f32 %v4883_v31, %v2277_v37 }
 0x85a   :  { %v4885_v11 = vpop.eup %4884  ;;  %v2264_v56 = vadd.f32 %v4881_v24, %v2263_v27  ;;  %v2302_v27 = vor.u32 1.1754944e-38, %v2301_v20 }
 0x85b   :  { %v2291_v8 = vmul.f32 %v4885_v11, %v2259_v30  ;;  %v2279_v18 = vadd.f32 %v4883_v31, %v2278_v23  ;;  %v4887_v26 = vpop.eup %4886  ;;  %vm2296_vm14 = vweird.f32 %v4885_v11 }
 0x85c   :  { %v2268_v55 = vsel %vm2267_vm10, %v4881_v24, %v2264_v56  ;;  %v2299_v24 = vand.u32 2147483647, %v2259_v30  ;;  %vm2297_vm2 = vmor %vm2295_vm15, %vm2296_vm14 }
 0x85d   :  { %v2292_v1 = vsub.f32 1.0, %v2291_v8  ;;  %v2273_v21 = vsel %vm2270_vm11, %v2272_v52, %v2268_v55  ;;  %v2283_v60 = vsel %vm2282_vm12, %v4883_v31, %v2279_v18 }
 0x85e   :  { %v2288_v59 = vsel %vm2285_vm13, %v2287_v5, %v2283_v60  ;;  %v2307_v34 = vmul.f32 %v4887_v26, %v2273_v21  ;;  %vm2300_vm3 = vcmp.eq.f32.partialorder %v2299_v24, 8.507059e+37 }
 0x85f   :  { %v2293_v63 = vmul.f32 %v4885_v11, %v2292_v1  ;;  %v2306_v37 = vmul.f32 %v2288_v59, %v5969_v35 }
 0x861   :  { %v6009_v4 = vadd.f32 %v2307_v34, %v2306_v37  ;;  %v2294_v19 = vadd.f32 %v4885_v11, %v2293_v63 }
 0x863   :  { %4888 = vtanh.f32 %v6009_v4  ;;  %v2298_v12 = vsel %vm2297_vm2, %v4885_v11, %v2294_v19 }
 0x864   :  { %v2303_v51 = vsel %vm2300_vm3, %v2302_v27, %v2298_v12 }
 0x869   :  { %v4889_v31 = vpop.eup %4888 }
 0x86a   :  { %v2310_v23 = vmul.f32 %v4889_v31, %v2303_v51 }
 0x86c   :  { %v2311_v50 = vpack.c.bf16 %v2310_v23, %v2310_v23 }
 0x86e   :  { %2328 = vmatmul.bf16.vlgmr.msrb.gmra.mxu0 %v2311_v50  ;;  %2341 = vmatmul.bf16.vlgmr.msrb.gmra.mxu1 %v2311_v50 }
 0x86f   :  { %2354 = vmatmul.bf16.vlgmr.msra.gmra.mxu2 %v2311_v50  ;;  %2367 = vmatmul.bf16.vlgmr.msra.gmra.mxu3 %v2311_v50 }
 0x870   :  { %2581 = vmatpush.bf16.msrb.mxu1 %v5668_v0  ;;  %2568 = vmatpush.bf16.msrb.mxu0 %v5666_v48  ;;  %v2314_v0 = vrot.slane %v6515_v28, 5 }
 0x871   :  { %2594 = vmatpush.bf16.msra.mxu2 %v5626_v42  ;;  %2607 = vmatpush.bf16.msra.mxu3 %v5701_v15  ;;  %v2312_v42 = vrot.slane %v5834_v45, 5 }
 0x874   :  { %2582 = vmatpush.bf16.msrb.mxu1 %v5674_v44  ;;  %2569 = vmatpush.bf16.msrb.mxu0 %v5672_v57 }
 0x875   :  { %2595 = vmatpush.bf16.msra.mxu2 %v5629_v3  ;;  %2608 = vmatpush.bf16.msra.mxu3 %v5715_v14  ;;  %v2313_v3 = vrot.slane %v5836_v61, 5 }
 0x878   :  { %2583 = vmatpush.bf16.msrb.mxu1 %v5682_v17  ;;  %2570 = vmatpush.bf16.msrb.mxu0 %v5680_v16 }
 0x879   :  { %2596 = vmatpush.bf16.msra.mxu2 %v5635_v33  ;;  %2609 = vmatpush.bf16.msra.mxu3 %v5725_v25 }
 0x87c   :  { %2584 = vmatpush.bf16.msrb.mxu1 %v5689_v39  ;;  %2571 = vmatpush.bf16.msrb.mxu0 %v5687_v38 }
 0x87d   :  { %2597 = vmatpush.bf16.msra.mxu2 %v5638_v29  ;;  %2610 = vmatpush.bf16.msra.mxu3 %v5736_v9 }
 0x880   :  { %2585 = vmatpush.bf16.msrb.mxu1 %v5699_v10  ;;  %2572 = vmatpush.bf16.msrb.mxu0 %v5697_v2 }
 0x881   :  { %2598 = vmatpush.bf16.msra.mxu2 %v5643_v58  ;;  %2611 = vmatpush.bf16.msra.mxu3 %v5742_v40 }
 0x884   :  { %2586 = vmatpush.bf16.msrb.mxu1 %v5712_v53  ;;  %2573 = vmatpush.bf16.msrb.mxu0 %v5710_v46 }
 0x885   :  { %2599 = vmatpush.bf16.msra.mxu2 %v5649_v6  ;;  %2612 = vmatpush.bf16.msra.mxu3 %v5751_v43 }
 0x888   :  { %2587 = vmatpush.bf16.msrb.mxu1 %v5722_v22  ;;  %2574 = vmatpush.bf16.msrb.mxu0 %v5720_v13  ;;  %v2315_v13 = vrot.slane %v5846_v36, 5 }
 0x889   :  { %2600 = vmatpush.bf16.msra.mxu2 %v5652_v32  ;;  %2613 = vmatpush.bf16.msra.mxu3 %v5757_v54 }
 0x88c   :  { %2588 = vmatpush.bf16.msrb.mxu1 %v5733_v7  ;;  %2575 = vmatpush.bf16.msrb.mxu0 %v5731_v41 }
 0x88d   :  { %2601 = vmatpush.bf16.msra.mxu2 %v5657_v49  ;;  %2614 = vmatpush.bf16.msra.mxu3 %v6514_v62 }
 0x8eb   :  { %v2329_v33 = vpop.f32.mrf.mxu0  ;;  %v2342_v29 = vpop.f32.mrf.mxu1 }
 0x8ec   :  { %v2330_v58 = vadd.f32 %v2329_v33, %v2312_v42  ;;  %v2343_v6 = vadd.f32 %v2342_v29, %v2313_v3 }
 0x8ee   :  { %v4407_v48 = vmul.f32 -1.442695, %v2330_v58  ;;  %v4408_v32 = vmul.f32 -1.442695, %v2343_v6  ;;  %v2437_v58 = vrot.slane %v5836_v61, 6 }
 0x8f0   :  { %4890 = vpow2.f32 %v4407_v48 }
 0x8f1   :  { %4892 = vpow2.f32 %v4408_v32  ;;  %v1387_v32 = vld [vmem:[#allocation7 + $0x78] sm:$0xff] }
 0x8f2   :  { %v2355_v57 = vpop.f32.mrf.mxu2  ;;  %v2368_v44 = vpop.f32.mrf.mxu3 }
 0x8f3   :  { %v2356_v16 = vadd.f32 %v2355_v57, %v2314_v0  ;;  %v2331_v49 = vpop.f32.mrf.mxu0  ;;  %v2344_v17 = vpop.f32.mrf.mxu1  ;;  %v2369_v41 = vadd.f32 %v2368_v44, %v2315_v13  ;;  %v1386_v44 = vld [vmem:[#allocation7 + $0x70] sm:$0xff] }
 0x8f4   :  { %v1385_v17 = vld [vmem:[#allocation7 + $0x68] sm:$0xff]  ;;  %v1382_v13 = vld [vmem:[#allocation7 + $0x50] sm:$0xff] }
 0x8f5   :  { %v4409_v38 = vmul.f32 -1.442695, %v2356_v16 }
 0x8f6   :  { %v4891_v39 = vpop.eup %4890 }
 0x8f7   :  { %v4893_v2 = vpop.eup %4892  ;;  %v2381_v10 = vadd.f32 1.0, %v4891_v39  ;;  %4894 = vpow2.f32 %v4409_v38  ;;  %v1384_v38 = vld [vmem:[#allocation7 + $0x60] sm:$0xff]  ;;  %v2438_v39 = vrot.slane %v6515_v28, 6 }
 0x8f8   :  { %v2382_v15 = vadd.f32 1.0, %v4893_v2  ;;  %v1383_v2 = vld [vmem:[#allocation7 + $0x58] sm:$0xff] }
 0x8f9   :  { %4896 = vrcp.f32 %v2381_v10  ;;  %v2395_v62 = vand.u32 2147483648, %v2381_v10  ;;  %v2393_v11 = vand.u32 2147483647, %v2381_v10  ;;  %vm2389_vm6 = vweird.f32 %v2381_v10 }
 0x8fa   :  { %4898 = vrcp.f32 %v2382_v15  ;;  %v2357_v46 = vpop.f32.mrf.mxu2  ;;  %v2370_v53 = vpop.f32.mrf.mxu3  ;;  %v2410_v35 = vand.u32 2147483648, %v2382_v15  ;;  %v2408_v8 = vand.u32 2147483647, %v2382_v15  ;;  %vm2404_vm7 = vweird.f32 %v2382_v15 }
 0x8fb   :  { %v2396_v5 = vor.u32 1.1754944e-38, %v2395_v62  ;;  %vm2394_vm10 = vcmp.eq.f32.partialorder %v2393_v11, 8.507059e+37 }
 0x8fc   :  { %v2411_v1 = vor.u32 1.1754944e-38, %v2410_v35  ;;  %vm2409_vm11 = vcmp.eq.f32.partialorder %v2408_v8, 8.507059e+37  ;;  %v1379_v35 = vld [vmem:[#allocation7 + $0x38] sm:$0xff]  ;;  %v1377_v8 = vld [vmem:[#allocation7 + $0x28] sm:$0xff] }
 0x8fd   :  { %v4895_v14 = vpop.eup %4894 }
 0x8fe   :  { %v2383_v22 = vadd.f32 1.0, %v4895_v14 }
 0x8ff   :  { %v4897_v25 = vpop.eup %4896 }
 0x900   :  { %v4899_v7 = vpop.eup %4898  ;;  %v2385_v9 = vmul.f32 %v4897_v25, %v2381_v10  ;;  %4900 = vrcp.f32 %v2383_v22  ;;  %vm2390_vm4 = vweird.f32 %v4897_v25  ;;  %v2425_v31 = vand.u32 2147483648, %v2383_v22 }
 0x901   :  { %v2400_v40 = vmul.f32 %v4899_v7, %v2382_v15  ;;  %4902 = vtanh.f32 %v2369_v41  ;;  %vm2405_vm5 = vweird.f32 %v4899_v7  ;;  %vm2391_vm8 = vmor %vm2389_vm6, %vm2390_vm4  ;;  %vm2419_vm13 = vweird.f32 %v2383_v22 }
 0x902   :  { %v2386_v43 = vsub.f32 1.0, %v2385_v9  ;;  %vm2406_vm9 = vmor %vm2404_vm7, %vm2405_vm5  ;;  %v2423_v51 = vand.u32 2147483647, %v2383_v22  ;;  %v2426_v50 = vor.u32 1.1754944e-38, %v2425_v31 }
 0x903   :  { %v2401_v54 = vsub.f32 1.0, %v2400_v40  ;;  %v1380_v40 = vld [vmem:[#allocation7 + $0x40] sm:$0xff] }
 0x904   :  { %v2387_v30 = vmul.f32 %v4897_v25, %v2386_v43  ;;  %vm2424_vm15 = vcmp.eq.f32.partialorder %v2423_v51, 8.507059e+37  ;;  %v1373_v51 = vld [vmem:[#allocation7 + $0x8] sm:$0xff] }
 0x905   :  { %v2402_v56 = vmul.f32 %v4899_v7, %v2401_v54 }
 0x906   :  { %v4901_v52 = vpop.eup %4900  ;;  %v2388_v18 = vadd.f32 %v4897_v25, %v2387_v30  ;;  %v1378_v30 = vld [vmem:[#allocation7 + $0x30] sm:$0xff] }
 0x907   :  { %v2415_v55 = vmul.f32 %v4901_v52, %v2383_v22  ;;  %v2403_v26 = vadd.f32 %v4899_v7, %v2402_v56  ;;  %v4903_v60 = vpop.eup %4902  ;;  %vm2420_vm12 = vweird.f32 %v4901_v52  ;;  %v2439_v56 = vrot.slane %v5846_v36, 6 }
 0x908   :  { %v2392_v21 = vsel %vm2391_vm8, %v4897_v25, %v2388_v18  ;;  %vm2421_vm14 = vmor %vm2419_vm13, %vm2420_vm12  ;;  %v1381_v25 = vld [vmem:[#allocation7 + $0x48] sm:$0xff] }
 0x909   :  { %v2416_v59 = vsub.f32 1.0, %v2415_v55  ;;  %v2397_v34 = vsel %vm2394_vm10, %v2396_v5, %v2392_v21  ;;  %v2407_v63 = vsel %vm2406_vm9, %v4899_v7, %v2403_v26  ;;  %v1376_v5 = vld [vmem:[#allocation7 + $0x20] sm:$0xff] }
 0x90a   :  { %v2412_v37 = vsel %vm2409_vm11, %v2411_v1, %v2407_v63  ;;  %v2431_v19 = vmul.f32 %v4903_v60, %v2397_v34  ;;  %v1375_v60 = vld [vmem:[#allocation7 + $0x18] sm:$0xff] }
 0x90b   :  { %v2417_v20 = vmul.f32 %v4901_v52, %v2416_v59  ;;  %v2430_v24 = vmul.f32 %v2412_v37, %v6009_v4  ;;  %v2436_v4 = vrot.slane %v5834_v45, 6  ;;  %v1374_v37 = vld [vmem:[#allocation7 + $0x10] sm:$0xff] }
 0x90d   :  { %v6049_v12 = vadd.f32 %v2431_v19, %v2430_v24  ;;  %v2418_v27 = vadd.f32 %v4901_v52, %v2417_v20 }
 0x90f   :  { %4904 = vtanh.f32 %v6049_v12  ;;  %v2422_v23 = vsel %vm2421_vm14, %v4901_v52, %v2418_v27 }
 0x910   :  { %v2427_v3 = vsel %vm2424_vm15, %v2426_v50, %v2422_v23 }
 0x915   :  { %v4905_v42 = vpop.eup %4904 }
 0x916   :  { %v2434_v33 = vmul.f32 %v4905_v42, %v2427_v3 }
 0x918   :  { %v2435_v29 = vpack.c.bf16 %v2434_v33, %v2434_v33 }
 0x91a   :  { %2452 = vmatmul.bf16.vlgmr.msra.gmra.mxu0 %v2435_v29  ;;  %2465 = vmatmul.bf16.vlgmr.msra.gmra.mxu1 %v2435_v29 }
 0x91b   :  { %2478 = vmatmul.bf16.vlgmr.msrb.gmra.mxu2 %v2435_v29  ;;  %2491 = vmatmul.bf16.vlgmr.msrb.gmra.mxu3 %v2435_v29  ;;  %v1372_v29 = vld [vmem:[#allocation7] sm:$0xff] }
 0x91c   :  { %2720 = vmatpush.msra.mxu1 %v1387_v32 }
 0x91e   :  { %2721 = vmatpush.msra.mxu1 %v1386_v44 }
 0x920   :  { %2722 = vmatpush.msra.mxu1 %v1385_v17 }
 0x922   :  { %2723 = vmatpush.msra.mxu1 %v1384_v38 }
 0x924   :  { %2724 = vmatpush.msra.mxu1 %v1383_v2 }
 0x926   :  { %2725 = vmatpush.msra.mxu1 %v1382_v13 }
 0x928   :  { %2726 = vmatpush.msra.mxu1 %v1381_v25  ;;  %v2762_v25 = vld.sshfl [vmem:[#allocation1 + $0x10] sm:$0xff pattern:$0x75316420] }
 0x92a   :  { %2727 = vmatpush.msra.mxu1 %v1380_v40  ;;  %v4669_v40 = vld [vmem:[#allocation5 + $0x2e4] sm:$0xf] }
 0x92c   :  { %2728 = vmatpush.msra.mxu1 %v1379_v35  ;;  %v2699_v35 = vld [vmem:[#allocation7 + $0xf8] sm:$0xff] }
 0x92d   :  { %2700 = vmatpush.msra.mxu0 %v2699_v35  ;;  %v4501_v35 = vld [vmem:[#allocation5 + $0x298] sm:$0xf0] }
 0x92e   :  { %2729 = vmatpush.msra.mxu1 %v1378_v30 }
 0x930   :  { %2730 = vmatpush.msra.mxu1 %v1377_v8 }
 0x932   :  { %2731 = vmatpush.msra.mxu1 %v1376_v5  ;;  %v4665_v5 = vld [vmem:[#allocation5 + $0x2c4] sm:$0xf] }
 0x934   :  { %2732 = vmatpush.msra.mxu1 %v1375_v60  ;;  %v4533_v60 = vld [vmem:[#allocation5 + $0x2d8] sm:$0xf0] }
 0x936   :  { %2733 = vmatpush.msra.mxu1 %v1374_v37 }
 0x938   :  { %2734 = vmatpush.msra.mxu1 %v1373_v51 }
 0x93a   :  { %2735 = vmatpush.msra.mxu1 %v1372_v29  ;;  %v4657_v29 = vld [vmem:[#allocation5 + $0x284] sm:$0xf] }
 0x997   :  { %v2453_v6 = vpop.f32.mrf.mxu0  ;;  %v2466_v48 = vpop.f32.mrf.mxu1 }
 0x998   :  { %v2454_v0 = vadd.f32 %v2453_v6, %v2436_v4  ;;  %v2467_v57 = vadd.f32 %v2466_v48, %v2437_v58 }
 0x99a   :  { %v4410_v16 = vmul.f32 -1.442695, %v2454_v0  ;;  %v4411_v49 = vmul.f32 -1.442695, %v2467_v57 }
 0x99c   :  { %4906 = vpow2.f32 %v4410_v16  ;;  %v2760_v16 = vld.sshfl [vmem:[#allocation1] sm:$0xff pattern:$0x75316420] }
 0x99d   :  { %4908 = vpow2.f32 %v4411_v49  ;;  %v2761_v49 = vld.sshfl [vmem:[#allocation1 + $0x8] sm:$0xff pattern:$0x75316420]  ;;  %4417 = vmatpush.msk.msrb.mxu2 %vm104_vm0, %v2760_v16 }
 0x99e   :  { %v2479_v10 = vpop.f32.mrf.mxu2  ;;  %v2492_v15 = vpop.f32.mrf.mxu3  ;;  %4419 = vmatpush.msk.msrb.mxu3 %vm104_vm0, %v2761_v49  ;;  %v4459_v49 = vld [vmem:[#allocation5 + $0x240] sm:$0xf] }
 0x99f   :  { %v2480_v46 = vadd.f32 %v2479_v10, %v2438_v39  ;;  %v2455_v53 = vpop.f32.mrf.mxu0  ;;  %v2468_v14 = vpop.f32.mrf.mxu1  ;;  %v2493_v55 = vadd.f32 %v2492_v15, %v2439_v56 }
 0x9a1   :  { %v4412_v22 = vmul.f32 -1.442695, %v2480_v46 }
 0x9a2   :  { %v4907_v41 = vpop.eup %4906 }
 0x9a3   :  { %v4909_v7 = vpop.eup %4908  ;;  %v2505_v9 = vadd.f32 1.0, %v4907_v41  ;;  %4910 = vpow2.f32 %v4412_v22  ;;  %v2763_v41 = vld.sshfl [vmem:[#allocation1 + $0x18] sm:$0xff pattern:$0x75316420] }
 0x9a4   :  { %v2506_v43 = vadd.f32 1.0, %v4909_v7  ;;  %v4539_v7 = vld [vmem:[#allocation5 + $0x2e0] sm:$0xf] }
 0x9a5   :  { %4912 = vrcp.f32 %v2505_v9  ;;  %v2519_v63 = vand.u32 2147483648, %v2505_v9  ;;  %v2517_v24 = vand.u32 2147483647, %v2505_v9  ;;  %vm2513_vm4 = vweird.f32 %v2505_v9 }
 0x9a6   :  { %4914 = vrcp.f32 %v2506_v43  ;;  %v2481_v54 = vpop.f32.mrf.mxu2  ;;  %v2494_v62 = vpop.f32.mrf.mxu3  ;;  %v2534_v19 = vand.u32 2147483648, %v2506_v43  ;;  %v2532_v31 = vand.u32 2147483647, %v2506_v43  ;;  %vm2528_vm5 = vweird.f32 %v2506_v43 }
 0x9a7   :  { %v2520_v3 = vor.u32 1.1754944e-38, %v2519_v63  ;;  %vm2518_vm8 = vcmp.eq.f32.partialorder %v2517_v24, 8.507059e+37  ;;  %v4541_v54 = vld [vmem:[#allocation5 + $0x2f0] sm:$0xf0]  ;;  %v4549_v62 = vld [vmem:[#allocation5 + $0x2f8] sm:$0xf0] }
 0x9a8   :  { %v2535_v4 = vor.u32 1.1754944e-38, %v2534_v19  ;;  %vm2533_vm9 = vcmp.eq.f32.partialorder %v2532_v31, 8.507059e+37  ;;  %v6078_v8 = vor.u32 %v4669_v40, %v4541_v54  ;;  %v2696_v19 = vld [vmem:[#allocation7 + $0xe0] sm:$0xff]  ;;  %v4663_v24 = vld [vmem:[#allocation5 + $0x2ac] sm:$0xf0]  ;;  %v6516_v54 = vmov 0  }
 0x9a9   :  { %v4911_v11 = vpop.eup %4910  ;;  %v4509_v31 = vld [vmem:[#allocation5 + $0x2b0] sm:$0xf0] }
 0x9aa   :  { %v6056_v52 = vadd.f32 1.0, %v4911_v11  ;;  %v2740_v11 = vld [vmem:[%s6499_s2] sm:$0xff] }
 0x9ab   :  { %v4913_v18 = vpop.eup %4912 }
 0x9ac   :  { %v4915_v26 = vpop.eup %4914  ;;  %v2509_v1 = vmul.f32 %v4913_v18, %v2505_v9  ;;  %4916 = vrcp.f32 %v6056_v52  ;;  %vm2514_vm2 = vweird.f32 %v4913_v18  ;;  %v2549_v10 = vand.u32 2147483648, %v6056_v52  ;;  %v4671_v9 = vld [vmem:[#allocation5 + $0x2ec] sm:$0xf0] }
 0x9ad   :  { %v2524_v21 = vmul.f32 %v4915_v26, %v2506_v43  ;;  %4918 = vtanh.f32 %v2493_v55  ;;  %vm2529_vm3 = vweird.f32 %v4915_v26  ;;  %vm2515_vm6 = vmor %vm2513_vm4, %vm2514_vm2  ;;  %vm2543_vm11 = vweird.f32 %v6056_v52  ;;  %v4670_v43 = vld [vmem:[#allocation5 + $0x2ec] sm:$0xf]  ;;  %v4667_v55 = vld [vmem:[#allocation5 + $0x2cc] sm:$0xf0] }
 0x9ae   :  { %v2510_v59 = vsub.f32 1.0, %v2509_v1  ;;  %vm2530_vm7 = vmor %vm2528_vm5, %vm2529_vm3  ;;  %v2547_v15 = vand.u32 2147483647, %v6056_v52  ;;  %v2550_v53 = vor.u32 1.1754944e-38, %v2549_v10  ;;  %v6071_v30 = vor.u32 %v4670_v43, %v4549_v62  ;;  %v4507_v1 = vld [vmem:[#allocation5 + $0x2a0] sm:$0xf] }
 0x9af   :  { %v2525_v34 = vsub.f32 1.0, %v2524_v21  ;;  %v6076_v56 = vor.u32 %v4671_v9, %v4539_v7  ;;  %v4666_v21 = vld [vmem:[#allocation5 + $0x2cc] sm:$0xf]  ;;  %v4641_v7 = vld [vmem:[#allocation5 + $0x204] sm:$0xf] }
 0x9b0   :  { %v2511_v20 = vmul.f32 %v4913_v18, %v2510_v59  ;;  %vm2548_vm13 = vcmp.eq.f32.partialorder %v2547_v15, 8.507059e+37  ;;  %v2697_v59 = vld [vmem:[#allocation7 + $0xe8] sm:$0xff]  ;;  %v6090_v37 = vor.u32 %v4666_v21, %v4533_v60  ;;  %v4429_v9 = vld [vmem:[#allocation5 + $0x210] sm:$0xf0]  ;;  %v2691_v21 = vld [vmem:[#allocation7 + $0xb8] sm:$0xff] }
 0x9b1   :  { %v2526_v27 = vmul.f32 %v4915_v26, %v2525_v34  ;;  %v6132_v43 = vor.u32 %v4641_v7, %v4429_v9  ;;  %v4658_v62 = vld [vmem:[#allocation5 + $0x28c] sm:$0xf] }
 0x9b2   :  { %v4917_v23 = vpop.eup %4916  ;;  %v2512_v50 = vadd.f32 %v4913_v18, %v2511_v20  ;;  %v4517_v20 = vld [vmem:[#allocation5 + $0x2b8] sm:$0xf0]  ;;  %v4650_v60 = vld [vmem:[#allocation5 + $0x24c] sm:$0xf] }
 0x9b3   :  { %v2539_v42 = vmul.f32 %v4917_v23, %v6056_v52  ;;  %v2527_v33 = vadd.f32 %v4915_v26, %v2526_v27  ;;  %v4919_v6 = vpop.eup %4918  ;;  %vm2544_vm10 = vweird.f32 %v4917_v23  ;;  %v4523_v52 = vld [vmem:[#allocation5 + $0x2c0] sm:$0xf]  ;;  %v4661_v27 = vld [vmem:[#allocation5 + $0x2a4] sm:$0xf] }
 0x9b4   :  { %v2516_v58 = vsel %vm2515_vm6, %v4913_v18, %v2512_v50  ;;  %vm2545_vm12 = vmor %vm2543_vm11, %vm2544_vm10  ;;  %v2698_v18 = vld [vmem:[#allocation7 + $0xf0] sm:$0xff]  ;;  %v6086_v34 = vor.u32 %v4667_v55, %v4523_v52  ;;  %v6097_v50 = vor.u32 %v4663_v24, %v4507_v1  ;;  %v6164_v52 = vor.u32 %v4658_v62, %v4501_v35  ;;  %v4654_v55 = vld [vmem:[#allocation5 + $0x26c] sm:$0xf] }
 0x9b5   :  { %v2540_v48 = vsub.f32 1.0, %v2539_v42  ;;  %v2521_v32 = vsel %vm2518_vm8, %v2520_v3, %v2516_v58  ;;  %v2531_v0 = vsel %vm2530_vm7, %v4915_v26, %v2527_v33  ;;  %v4525_v26 = vld [vmem:[#allocation5 + $0x2d0] sm:$0xf0]  ;;  %2701 = vmatpush.msra.mxu0 %v2698_v18  ;;  %v6099_v42 = vor.u32 %v4661_v27, %v4509_v31  ;;  %v4491_v3 = vld [vmem:[#allocation5 + $0x280] sm:$0xf]  ;;  %v2693_v18 = vld [vmem:[#allocation7 + $0xc8] sm:$0xff] }
 0x9b6   :  { %v2536_v57 = vsel %vm2533_vm9, %v2535_v4, %v2531_v0  ;;  %v2555_v44 = vmul.f32 %v4919_v6, %v2521_v32  ;;  %v6088_v63 = vor.u32 %v4665_v5, %v4525_v26  ;;  %v4659_v33 = vld [vmem:[#allocation5 + $0x28c] sm:$0xf0]  ;;  %v4493_v4 = vld [vmem:[#allocation5 + $0x290] sm:$0xf0]  ;;  %v4653_v0 = vld [vmem:[#allocation5 + $0x264] sm:$0xf] }
 0x9b7   :  { %v2541_v17 = vmul.f32 %v4917_v23, %v2540_v48  ;;  %v2554_v38 = vmul.f32 %v2536_v57, %v6049_v12  ;;  %2702 = vmatpush.msra.mxu0 %v2697_v59  ;;  %v6106_v58 = vor.u32 %v4659_v33, %v4491_v3  ;;  %v6108_v6 = vor.u32 %v4657_v29, %v4493_v4  ;;  %v4475_v48 = vld [vmem:[#allocation5 + $0x260] sm:$0xf]  ;;  %v4655_v32 = vld [vmem:[#allocation5 + $0x26c] sm:$0xf0]  ;;  %v4477_v57 = vld [vmem:[#allocation5 + $0x270] sm:$0xf0] }
 0x9b8   :  { %v6114_v16 = vor.u32 %v4653_v0, %v4477_v57  ;;  %v4485_v5 = vld [vmem:[#allocation5 + $0x278] sm:$0xf0]  ;;  %v2692_v26 = vld [vmem:[#allocation7 + $0xc0] sm:$0xff]  ;;  %v4646_v24 = vld [vmem:[#allocation5 + $0x22c] sm:$0xf] }
 0x9b9   :  { %v6063_v39 = vadd.f32 %v2555_v44, %v2554_v38  ;;  %v2542_v2 = vadd.f32 %v4917_v23, %v2541_v17  ;;  %2703 = vmatpush.msra.mxu0 %v2696_v19  ;;  %v6112_v44 = vor.u32 %v4655_v32, %v4475_v48  ;;  %v4651_v17 = vld [vmem:[#allocation5 + $0x24c] sm:$0xf0]  ;;  %v4649_v38 = vld [vmem:[#allocation5 + $0x244] sm:$0xf]  ;;  %v6168_v1 = vor.u32 %v4654_v55, %v4485_v5  ;;  %v4469_v59 = vld [vmem:[#allocation5 + $0x258] sm:$0xf0] }
 0x9ba   :  { %v6118_v10 = vor.u32 %v4651_v17, %v4459_v49  ;;  %v2690_v19 = vld [vmem:[#allocation7 + $0xb0] sm:$0xff]  ;;  %v4453_v27 = vld [vmem:[#allocation5 + $0x238] sm:$0xf0]  ;;  %v2688_v31 = vld [vmem:[#allocation7 + $0xa0] sm:$0xff] }
 0x9bb   :  { %4920 = vtanh.f32 %v6063_v39  ;;  %v2546_v46 = vsel %vm2545_vm12, %v4917_v23, %v2542_v2  ;;  %v2695_v23 = vld [vmem:[#allocation7 + $0xd8] sm:$0xff]  ;;  %v4461_v2 = vld [vmem:[#allocation5 + $0x250] sm:$0xf0]  ;;  %v4642_v33 = vld [vmem:[#allocation5 + $0x20c] sm:$0xf] }
 0x9bc   :  { %v2551_v14 = vsel %vm2548_vm13, %v2550_v53, %v2546_v46  ;;  %2704 = vmatpush.msra.mxu0 %v2695_v23  ;;  %v6120_v15 = vor.u32 %v4649_v38, %v4461_v2  ;;  %v4443_v46 = vld [vmem:[#allocation5 + $0x220] sm:$0xf]  ;;  %v4647_v53 = vld [vmem:[#allocation5 + $0x22c] sm:$0xf0]  ;;  %v6179_v23 = vor.u32 %v4646_v24, %v4453_v27  ;;  %v2687_v3 = vld [vmem:[#allocation7 + $0x98] sm:$0xff] }
 0x9bd   :  { %v4437_v29 = vld [vmem:[#allocation5 + $0x218] sm:$0xf0]  ;;  %v2686_v4 = vld [vmem:[#allocation7 + $0x90] sm:$0xff]  ;;  %v2685_v32 = vld [vmem:[#allocation7 + $0x88] sm:$0xff] }
 0x9be   :  { %v6182_v48 = vor.u32 %v4642_v33, %v4437_v29  ;;  %v4547_v0 = vld [vmem:[#allocation5 + $0x2e8] sm:$0xf]  ;;  %v4672_v57 = vld [vmem:[#allocation5 + $0x2f4] sm:$0xf0]  ;;  %v2684_v49 = vld [vmem:[#allocation7 + $0x80] sm:$0xff] }
 0x9bf   :  { %v6186_v17 = vor.u32 %v4672_v57, %v4547_v0  ;;  %v4531_v38 = vld [vmem:[#allocation5 + $0x2c8] sm:$0xf]  ;;  %v4668_v2 = vld [vmem:[#allocation5 + $0x2d4] sm:$0xf0] }
 0x9c0   :  { %v4499_v62 = vld [vmem:[#allocation5 + $0x288] sm:$0xf]  ;;  %v4660_v35 = vld [vmem:[#allocation5 + $0x294] sm:$0xf0] }
 0x9c1   :  { %v4921_v12 = vpop.eup %4920  ;;  %v6201_v55 = vor.u32 %v4660_v35, %v4499_v62  ;;  %v4451_v57 = vld [vmem:[#allocation5 + $0x228] sm:$0xf] }
 0x9c2   :  { %v2558_v13 = vmul.f32 %v4921_v12, %v2551_v14  ;;  %v4645_v12 = vld [vmem:[#allocation5 + $0x224] sm:$0xf]  ;;  %v4445_v14 = vld [vmem:[#allocation5 + $0x230] sm:$0xf0] }
 0x9c4   :  { %v2559_v22 = vpack.c.bf16 %v2558_v13, %v2558_v13  ;;  %v6124_v13 = vor.u32 %v4647_v53, %v4443_v46  ;;  %v6191_v46 = vor.u32 %v4668_v2, %v4531_v38  ;;  %v4515_v53 = vld [vmem:[#allocation5 + $0x2a8] sm:$0xf] }
 0x9c5   :  { %v4435_v2 = vld [vmem:[#allocation5 + $0x208] sm:$0xf] }
 0x9c6   :  { %2576 = vmatmul.bf16.vlgmr.msrb.gmra.mxu0 %v2559_v22  ;;  %2589 = vmatmul.bf16.vlgmr.msrb.gmra.mxu1 %v2559_v22 }
 0x9c7   :  { %2602 = vmatmul.bf16.vlgmr.msra.gmra.mxu2 %v2559_v22  ;;  %2615 = vmatmul.bf16.vlgmr.msra.gmra.mxu3 %v2559_v22  ;;  %v6126_v22 = vor.u32 %v4645_v12, %v4445_v14  ;;  %v4664_v12 = vld [vmem:[#allocation5 + $0x2b4] sm:$0xf0] }
 0x9c8   :  { %4421 = vmatpush.msk.msra.mxu2 %vm104_vm0, %v2762_v25  ;;  %4423 = vmatpush.msk.msra.mxu3 %vm104_vm0, %v2763_v41  ;;  %v4427_v25 = vld [vmem:[#allocation5 + $0x200] sm:$0xf]  ;;  %v4643_v41 = vld [vmem:[#allocation5 + $0x20c] sm:$0xf0]  ;;  %v6195_v14 = vor.u32 %v4664_v12, %v4515_v53  ;;  %v4644_v53 = vld [vmem:[#allocation5 + $0x214] sm:$0xf0] }
 0x9c9   :  { %3087 = vmatpush.bf16.msrb.mxu1 %v6071_v30  ;;  %v6130_v40 = vor.u32 %v4643_v41, %v4427_v25  ;;  %v2560_v25 = vrot.slane %v5834_v45, 7  ;;  %v2561_v41 = vrot.slane %v5836_v61, 7  ;;  %v4656_v45 = vld [vmem:[#allocation5 + $0x274] sm:$0xf0] }
 0x9cd   :  { %3088 = vmatpush.bf16.msrb.mxu1 %v6090_v37 }
 0x9d6   :  { %2736 = vmatmul.f32.vlgmr.msra.gmra.mxu1 %v5843_v47  ;;  %v4662_v47 = vld [vmem:[#allocation5 + $0x2ac] sm:$0xf] }
 0x9d7   :  { %4418 = vmatmul.msk.f32.vlgmr.msrb.gmra.mxu2 %vm100_vm1, %v2740_v11  ;;  %4420 = vmatmul.msk.f32.vlgmr.msrb.gmra.mxu3 %vm100_vm1, %v2740_v11  ;;  %v6093_v51 = vor.u32 %v4662_v47, %v4517_v20  ;;  %v6174_v47 = vor.u32 %v4650_v60, %v4469_v59  ;;  %v2689_v20 = vld [vmem:[#allocation7 + $0xa8] sm:$0xff]  ;;  %v4652_v59 = vld [vmem:[#allocation5 + $0x254] sm:$0xf0] }
 0x9d8   :  { %3048 = vmatpush.bf16.msrb.mxu2 %v6076_v56  ;;  %3061 = vmatpush.bf16.msrb.mxu3 %v6078_v8  ;;  %v4467_v60 = vld [vmem:[#allocation5 + $0x248] sm:$0xf] }
 0x9d9   :  { %3089 = vmatpush.bf16.msrb.mxu1 %v6093_v51  ;;  %v6209_v27 = vor.u32 %v4652_v59, %v4467_v60 }
 0x9dc   :  { %3049 = vmatpush.bf16.msrb.mxu2 %v6086_v34  ;;  %3062 = vmatpush.bf16.msrb.mxu3 %v6088_v63 }
 0x9dd   :  { %3090 = vmatpush.bf16.msrb.mxu1 %v6164_v52 }
 0x9df   :  { %4422 = vmatmul.msk.f32.vlgmr.msra.gmra.mxu2 %vm100_vm1, %v2740_v11  ;;  %4424 = vmatmul.msk.f32.vlgmr.msra.gmra.mxu3 %vm100_vm1, %v2740_v11  ;;  %v2694_v11 = vld [vmem:[#allocation7 + $0xd0] sm:$0xff] }
 0x9e0   :  { %3050 = vmatpush.bf16.msrb.mxu2 %v6097_v50  ;;  %3063 = vmatpush.bf16.msrb.mxu3 %v6099_v42 }
 0x9e1   :  { %2705 = vmatpush.msra.mxu0 %v2694_v11  ;;  %3091 = vmatpush.bf16.msrb.mxu1 %v6168_v1 }
 0x9e3   :  { %2706 = vmatpush.msra.mxu0 %v2693_v18 }
 0x9e4   :  { %3051 = vmatpush.bf16.msrb.mxu2 %v6106_v58  ;;  %3064 = vmatpush.bf16.msrb.mxu3 %v6108_v6 }
 0x9e5   :  { %2707 = vmatpush.msra.mxu0 %v2692_v26  ;;  %3092 = vmatpush.bf16.msrb.mxu1 %v6174_v47 }
 0x9e7   :  { %2708 = vmatpush.msra.mxu0 %v2691_v21  ;;  %v4483_v21 = vld [vmem:[#allocation5 + $0x268] sm:$0xf] }
 0x9e8   :  { %3052 = vmatpush.bf16.msrb.mxu2 %v6112_v44  ;;  %3065 = vmatpush.bf16.msrb.mxu3 %v6114_v16  ;;  %v6205_v61 = vor.u32 %v4656_v45, %v4483_v21 }
 0x9e9   :  { %2709 = vmatpush.msra.mxu0 %v2690_v19  ;;  %3093 = vmatpush.bf16.msrb.mxu1 %v6179_v23  ;;  %v2562_v19 = vrot.slane %v6515_v28, 7  ;;  %v4648_v28 = vld [vmem:[#allocation5 + $0x234] sm:$0xf0] }
 0x9ea   :  { %v6214_v38 = vor.u32 %v4648_v28, %v4451_v57 }
 0x9eb   :  { %2710 = vmatpush.msra.mxu0 %v2689_v20 }
 0x9ec   :  { %3053 = vmatpush.bf16.msrb.mxu2 %v6118_v10  ;;  %3066 = vmatpush.bf16.msrb.mxu3 %v6120_v15 }
 0x9ed   :  { %2711 = vmatpush.msra.mxu0 %v2688_v31  ;;  %3094 = vmatpush.bf16.msrb.mxu1 %v6182_v48 }
 0x9ef   :  { %2712 = vmatpush.msra.mxu0 %v2687_v3 }
 0x9f0   :  { %3054 = vmatpush.bf16.msrb.mxu2 %v6124_v13  ;;  %3067 = vmatpush.bf16.msrb.mxu3 %v6126_v22 }
 0x9f1   :  { %2713 = vmatpush.msra.mxu0 %v2686_v4  ;;  %3215 = vmatpush.bf16.msra.mxu1 %v6071_v30 }
 0x9f2   :  { %3095 = vmatmul.bf16.vlgmr.msrb.gmra.mxu1 %v6516_v54 }
 0x9f3   :  { %2714 = vmatpush.msra.mxu0 %v2685_v32 }
 0x9f4   :  { %3055 = vmatpush.bf16.msrb.mxu2 %v6130_v40  ;;  %3068 = vmatpush.bf16.msrb.mxu3 %v6132_v43 }
 0x9f5   :  { %2715 = vmatpush.msra.mxu0 %v2684_v49  ;;  %3216 = vmatpush.bf16.msra.mxu1 %v6090_v37 }
 0x9f7   :  { %3056 = vmatmul.bf16.vlgmr.msrb.gmra.mxu2 %v6516_v54  ;;  %3069 = vmatmul.bf16.vlgmr.msrb.gmra.mxu3 %v6516_v54 }
 0x9f8   :  { %3176 = vmatpush.bf16.msra.mxu2 %v6076_v56  ;;  %3189 = vmatpush.bf16.msra.mxu3 %v6078_v8 }
 0x9f9   :  { %3074 = vmatpush.bf16.msrb.mxu0 %v6186_v17  ;;  %3217 = vmatpush.bf16.msra.mxu1 %v6093_v51 }
 0x9fc   :  { %3177 = vmatpush.bf16.msra.mxu2 %v6086_v34  ;;  %3190 = vmatpush.bf16.msra.mxu3 %v6088_v63 }
 0x9fd   :  { %3075 = vmatpush.bf16.msrb.mxu0 %v6191_v46  ;;  %3218 = vmatpush.bf16.msra.mxu1 %v6164_v52 }
 0xa00   :  { %3178 = vmatpush.bf16.msra.mxu2 %v6097_v50  ;;  %3191 = vmatpush.bf16.msra.mxu3 %v6099_v42 }
 0xa01   :  { %3076 = vmatpush.bf16.msrb.mxu0 %v6195_v14  ;;  %3219 = vmatpush.bf16.msra.mxu1 %v6168_v1 }
 0xa04   :  { %3179 = vmatpush.bf16.msra.mxu2 %v6106_v58  ;;  %3192 = vmatpush.bf16.msra.mxu3 %v6108_v6 }
 0xa05   :  { %3077 = vmatpush.bf16.msrb.mxu0 %v6201_v55  ;;  %3220 = vmatpush.bf16.msra.mxu1 %v6174_v47 }
 0xa08   :  { %3180 = vmatpush.bf16.msra.mxu2 %v6112_v44  ;;  %3193 = vmatpush.bf16.msra.mxu3 %v6114_v16 }
 0xa09   :  { %3078 = vmatpush.bf16.msrb.mxu0 %v6205_v61  ;;  %3221 = vmatpush.bf16.msra.mxu1 %v6179_v23 }
 0xa0c   :  { %3181 = vmatpush.bf16.msra.mxu2 %v6118_v10  ;;  %3194 = vmatpush.bf16.msra.mxu3 %v6120_v15 }
 0xa0d   :  { %3079 = vmatpush.bf16.msrb.mxu0 %v6209_v27  ;;  %3222 = vmatpush.bf16.msra.mxu1 %v6182_v48 }
 0xa10   :  { %3182 = vmatpush.bf16.msra.mxu2 %v6124_v13  ;;  %3195 = vmatpush.bf16.msra.mxu3 %v6126_v22 }
 0xa11   :  { %3080 = vmatpush.bf16.msrb.mxu0 %v6214_v38  ;;  %3339 = vmatpush.bf16.msrb.mxu1 %v6071_v30 }
 0xa14   :  { %3183 = vmatpush.bf16.msra.mxu2 %v6130_v40  ;;  %3196 = vmatpush.bf16.msra.mxu3 %v6132_v43 }
 0xa15   :  { %3340 = vmatpush.bf16.msrb.mxu1 %v6090_v37 }
 0xa18   :  { %3300 = vmatpush.bf16.msrb.mxu2 %v6076_v56  ;;  %3313 = vmatpush.bf16.msrb.mxu3 %v6078_v8 }
 0xa19   :  { %3341 = vmatpush.bf16.msrb.mxu1 %v6093_v51 }
 0xa1c   :  { %3301 = vmatpush.bf16.msrb.mxu2 %v6086_v34  ;;  %3314 = vmatpush.bf16.msrb.mxu3 %v6088_v63 }
 0xa1d   :  { %3342 = vmatpush.bf16.msrb.mxu1 %v6164_v52 }
 0xa20   :  { %3302 = vmatpush.bf16.msrb.mxu2 %v6097_v50  ;;  %3315 = vmatpush.bf16.msrb.mxu3 %v6099_v42 }
 0xa21   :  { %3343 = vmatpush.bf16.msrb.mxu1 %v6168_v1 }
 0xa24   :  { %3303 = vmatpush.bf16.msrb.mxu2 %v6106_v58  ;;  %3316 = vmatpush.bf16.msrb.mxu3 %v6108_v6 }
 0xa25   :  { %3344 = vmatpush.bf16.msrb.mxu1 %v6174_v47 }
 0xa28   :  { %3304 = vmatpush.bf16.msrb.mxu2 %v6112_v44  ;;  %3317 = vmatpush.bf16.msrb.mxu3 %v6114_v16 }
 0xa29   :  { %3345 = vmatpush.bf16.msrb.mxu1 %v6179_v23 }
 0xa2c   :  { %3305 = vmatpush.bf16.msrb.mxu2 %v6118_v10  ;;  %3318 = vmatpush.bf16.msrb.mxu3 %v6120_v15 }
 0xa2d   :  { %3346 = vmatpush.bf16.msrb.mxu1 %v6182_v48 }
 0xa30   :  { %3306 = vmatpush.bf16.msrb.mxu2 %v6124_v13  ;;  %3319 = vmatpush.bf16.msrb.mxu3 %v6126_v22 }
 0xa34   :  { %3307 = vmatpush.bf16.msrb.mxu2 %v6130_v40  ;;  %3320 = vmatpush.bf16.msrb.mxu3 %v6132_v43 }
 0xa43   :  { %v2577_v7 = vpop.f32.mrf.mxu0  ;;  %v2590_v9 = vpop.f32.mrf.mxu1 }
 0xa44   :  { %v2578_v11 = vadd.f32 %v2577_v7, %v2560_v25  ;;  %v2591_v18 = vadd.f32 %v2590_v9, %v2561_v41  ;;  %v6217_v41 = vor.u32 %v4644_v53, %v4435_v2  ;;  %v2563_v9 = vrot.slane %v5846_v36, 7 }
 0xa46   :  { %v4413_v5 = vmul.f32 -1.442695, %v2578_v11  ;;  %v4414_v26 = vmul.f32 -1.442695, %v2591_v18  ;;  %3081 = vmatpush.bf16.msrb.mxu0 %v6217_v41 }
 0xa48   :  { %4922 = vpow2.f32 %v4413_v5 }
 0xa49   :  { %4924 = vpow2.f32 %v4414_v26 }
 0xa4a   :  { %v2603_v20 = vpop.f32.mrf.mxu2  ;;  %v2616_v24 = vpop.f32.mrf.mxu3 }
 0xa4b   :  { %v2604_v31 = vadd.f32 %v2603_v20, %v2562_v19  ;;  %v2579_v3 = vpop.f32.mrf.mxu0  ;;  %v2592_v33 = vpop.f32.mrf.mxu1  ;;  %v2617_v11 = vadd.f32 %v2616_v24, %v2563_v9 }
 0xa4d   :  { %v4415_v29 = vmul.f32 -1.442695, %v2604_v31 }
 0xa4e   :  { %v4923_v4 = vpop.eup %4922 }
 0xa4f   :  { %v4925_v32 = vpop.eup %4924  ;;  %v2629_v0 = vadd.f32 1.0, %v4923_v4  ;;  %4926 = vpow2.f32 %v4415_v29 }
 0xa50   :  { %v2630_v49 = vadd.f32 1.0, %v4925_v32 }
 0xa51   :  { %4928 = vrcp.f32 %v2629_v0  ;;  %v2643_v60 = vand.u32 2147483648, %v2629_v0  ;;  %v2641_v20 = vand.u32 2147483647, %v2629_v0  ;;  %vm2637_vm14 = vweird.f32 %v2629_v0 }
 0xa52   :  { %4930 = vrcp.f32 %v2630_v49  ;;  %v2605_v12 = vpop.f32.mrf.mxu2  ;;  %v2618_v25 = vpop.f32.mrf.mxu3  ;;  %v2658_v59 = vand.u32 2147483648, %v2630_v49  ;;  %v2656_v31 = vand.u32 2147483647, %v2630_v49  ;;  %vm2652_vm15 = vweird.f32 %v2630_v49 }
 0xa53   :  { %v2644_v29 = vor.u32 1.1754944e-38, %v2643_v60  ;;  %vm2642_vm4 = vcmp.eq.f32.partialorder %v2641_v20, 8.507059e+37 }
 0xa54   :  { %v2659_v32 = vor.u32 1.1754944e-38, %v2658_v59  ;;  %vm2657_vm5 = vcmp.eq.f32.partialorder %v2656_v31, 8.507059e+37 }
 0xa55   :  { %v4927_v7 = vpop.eup %4926 }
 0xa56   :  { %v2631_v62 = vadd.f32 1.0, %v4927_v7 }
 0xa57   :  { %v4929_v35 = vpop.eup %4928 }
 0xa58   :  { %v4931_v18 = vpop.eup %4930  ;;  %v2633_v5 = vmul.f32 %v4929_v35, %v2629_v0  ;;  %4932 = vrcp.f32 %v2631_v62  ;;  %vm2638_vm0 = vweird.f32 %v4929_v35  ;;  %vm2667_vm7 = vweird.f32 %v2631_v62 }
 0xa59   :  { %v2648_v26 = vmul.f32 %v4931_v18, %v2630_v49  ;;  %4934 = vtanh.f32 %v2617_v11  ;;  %vm2653_vm1 = vweird.f32 %v4931_v18  ;;  %vm2639_vm2 = vmor %vm2637_vm14, %vm2638_vm0 }
 0xa5a   :  { %v2634_v21 = vsub.f32 1.0, %v2633_v5  ;;  %vm2654_vm3 = vmor %vm2652_vm15, %vm2653_vm1  ;;  %v2792_v5 = vpop.f32.mrf.mxu2 }
 0xa5b   :  { %v2649_v45 = vsub.f32 1.0, %v2648_v26  ;;  %v2673_v26 = vand.u32 2147483648, %v2631_v62 }
 0xa5c   :  { %v2635_v19 = vmul.f32 %v4929_v35, %v2634_v21  ;;  %v2671_v21 = vand.u32 2147483647, %v2631_v62 }
 0xa5d   :  { %v2650_v36 = vmul.f32 %v4931_v18, %v2649_v45  ;;  %v2674_v45 = vor.u32 1.1754944e-38, %v2673_v26 }
 0xa5e   :  { %v4933_v24 = vpop.eup %4932  ;;  %v2636_v3 = vadd.f32 %v4929_v35, %v2635_v19  ;;  %vm2672_vm9 = vcmp.eq.f32.partialorder %v2671_v21, 8.507059e+37  ;;  %v6233_v19 = vld [vmem:[%s6502_s5 + $0x8] sm:$0xf] }
 0xa5f   :  { %v2663_v33 = vmul.f32 %v4933_v24, %v2631_v62  ;;  %v2651_v4 = vadd.f32 %v4931_v18, %v2650_v36  ;;  %v4935_v28 = vpop.eup %4934  ;;  %vm2668_vm6 = vweird.f32 %v4933_v24  ;;  %v2747_v36 = vperm.slane %v6233_v19, 0 }
 0xa60   :  { %v2640_v57 = vsel %vm2639_vm2, %v4929_v35, %v2636_v3  ;;  %v2812_v35 = vpop.f32.mrf.mxu3  ;;  %vm2669_vm8 = vmor %vm2667_vm7, %vm2668_vm6  ;;  %v2748_v31 = vperm.slane %v6233_v19, 1  ;;  %v2750_v21 = vperm.slane %v6233_v19, 3 }
 0xa61   :  { %v2664_v2 = vsub.f32 1.0, %v2663_v33  ;;  %v2645_v53 = vsel %vm2642_vm4, %v2644_v29, %v2640_v57  ;;  %v2655_v12 = vsel %vm2654_vm3, %v4931_v18, %v2651_v4 }
 0xa62   :  { %v2660_v25 = vsel %vm2657_vm5, %v2659_v32, %v2655_v12  ;;  %v2679_v7 = vmul.f32 %v4935_v28, %v2645_v53  ;;  %v6235_v20 = vpop.f32.mrf.mxu2  ;;  %v6244_v3 = vadd.f32 %v2812_v35, %v2748_v31  ;;  %v2737_v35 = vpop.f32.mrf.mxu1 }
 0xa63   :  { %v2665_v9 = vmul.f32 %v4933_v24, %v2664_v2  ;;  %v2678_v0 = vmul.f32 %v2660_v25, %v6063_v39 }
 0xa65   :  { %v2680_v49 = vadd.f32 %v2679_v7, %v2678_v0  ;;  %v2666_v11 = vadd.f32 %v4933_v24, %v2665_v9 }
 0xa67   :  { %4936 = vtanh.f32 %v2680_v49  ;;  %v2670_v18 = vsel %vm2669_vm8, %v4933_v24, %v2666_v11  ;;  %v6242_v24 = vadd.f32 %v2792_v5, %v2747_v36 }
 0xa68   :  { %v2675_v60 = vsel %vm2672_vm9, %v2674_v45, %v2670_v18  ;;  %v2852_v62 = vpop.f32.mrf.mxu3 }
 0xa6d   :  { %v4937_v39 = vpop.eup %4936 }
 0xa6e   :  { %v2682_v59 = vmul.f32 %v4937_v39, %v2675_v60  ;;  %v6264_v39 = vadd.f32 %v2852_v62, %v2750_v21  ;;  %v2749_v21 = vperm.slane %v6233_v19, 2 }
 0xa70   :  { %2716 = vmatmul.f32.vlgmr.msra.gmra.mxu0 %v2682_v59 }
 0xa71   :  { %3202 = vmatpush.bf16.msra.mxu0 %v6186_v17 }
 0xa75   :  { %3203 = vmatpush.bf16.msra.mxu0 %v6191_v46 }
 0xa78   :  { %3082 = vmatmul.bf16.vlgmr.msrb.gmra.mxu0 %v6516_v54 }
 0xa79   :  { %3204 = vmatpush.bf16.msra.mxu0 %v6195_v14 }
 0xa7a   :  { %v3057_v33 = vpop.f32.mrf.mxu2  ;;  %v3070_v29 = vpop.f32.mrf.mxu3 }
 0xa7b   :  { %v3058_v4 = vadd.f32 %v3057_v33, %v6242_v24  ;;  %v3071_v32 = vadd.f32 %v3070_v29, %v6244_v3  ;;  %v3096_v33 = vpop.f32.mrf.mxu1 }
 0xa7d   :  { %3205 = vmatpush.bf16.msra.mxu0 %v6201_v55  ;;  %v4554_v54 = vmul.f32 -1.442695, %v3071_v32  ;;  %v4553_v2 = vmul.f32 -1.442695, %v3058_v4 }
 0xa7f   :  { %4938 = vpow2.f32 %v4554_v54 }
 0xa80   :  { %4940 = vpow2.f32 %v4553_v2 }
 0xa81   :  { %3206 = vmatpush.bf16.msra.mxu0 %v6205_v61 }
 0xa82   :  { %v3059_v57 = vpop.f32.mrf.mxu2  ;;  %v3072_v28 = vpop.f32.mrf.mxu3 }
 0xa83   :  { %v3097_v57 = vadd.f32 %v3096_v33, %v6264_v39 }
 0xa85   :  { %3207 = vmatpush.bf16.msra.mxu0 %v6209_v27  ;;  %v4939_v53 = vpop.eup %4938 }
 0xa86   :  { %v4941_v12 = vpop.eup %4940  ;;  %v3110_v25 = vadd.f32 1.0, %v4939_v53 }
 0xa87   :  { %v3109_v7 = vadd.f32 1.0, %v4941_v12 }
 0xa88   :  { %4942 = vrcp.f32 %v3110_v25  ;;  %vm3132_vm10 = vweird.f32 %v3110_v25  ;;  %v3138_v60 = vand.u32 2147483648, %v3110_v25  ;;  %v3136_v36 = vand.u32 2147483647, %v3110_v25 }
 0xa89   :  { %3208 = vmatpush.bf16.msra.mxu0 %v6214_v38  ;;  %4944 = vrcp.f32 %v3109_v7  ;;  %vm3117_vm12 = vweird.f32 %v3109_v7  ;;  %v3123_v31 = vand.u32 2147483648, %v3109_v7  ;;  %v3121_v4 = vand.u32 2147483647, %v3109_v7 }
 0xa8a   :  { %v3139_v32 = vor.u32 1.1754944e-38, %v3138_v60  ;;  %vm3137_vm14 = vcmp.eq.f32.partialorder %v3136_v36, 8.507059e+37  ;;  %4946 = vtanh.f32 %v3097_v57 }
 0xa8b   :  { %v3124_v54 = vor.u32 1.1754944e-38, %v3123_v31  ;;  %vm3122_vm15 = vcmp.eq.f32.partialorder %v3121_v4, 8.507059e+37 }
 0xa8d   :  { %3209 = vmatpush.bf16.msra.mxu0 %v6217_v41 }
 0xa8e   :  { %v4943_v9 = vpop.eup %4942 }
 0xa8f   :  { %v4945_v0 = vpop.eup %4944  ;;  %v3128_v49 = vmul.f32 %v4943_v9, %v3110_v25  ;;  %vm3133_vm11 = vweird.f32 %v4943_v9 }
 0xa90   :  { %v3113_v11 = vmul.f32 %v4945_v0, %v3109_v7  ;;  %vm3118_vm13 = vweird.f32 %v4945_v0  ;;  %vm3134_vm0 = vmor %vm3132_vm10, %vm3133_vm11  ;;  %v4947_v25 = vpop.eup %4946 }
 0xa91   :  { %3326 = vmatpush.bf16.msrb.mxu0 %v6186_v17  ;;  %v3129_v5 = vsub.f32 1.0, %v3128_v49  ;;  %vm3119_vm1 = vmor %vm3117_vm12, %vm3118_vm13  ;;  %v3098_v49 = vpop.f32.mrf.mxu1 }
 0xa92   :  { %v3114_v26 = vsub.f32 1.0, %v3113_v11 }
 0xa93   :  { %v3130_v18 = vmul.f32 %v4943_v9, %v3129_v5 }
 0xa94   :  { %v3115_v45 = vmul.f32 %v4945_v0, %v3114_v26 }
 0xa95   :  { %3327 = vmatpush.bf16.msrb.mxu0 %v6191_v46  ;;  %v3131_v59 = vadd.f32 %v4943_v9, %v3130_v18 }
 0xa96   :  { %v3116_v29 = vadd.f32 %v4945_v0, %v3115_v45 }
 0xa97   :  { %v3135_v28 = vsel %vm3134_vm0, %v4943_v9, %v3131_v59  ;;  %v6273_v9 = vadd.f32 %v6235_v20, %v2749_v21  ;;  %v3169_v21 = vrot.slane %v6244_v3, 1 }
 0xa98   :  { %v3120_v62 = vsel %vm3119_vm1, %v4945_v0, %v3116_v29  ;;  %v3140_v2 = vsel %vm3137_vm14, %v3139_v32, %v3135_v28 }
 0xa99   :  { %3328 = vmatpush.bf16.msrb.mxu0 %v6195_v14  ;;  %v3125_v53 = vsel %vm3122_vm15, %v3124_v54, %v3120_v62  ;;  %v3158_v12 = vmul.f32 0.0, %v3140_v2 }
 0xa9a   :  { %v3159_v11 = vmul.f32 %v4947_v25, %v3125_v53  ;;  %v3170_v53 = vrot.slane %v6273_v9, 1 }
 0xa9c   :  { %v6267_v5 = vadd.f32 %v3159_v11, %v3158_v12 }
 0xa9d   :  { %3329 = vmatpush.bf16.msrb.mxu0 %v6201_v55 }
 0xaa1   :  { %3330 = vmatpush.bf16.msrb.mxu0 %v6205_v61 }
 0xaa5   :  { %3331 = vmatpush.bf16.msrb.mxu0 %v6209_v27 }
 0xaa9   :  { %3332 = vmatpush.bf16.msrb.mxu0 %v6214_v38 }
 0xaad   :  { %3333 = vmatpush.bf16.msrb.mxu0 %v6217_v41 }
 0xaed   :  { %v2717_v26 = vpop.f32.mrf.mxu0 }
 0xaee   :  { %v6269_v7 = vadd.f32 %v2737_v35, %v2717_v26  ;;  %v3168_v26 = vrot.slane %v6242_v24, 1 }
 0xaf5   :  { %v3083_v18 = vpop.f32.mrf.mxu0 }
 0xaf6   :  { %v3084_v0 = vadd.f32 %v3083_v18, %v6273_v9 }
 0xaf8   :  { %v4555_v45 = vmul.f32 -1.442695, %v3084_v0 }
 0xafa   :  { %4948 = vpow2.f32 %v4555_v45 }
 0xafd   :  { %v3085_v60 = vpop.f32.mrf.mxu0 }
 0xb00   :  { %v4949_v59 = vpop.eup %4948 }
 0xb01   :  { %v3111_v36 = vadd.f32 1.0, %v4949_v59 }
 0xb03   :  { %4950 = vrcp.f32 %v3111_v36  ;;  %v3153_v35 = vand.u32 2147483648, %v3111_v36  ;;  %v3151_v19 = vand.u32 2147483647, %v3111_v36  ;;  %vm3147_vm3 = vweird.f32 %v3111_v36 }
 0xb04   :  { %4952 = vtanh.f32 %v6267_v5 }
 0xb05   :  { %v3154_v32 = vor.u32 1.1754944e-38, %v3153_v35  ;;  %vm3152_vm5 = vcmp.eq.f32.partialorder %v3151_v19, 8.507059e+37 }
 0xb09   :  { %v4951_v31 = vpop.eup %4950 }
 0xb0a   :  { %v3143_v33 = vmul.f32 %v4951_v31, %v3111_v36  ;;  %vm3148_vm2 = vweird.f32 %v4951_v31  ;;  %v4953_v28 = vpop.eup %4952 }
 0xb0b   :  { %vm3149_vm4 = vmor %vm3147_vm3, %vm3148_vm2 }
 0xb0c   :  { %v3144_v29 = vsub.f32 1.0, %v3143_v33 }
 0xb0e   :  { %v3145_v4 = vmul.f32 %v4951_v31, %v3144_v29 }
 0xb10   :  { %v3146_v20 = vadd.f32 %v4951_v31, %v3145_v4 }
 0xb12   :  { %v3150_v57 = vsel %vm3149_vm4, %v4951_v31, %v3146_v20 }
 0xb13   :  { %v3155_v54 = vsel %vm3152_vm5, %v3154_v32, %v3150_v57 }
 0xb14   :  { %v3162_v62 = vmul.f32 %v4953_v28, %v3155_v54  ;;  %v3171_v54 = vrot.slane %v6264_v39, 1 }
 0xb16   :  { %v3163_v2 = vpack.c.bf16 %v3162_v62, %v3162_v62 }
 0xb18   :  { %3184 = vmatmul.bf16.vlgmr.msra.gmra.mxu2 %v3163_v2  ;;  %3197 = vmatmul.bf16.vlgmr.msra.gmra.mxu3 %v3163_v2 }
 0xb19   :  { %3210 = vmatmul.bf16.vlgmr.msra.gmra.mxu0 %v3163_v2  ;;  %3223 = vmatmul.bf16.vlgmr.msra.gmra.mxu1 %v3163_v2 }
 0xb1a   :  { %3424 = vmatpush.bf16.msra.mxu2 %v6076_v56  ;;  %3437 = vmatpush.bf16.msra.mxu3 %v6078_v8 }
 0xb1b   :  { %3450 = vmatpush.bf16.msra.mxu0 %v6186_v17  ;;  %3463 = vmatpush.bf16.msra.mxu1 %v6071_v30 }
 0xb1e   :  { %3425 = vmatpush.bf16.msra.mxu2 %v6086_v34  ;;  %3438 = vmatpush.bf16.msra.mxu3 %v6088_v63 }
 0xb1f   :  { %3451 = vmatpush.bf16.msra.mxu0 %v6191_v46  ;;  %3464 = vmatpush.bf16.msra.mxu1 %v6090_v37 }
 0xb22   :  { %3426 = vmatpush.bf16.msra.mxu2 %v6097_v50  ;;  %3439 = vmatpush.bf16.msra.mxu3 %v6099_v42 }
 0xb23   :  { %3452 = vmatpush.bf16.msra.mxu0 %v6195_v14  ;;  %3465 = vmatpush.bf16.msra.mxu1 %v6093_v51 }
 0xb26   :  { %3427 = vmatpush.bf16.msra.mxu2 %v6106_v58  ;;  %3440 = vmatpush.bf16.msra.mxu3 %v6108_v6 }
 0xb27   :  { %3453 = vmatpush.bf16.msra.mxu0 %v6201_v55  ;;  %3466 = vmatpush.bf16.msra.mxu1 %v6164_v52 }
 0xb2a   :  { %3428 = vmatpush.bf16.msra.mxu2 %v6112_v44  ;;  %3441 = vmatpush.bf16.msra.mxu3 %v6114_v16 }
 0xb2b   :  { %3454 = vmatpush.bf16.msra.mxu0 %v6205_v61  ;;  %3467 = vmatpush.bf16.msra.mxu1 %v6168_v1 }
 0xb2e   :  { %3429 = vmatpush.bf16.msra.mxu2 %v6118_v10  ;;  %3442 = vmatpush.bf16.msra.mxu3 %v6120_v15 }
 0xb2f   :  { %3455 = vmatpush.bf16.msra.mxu0 %v6209_v27  ;;  %3468 = vmatpush.bf16.msra.mxu1 %v6174_v47 }
 0xb32   :  { %3430 = vmatpush.bf16.msra.mxu2 %v6124_v13  ;;  %3443 = vmatpush.bf16.msra.mxu3 %v6126_v22 }
 0xb33   :  { %3456 = vmatpush.bf16.msra.mxu0 %v6214_v38  ;;  %3469 = vmatpush.bf16.msra.mxu1 %v6179_v23 }
 0xb36   :  { %3431 = vmatpush.bf16.msra.mxu2 %v6130_v40  ;;  %3444 = vmatpush.bf16.msra.mxu3 %v6132_v43 }
 0xb37   :  { %3457 = vmatpush.bf16.msra.mxu0 %v6217_v41  ;;  %3470 = vmatpush.bf16.msra.mxu1 %v6182_v48 }
 0xb96   :  { %v3211_v12 = vpop.f32.mrf.mxu0  ;;  %v3224_v49 = vpop.f32.mrf.mxu1 }
 0xb97   :  { %v3212_v25 = vadd.f32 %v3211_v12, %v3170_v53  ;;  %v3225_v53 = vadd.f32 %v3224_v49, %v3171_v54 }
 0xb99   :  { %v4558_v11 = vmul.f32 -1.442695, %v3212_v25 }
 0xb9b   :  { %4954 = vpow2.f32 %v4558_v11  ;;  %v3185_v18 = vpop.f32.mrf.mxu2  ;;  %v3198_v0 = vpop.f32.mrf.mxu3 }
 0xb9c   :  { %v3186_v45 = vadd.f32 %v3185_v18, %v3168_v26  ;;  %v3199_v60 = vadd.f32 %v3198_v0, %v3169_v21 }
 0xb9e   :  { %v4556_v59 = vmul.f32 -1.442695, %v3186_v45  ;;  %v4557_v36 = vmul.f32 -1.442695, %v3199_v60  ;;  %v3213_v31 = vpop.f32.mrf.mxu0  ;;  %v3226_v33 = vpop.f32.mrf.mxu1 }
 0xba0   :  { %4956 = vpow2.f32 %v4556_v59 }
 0xba1   :  { %v4955_v29 = vpop.eup %4954  ;;  %4958 = vpow2.f32 %v4557_v36 }
 0xba2   :  { %v3239_v19 = vadd.f32 1.0, %v4955_v29 }
 0xba3   :  { %v3187_v35 = vpop.f32.mrf.mxu2  ;;  %v3200_v4 = vpop.f32.mrf.mxu3 }
 0xba4   :  { %4960 = vrcp.f32 %v3239_v19  ;;  %vm3275_vm1 = vweird.f32 %v3239_v19 }
 0xba6   :  { %v4957_v20 = vpop.eup %4956 }
 0xba7   :  { %v4959_v32 = vpop.eup %4958  ;;  %v3237_v57 = vadd.f32 1.0, %v4957_v20 }
 0xba8   :  { %v3238_v28 = vadd.f32 1.0, %v4959_v32 }
 0xba9   :  { %4962 = vrcp.f32 %v3237_v57  ;;  %v3251_v18 = vand.u32 2147483648, %v3237_v57  ;;  %v3249_v60 = vand.u32 2147483647, %v3237_v57  ;;  %vm3245_vm8 = vweird.f32 %v3237_v57 }
 0xbaa   :  { %4964 = vrcp.f32 %v3238_v28  ;;  %v4961_v62 = vpop.eup %4960  ;;  %v3266_v59 = vand.u32 2147483648, %v3238_v28  ;;  %v3264_v31 = vand.u32 2147483647, %v3238_v28  ;;  %vm3260_vm10 = vweird.f32 %v3238_v28 }
 0xbab   :  { %v3271_v26 = vmul.f32 %v4961_v62, %v3239_v19  ;;  %4966 = vtanh.f32 %v3225_v53  ;;  %v3252_v49 = vor.u32 1.1754944e-38, %v3251_v18  ;;  %vm3250_vm11 = vcmp.eq.f32.partialorder %v3249_v60, 8.507059e+37 }
 0xbac   :  { %v3267_v20 = vor.u32 1.1754944e-38, %v3266_v59  ;;  %vm3265_vm13 = vcmp.eq.f32.partialorder %v3264_v31, 8.507059e+37  ;;  %vm3276_vm0 = vweird.f32 %v4961_v62  ;;  %v3281_v18 = vand.u32 2147483648, %v3239_v19 }
 0xbad   :  { %v3272_v33 = vsub.f32 1.0, %v3271_v26  ;;  %vm3277_vm14 = vmor %vm3275_vm1, %vm3276_vm0 }
 0xbaf   :  { %v4963_v2 = vpop.eup %4962 }
 0xbb0   :  { %v4965_v12 = vpop.eup %4964  ;;  %v3241_v25 = vmul.f32 %v4963_v2, %v3237_v57  ;;  %vm3246_vm6 = vweird.f32 %v4963_v2 }
 0xbb1   :  { %v3256_v11 = vmul.f32 %v4965_v12, %v3238_v28  ;;  %vm3261_vm7 = vweird.f32 %v4965_v12  ;;  %vm3247_vm9 = vmor %vm3245_vm8, %vm3246_vm6  ;;  %v4967_v32 = vpop.eup %4966  ;;  %v3279_v28 = vand.u32 2147483647, %v3239_v19 }
 0xbb2   :  { %v3242_v21 = vsub.f32 1.0, %v3241_v25  ;;  %vm3262_vm12 = vmor %vm3260_vm10, %vm3261_vm7  ;;  %v3273_v25 = vmul.f32 %v4961_v62, %v3272_v33 }
 0xbb3   :  { %v3257_v0 = vsub.f32 1.0, %v3256_v11  ;;  %vm3280_vm15 = vcmp.eq.f32.partialorder %v3279_v28, 8.507059e+37 }
 0xbb4   :  { %v3243_v45 = vmul.f32 %v4963_v2, %v3242_v21  ;;  %v3274_v57 = vadd.f32 %v4961_v62, %v3273_v25 }
 0xbb5   :  { %v3258_v36 = vmul.f32 %v4965_v12, %v3257_v0 }
 0xbb6   :  { %v3244_v29 = vadd.f32 %v4963_v2, %v3243_v45  ;;  %v3282_v45 = vor.u32 1.1754944e-38, %v3281_v18 }
 0xbb7   :  { %v3259_v35 = vadd.f32 %v4965_v12, %v3258_v36 }
 0xbb8   :  { %v3248_v4 = vsel %vm3247_vm9, %v4963_v2, %v3244_v29  ;;  %v3278_v2 = vsel %vm3277_vm14, %v4961_v62, %v3274_v57  ;;  %v3292_v29 = vrot.slane %v6242_v24, 2 }
 0xbb9   :  { %v3253_v54 = vsel %vm3250_vm11, %v3252_v49, %v3248_v4  ;;  %v3263_v53 = vsel %vm3262_vm12, %v4965_v12, %v3259_v35  ;;  %v3283_v60 = vsel %vm3280_vm15, %v3282_v45, %v3278_v2  ;;  %v3293_v49 = vrot.slane %v6244_v3, 2 }
 0xbba   :  { %v3287_v11 = vmul.f32 %v4967_v32, %v3253_v54  ;;  %v3268_v21 = vsel %vm3265_vm13, %v3267_v20, %v3263_v53 }
 0xbbb   :  { %v3286_v0 = vmul.f32 %v3268_v21, %v6267_v5  ;;  %v3294_v5 = vrot.slane %v6273_v9, 2 }
 0xbbd   :  { %v6314_v26 = vadd.f32 %v3287_v11, %v3286_v0 }
 0xbbf   :  { %4968 = vtanh.f32 %v6314_v26 }
 0xbc5   :  { %v4969_v12 = vpop.eup %4968 }
 0xbc6   :  { %v3290_v59 = vmul.f32 %v4969_v12, %v3283_v60  ;;  %v3295_v60 = vrot.slane %v6264_v39, 2 }
 0xbc8   :  { %v3291_v36 = vpack.c.bf16 %v3290_v59, %v3290_v59 }
 0xbca   :  { %3308 = vmatmul.bf16.vlgmr.msrb.gmra.mxu2 %v3291_v36  ;;  %3321 = vmatmul.bf16.vlgmr.msrb.gmra.mxu3 %v3291_v36 }
 0xbcb   :  { %3334 = vmatmul.bf16.vlgmr.msrb.gmra.mxu0 %v3291_v36  ;;  %3347 = vmatmul.bf16.vlgmr.msrb.gmra.mxu1 %v3291_v36 }
 0xbcc   :  { %3548 = vmatpush.bf16.msrb.mxu2 %v6076_v56  ;;  %3561 = vmatpush.bf16.msrb.mxu3 %v6078_v8 }
 0xbcd   :  { %3574 = vmatpush.bf16.msrb.mxu0 %v6186_v17  ;;  %3587 = vmatpush.bf16.msrb.mxu1 %v6071_v30 }
 0xbd0   :  { %3549 = vmatpush.bf16.msrb.mxu2 %v6086_v34  ;;  %3562 = vmatpush.bf16.msrb.mxu3 %v6088_v63 }
 0xbd1   :  { %3575 = vmatpush.bf16.msrb.mxu0 %v6191_v46  ;;  %3588 = vmatpush.bf16.msrb.mxu1 %v6090_v37 }
 0xbd4   :  { %3550 = vmatpush.bf16.msrb.mxu2 %v6097_v50  ;;  %3563 = vmatpush.bf16.msrb.mxu3 %v6099_v42 }
 0xbd5   :  { %3576 = vmatpush.bf16.msrb.mxu0 %v6195_v14  ;;  %3589 = vmatpush.bf16.msrb.mxu1 %v6093_v51 }
 0xbd8   :  { %3551 = vmatpush.bf16.msrb.mxu2 %v6106_v58  ;;  %3564 = vmatpush.bf16.msrb.mxu3 %v6108_v6 }
 0xbd9   :  { %3577 = vmatpush.bf16.msrb.mxu0 %v6201_v55  ;;  %3590 = vmatpush.bf16.msrb.mxu1 %v6164_v52 }
 0xbdc   :  { %3552 = vmatpush.bf16.msrb.mxu2 %v6112_v44  ;;  %3565 = vmatpush.bf16.msrb.mxu3 %v6114_v16 }
 0xbdd   :  { %3578 = vmatpush.bf16.msrb.mxu0 %v6205_v61  ;;  %3591 = vmatpush.bf16.msrb.mxu1 %v6168_v1 }
 0xbe0   :  { %3553 = vmatpush.bf16.msrb.mxu2 %v6118_v10  ;;  %3566 = vmatpush.bf16.msrb.mxu3 %v6120_v15 }
 0xbe1   :  { %3579 = vmatpush.bf16.msrb.mxu0 %v6209_v27  ;;  %3592 = vmatpush.bf16.msrb.mxu1 %v6174_v47 }
 0xbe4   :  { %3554 = vmatpush.bf16.msrb.mxu2 %v6124_v13  ;;  %3567 = vmatpush.bf16.msrb.mxu3 %v6126_v22 }
 0xbe5   :  { %3580 = vmatpush.bf16.msrb.mxu0 %v6214_v38  ;;  %3593 = vmatpush.bf16.msrb.mxu1 %v6179_v23 }
 0xbe8   :  { %3555 = vmatpush.bf16.msrb.mxu2 %v6130_v40  ;;  %3568 = vmatpush.bf16.msrb.mxu3 %v6132_v43 }
 0xbe9   :  { %3581 = vmatpush.bf16.msrb.mxu0 %v6217_v41  ;;  %3594 = vmatpush.bf16.msrb.mxu1 %v6182_v48 }
 0xc48   :  { %v3335_v19 = vpop.f32.mrf.mxu0  ;;  %v3348_v62 = vpop.f32.mrf.mxu1 }
 0xc49   :  { %v3336_v31 = vadd.f32 %v3335_v19, %v3294_v5  ;;  %v3349_v5 = vadd.f32 %v3348_v62, %v3295_v60 }
 0xc4b   :  { %v4561_v33 = vmul.f32 -1.442695, %v3336_v31 }
 0xc4d   :  { %4970 = vpow2.f32 %v4561_v33  ;;  %v3309_v35 = vpop.f32.mrf.mxu2  ;;  %v3322_v4 = vpop.f32.mrf.mxu3 }
 0xc4e   :  { %v3310_v20 = vadd.f32 %v3309_v35, %v3292_v29  ;;  %v3323_v32 = vadd.f32 %v3322_v4, %v3293_v49 }
 0xc50   :  { %v4559_v54 = vmul.f32 -1.442695, %v3310_v20  ;;  %v4560_v53 = vmul.f32 -1.442695, %v3323_v32  ;;  %v3337_v25 = vpop.f32.mrf.mxu0  ;;  %v3350_v11 = vpop.f32.mrf.mxu1 }
 0xc52   :  { %4972 = vpow2.f32 %v4559_v54 }
 0xc53   :  { %v4971_v21 = vpop.eup %4970  ;;  %4974 = vpow2.f32 %v4560_v53 }
 0xc54   :  { %v3363_v18 = vadd.f32 1.0, %v4971_v21 }
 0xc55   :  { %v3311_v0 = vpop.f32.mrf.mxu2  ;;  %v3324_v57 = vpop.f32.mrf.mxu3 }
 0xc56   :  { %4976 = vrcp.f32 %v3363_v18  ;;  %vm3399_vm11 = vweird.f32 %v3363_v18 }
 0xc58   :  { %v4973_v28 = vpop.eup %4972 }
 0xc59   :  { %v4975_v2 = vpop.eup %4974  ;;  %v3361_v45 = vadd.f32 1.0, %v4973_v28 }
 0xc5a   :  { %v3362_v12 = vadd.f32 1.0, %v4975_v2 }
 0xc5b   :  { %4978 = vrcp.f32 %v3361_v45  ;;  %v3375_v35 = vand.u32 2147483648, %v3361_v45  ;;  %v3373_v32 = vand.u32 2147483647, %v3361_v45  ;;  %vm3369_vm4 = vweird.f32 %v3361_v45 }
 0xc5c   :  { %4980 = vrcp.f32 %v3362_v12  ;;  %v4977_v59 = vpop.eup %4976  ;;  %v3390_v54 = vand.u32 2147483648, %v3362_v12  ;;  %v3388_v25 = vand.u32 2147483647, %v3362_v12  ;;  %vm3384_vm6 = vweird.f32 %v3362_v12 }
 0xc5d   :  { %v3395_v29 = vmul.f32 %v4977_v59, %v3363_v18  ;;  %4982 = vtanh.f32 %v3349_v5  ;;  %v3376_v62 = vor.u32 1.1754944e-38, %v3375_v35  ;;  %vm3374_vm7 = vcmp.eq.f32.partialorder %v3373_v32, 8.507059e+37 }
 0xc5e   :  { %v3391_v28 = vor.u32 1.1754944e-38, %v3390_v54  ;;  %vm3389_vm9 = vcmp.eq.f32.partialorder %v3388_v25, 8.507059e+37  ;;  %vm3400_vm10 = vweird.f32 %v4977_v59  ;;  %v3405_v35 = vand.u32 2147483648, %v3363_v18 }
 0xc5f   :  { %v3396_v11 = vsub.f32 1.0, %v3395_v29  ;;  %vm3401_vm12 = vmor %vm3399_vm11, %vm3400_vm10 }
 0xc61   :  { %v4979_v36 = vpop.eup %4978 }
 0xc62   :  { %v4981_v19 = vpop.eup %4980  ;;  %v3365_v31 = vmul.f32 %v4979_v36, %v3361_v45  ;;  %vm3370_vm2 = vweird.f32 %v4979_v36 }
 0xc63   :  { %v3380_v33 = vmul.f32 %v4981_v19, %v3362_v12  ;;  %vm3385_vm3 = vweird.f32 %v4981_v19  ;;  %vm3371_vm5 = vmor %vm3369_vm4, %vm3370_vm2  ;;  %v4983_v2 = vpop.eup %4982  ;;  %v3403_v12 = vand.u32 2147483647, %v3363_v18 }
 0xc64   :  { %v3366_v49 = vsub.f32 1.0, %v3365_v31  ;;  %vm3386_vm8 = vmor %vm3384_vm6, %vm3385_vm3  ;;  %v3397_v31 = vmul.f32 %v4977_v59, %v3396_v11 }
 0xc65   :  { %v3381_v4 = vsub.f32 1.0, %v3380_v33  ;;  %vm3404_vm13 = vcmp.eq.f32.partialorder %v3403_v12, 8.507059e+37 }
 0xc66   :  { %v3367_v20 = vmul.f32 %v4979_v36, %v3366_v49  ;;  %v3398_v45 = vadd.f32 %v4977_v59, %v3397_v31 }
 0xc67   :  { %v3382_v53 = vmul.f32 %v4981_v19, %v3381_v4 }
 0xc68   :  { %v3368_v21 = vadd.f32 %v4979_v36, %v3367_v20  ;;  %v3406_v20 = vor.u32 1.1754944e-38, %v3405_v35 }
 0xc69   :  { %v3383_v0 = vadd.f32 %v4981_v19, %v3382_v53 }
 0xc6a   :  { %v3372_v57 = vsel %vm3371_vm5, %v4979_v36, %v3368_v21  ;;  %v3402_v36 = vsel %vm3401_vm12, %v4977_v59, %v3398_v45  ;;  %v3416_v21 = vrot.slane %v6242_v24, 3 }
 0xc6b   :  { %v3377_v60 = vsel %vm3374_vm7, %v3376_v62, %v3372_v57  ;;  %v3387_v5 = vsel %vm3386_vm8, %v4981_v19, %v3383_v0  ;;  %v3407_v32 = vsel %vm3404_vm13, %v3406_v20, %v3402_v36  ;;  %v3417_v62 = vrot.slane %v6244_v3, 3 }
 0xc6c   :  { %v3411_v33 = vmul.f32 %v4983_v2, %v3377_v60  ;;  %v3392_v49 = vsel %vm3389_vm9, %v3391_v28, %v3387_v5 }
 0xc6d   :  { %v3410_v4 = vmul.f32 %v3392_v49, %v6314_v26  ;;  %v3418_v26 = vrot.slane %v6273_v9, 3 }
 0xc6f   :  { %v6354_v29 = vadd.f32 %v3411_v33, %v3410_v4 }
 0xc71   :  { %4984 = vtanh.f32 %v6354_v29 }
 0xc77   :  { %v4985_v19 = vpop.eup %4984 }
 0xc78   :  { %v3414_v54 = vmul.f32 %v4985_v19, %v3407_v32  ;;  %v3419_v32 = vrot.slane %v6264_v39, 3 }
 0xc7a   :  { %v3415_v53 = vpack.c.bf16 %v3414_v54, %v3414_v54 }
 0xc7c   :  { %3432 = vmatmul.bf16.vlgmr.msra.gmra.mxu2 %v3415_v53  ;;  %3445 = vmatmul.bf16.vlgmr.msra.gmra.mxu3 %v3415_v53 }
 0xc7d   :  { %3458 = vmatmul.bf16.vlgmr.msra.gmra.mxu0 %v3415_v53  ;;  %3471 = vmatmul.bf16.vlgmr.msra.gmra.mxu1 %v3415_v53 }
 0xc7e   :  { %3672 = vmatpush.bf16.msra.mxu2 %v6076_v56  ;;  %3685 = vmatpush.bf16.msra.mxu3 %v6078_v8 }
 0xc7f   :  { %3698 = vmatpush.bf16.msra.mxu0 %v6186_v17  ;;  %3711 = vmatpush.bf16.msra.mxu1 %v6071_v30 }
 0xc82   :  { %3673 = vmatpush.bf16.msra.mxu2 %v6086_v34  ;;  %3686 = vmatpush.bf16.msra.mxu3 %v6088_v63 }
 0xc83   :  { %3699 = vmatpush.bf16.msra.mxu0 %v6191_v46  ;;  %3712 = vmatpush.bf16.msra.mxu1 %v6090_v37 }
 0xc86   :  { %3674 = vmatpush.bf16.msra.mxu2 %v6097_v50  ;;  %3687 = vmatpush.bf16.msra.mxu3 %v6099_v42 }
 0xc87   :  { %3700 = vmatpush.bf16.msra.mxu0 %v6195_v14  ;;  %3713 = vmatpush.bf16.msra.mxu1 %v6093_v51 }
 0xc8a   :  { %3675 = vmatpush.bf16.msra.mxu2 %v6106_v58  ;;  %3688 = vmatpush.bf16.msra.mxu3 %v6108_v6 }
 0xc8b   :  { %3701 = vmatpush.bf16.msra.mxu0 %v6201_v55  ;;  %3714 = vmatpush.bf16.msra.mxu1 %v6164_v52 }
 0xc8e   :  { %3676 = vmatpush.bf16.msra.mxu2 %v6112_v44  ;;  %3689 = vmatpush.bf16.msra.mxu3 %v6114_v16 }
 0xc8f   :  { %3702 = vmatpush.bf16.msra.mxu0 %v6205_v61  ;;  %3715 = vmatpush.bf16.msra.mxu1 %v6168_v1 }
 0xc92   :  { %3677 = vmatpush.bf16.msra.mxu2 %v6118_v10  ;;  %3690 = vmatpush.bf16.msra.mxu3 %v6120_v15 }
 0xc93   :  { %3703 = vmatpush.bf16.msra.mxu0 %v6209_v27  ;;  %3716 = vmatpush.bf16.msra.mxu1 %v6174_v47 }
 0xc96   :  { %3678 = vmatpush.bf16.msra.mxu2 %v6124_v13  ;;  %3691 = vmatpush.bf16.msra.mxu3 %v6126_v22 }
 0xc97   :  { %3704 = vmatpush.bf16.msra.mxu0 %v6214_v38  ;;  %3717 = vmatpush.bf16.msra.mxu1 %v6179_v23 }
 0xc9a   :  { %3679 = vmatpush.bf16.msra.mxu2 %v6130_v40  ;;  %3692 = vmatpush.bf16.msra.mxu3 %v6132_v43 }
 0xc9b   :  { %3705 = vmatpush.bf16.msra.mxu0 %v6217_v41  ;;  %3718 = vmatpush.bf16.msra.mxu1 %v6182_v48 }
 0xcfa   :  { %v3459_v18 = vpop.f32.mrf.mxu0  ;;  %v3472_v59 = vpop.f32.mrf.mxu1 }
 0xcfb   :  { %v3460_v25 = vadd.f32 %v3459_v18, %v3418_v26  ;;  %v3473_v26 = vadd.f32 %v3472_v59, %v3419_v32 }
 0xcfd   :  { %v4564_v11 = vmul.f32 -1.442695, %v3460_v25 }
 0xcff   :  { %4986 = vpow2.f32 %v4564_v11  ;;  %v3433_v0 = vpop.f32.mrf.mxu2  ;;  %v3446_v57 = vpop.f32.mrf.mxu3 }
 0xd00   :  { %v3434_v28 = vadd.f32 %v3433_v0, %v3416_v21  ;;  %v3447_v2 = vadd.f32 %v3446_v57, %v3417_v62 }
 0xd02   :  { %v4562_v60 = vmul.f32 -1.442695, %v3434_v28  ;;  %v4563_v5 = vmul.f32 -1.442695, %v3447_v2  ;;  %v3461_v31 = vpop.f32.mrf.mxu0  ;;  %v3474_v33 = vpop.f32.mrf.mxu1 }
 0xd04   :  { %4988 = vpow2.f32 %v4562_v60 }
 0xd05   :  { %v4987_v49 = vpop.eup %4986  ;;  %4990 = vpow2.f32 %v4563_v5 }
 0xd06   :  { %v3487_v35 = vadd.f32 1.0, %v4987_v49 }
 0xd07   :  { %v3435_v4 = vpop.f32.mrf.mxu2  ;;  %v3448_v45 = vpop.f32.mrf.mxu3 }
 0xd08   :  { %4992 = vrcp.f32 %v3487_v35  ;;  %vm3523_vm7 = vweird.f32 %v3487_v35 }
 0xd0a   :  { %v4989_v12 = vpop.eup %4988 }
 0xd0b   :  { %v4991_v36 = vpop.eup %4990  ;;  %v3485_v20 = vadd.f32 1.0, %v4989_v12 }
 0xd0c   :  { %v3486_v19 = vadd.f32 1.0, %v4991_v36 }
 0xd0d   :  { %4994 = vrcp.f32 %v3485_v20  ;;  %v3499_v0 = vand.u32 2147483648, %v3485_v20  ;;  %v3497_v2 = vand.u32 2147483647, %v3485_v20  ;;  %vm3493_vm14 = vweird.f32 %v3485_v20 }
 0xd0e   :  { %4996 = vrcp.f32 %v3486_v19  ;;  %v4993_v54 = vpop.eup %4992  ;;  %v3514_v60 = vand.u32 2147483648, %v3486_v19  ;;  %v3512_v31 = vand.u32 2147483647, %v3486_v19  ;;  %vm3508_vm2 = vweird.f32 %v3486_v19 }
 0xd0f   :  { %v3519_v21 = vmul.f32 %v4993_v54, %v3487_v35  ;;  %4998 = vtanh.f32 %v3473_v26  ;;  %v3500_v59 = vor.u32 1.1754944e-38, %v3499_v0  ;;  %vm3498_vm3 = vcmp.eq.f32.partialorder %v3497_v2, 8.507059e+37 }
 0xd10   :  { %v3515_v12 = vor.u32 1.1754944e-38, %v3514_v60  ;;  %vm3513_vm5 = vcmp.eq.f32.partialorder %v3512_v31, 8.507059e+37  ;;  %vm3524_vm6 = vweird.f32 %v4993_v54  ;;  %v3529_v0 = vand.u32 2147483648, %v3487_v35 }
 0xd11   :  { %v3520_v33 = vsub.f32 1.0, %v3519_v21  ;;  %vm3525_vm8 = vmor %vm3523_vm7, %vm3524_vm6 }
 0xd13   :  { %v4995_v53 = vpop.eup %4994 }
 0xd14   :  { %v4997_v18 = vpop.eup %4996  ;;  %v3489_v25 = vmul.f32 %v4995_v53, %v3485_v20  ;;  %vm3494_vm0 = vweird.f32 %v4995_v53 }
 0xd15   :  { %v3504_v11 = vmul.f32 %v4997_v18, %v3486_v19  ;;  %vm3509_vm1 = vweird.f32 %v4997_v18  ;;  %vm3495_vm15 = vmor %vm3493_vm14, %vm3494_vm0  ;;  %v4999_v36 = vpop.eup %4998  ;;  %v3527_v19 = vand.u32 2147483647, %v3487_v35 }
 0xd16   :  { %v3490_v62 = vsub.f32 1.0, %v3489_v25  ;;  %vm3510_vm4 = vmor %vm3508_vm2, %vm3509_vm1  ;;  %v3521_v25 = vmul.f32 %v4993_v54, %v3520_v33 }
 0xd17   :  { %v3505_v57 = vsub.f32 1.0, %v3504_v11  ;;  %vm3528_vm9 = vcmp.eq.f32.partialorder %v3527_v19, 8.507059e+37 }
 0xd18   :  { %v3491_v28 = vmul.f32 %v4995_v53, %v3490_v62  ;;  %v3522_v20 = vadd.f32 %v4993_v54, %v3521_v25 }
 0xd19   :  { %v3506_v5 = vmul.f32 %v4997_v18, %v3505_v57 }
 0xd1a   :  { %v3492_v49 = vadd.f32 %v4995_v53, %v3491_v28  ;;  %v3530_v28 = vor.u32 1.1754944e-38, %v3529_v0 }
 0xd1b   :  { %v3507_v4 = vadd.f32 %v4997_v18, %v3506_v5 }
 0xd1c   :  { %v3496_v45 = vsel %vm3495_vm15, %v4995_v53, %v3492_v49  ;;  %v3526_v53 = vsel %vm3525_vm8, %v4993_v54, %v3522_v20  ;;  %v3540_v49 = vrot.slane %v6242_v24, 4 }
 0xd1d   :  { %v3501_v32 = vsel %vm3498_vm3, %v3500_v59, %v3496_v45  ;;  %v3511_v26 = vsel %vm3510_vm4, %v4997_v18, %v3507_v4  ;;  %v3531_v2 = vsel %vm3528_vm9, %v3530_v28, %v3526_v53  ;;  %v3541_v59 = vrot.slane %v6244_v3, 4 }
 0xd1e   :  { %v3535_v11 = vmul.f32 %v4999_v36, %v3501_v32  ;;  %v3516_v62 = vsel %vm3513_vm5, %v3515_v12, %v3511_v26 }
 0xd1f   :  { %v3534_v57 = vmul.f32 %v3516_v62, %v6354_v29  ;;  %v3542_v29 = vrot.slane %v6273_v9, 4 }
 0xd21   :  { %v6394_v21 = vadd.f32 %v3535_v11, %v3534_v57 }
 0xd23   :  { %5000 = vtanh.f32 %v6394_v21 }
 0xd29   :  { %v5001_v18 = vpop.eup %5000 }
 0xd2a   :  { %v3538_v60 = vmul.f32 %v5001_v18, %v3531_v2  ;;  %v3543_v2 = vrot.slane %v6264_v39, 4 }
 0xd2c   :  { %v3539_v5 = vpack.c.bf16 %v3538_v60, %v3538_v60 }
 0xd2e   :  { %3556 = vmatmul.bf16.vlgmr.msrb.gmra.mxu2 %v3539_v5  ;;  %3569 = vmatmul.bf16.vlgmr.msrb.gmra.mxu3 %v3539_v5 }
 0xd2f   :  { %3582 = vmatmul.bf16.vlgmr.msrb.gmra.mxu0 %v3539_v5  ;;  %3595 = vmatmul.bf16.vlgmr.msrb.gmra.mxu1 %v3539_v5 }
 0xd30   :  { %3796 = vmatpush.bf16.msrb.mxu2 %v6076_v56  ;;  %3809 = vmatpush.bf16.msrb.mxu3 %v6078_v8 }
 0xd31   :  { %3822 = vmatpush.bf16.msrb.mxu0 %v6186_v17  ;;  %3835 = vmatpush.bf16.msrb.mxu1 %v6071_v30 }
 0xd34   :  { %3797 = vmatpush.bf16.msrb.mxu2 %v6086_v34  ;;  %3810 = vmatpush.bf16.msrb.mxu3 %v6088_v63 }
 0xd35   :  { %3823 = vmatpush.bf16.msrb.mxu0 %v6191_v46  ;;  %3836 = vmatpush.bf16.msrb.mxu1 %v6090_v37 }
 0xd38   :  { %3798 = vmatpush.bf16.msrb.mxu2 %v6097_v50  ;;  %3811 = vmatpush.bf16.msrb.mxu3 %v6099_v42 }
 0xd39   :  { %3824 = vmatpush.bf16.msrb.mxu0 %v6195_v14  ;;  %3837 = vmatpush.bf16.msrb.mxu1 %v6093_v51 }
 0xd3c   :  { %3799 = vmatpush.bf16.msrb.mxu2 %v6106_v58  ;;  %3812 = vmatpush.bf16.msrb.mxu3 %v6108_v6 }
 0xd3d   :  { %3825 = vmatpush.bf16.msrb.mxu0 %v6201_v55  ;;  %3838 = vmatpush.bf16.msrb.mxu1 %v6164_v52 }
 0xd40   :  { %3800 = vmatpush.bf16.msrb.mxu2 %v6112_v44  ;;  %3813 = vmatpush.bf16.msrb.mxu3 %v6114_v16 }
 0xd41   :  { %3826 = vmatpush.bf16.msrb.mxu0 %v6205_v61  ;;  %3839 = vmatpush.bf16.msrb.mxu1 %v6168_v1 }
 0xd44   :  { %3801 = vmatpush.bf16.msrb.mxu2 %v6118_v10  ;;  %3814 = vmatpush.bf16.msrb.mxu3 %v6120_v15 }
 0xd45   :  { %3827 = vmatpush.bf16.msrb.mxu0 %v6209_v27  ;;  %3840 = vmatpush.bf16.msrb.mxu1 %v6174_v47 }
 0xd48   :  { %3802 = vmatpush.bf16.msrb.mxu2 %v6124_v13  ;;  %3815 = vmatpush.bf16.msrb.mxu3 %v6126_v22 }
 0xd49   :  { %3828 = vmatpush.bf16.msrb.mxu0 %v6214_v38  ;;  %3841 = vmatpush.bf16.msrb.mxu1 %v6179_v23 }
 0xd4c   :  { %3803 = vmatpush.bf16.msrb.mxu2 %v6130_v40  ;;  %3816 = vmatpush.bf16.msrb.mxu3 %v6132_v43 }
 0xd4d   :  { %3829 = vmatpush.bf16.msrb.mxu0 %v6217_v41  ;;  %3842 = vmatpush.bf16.msrb.mxu1 %v6182_v48 }
 0xdac   :  { %v3583_v35 = vpop.f32.mrf.mxu0  ;;  %v3596_v54 = vpop.f32.mrf.mxu1 }
 0xdad   :  { %v3584_v31 = vadd.f32 %v3583_v35, %v3542_v29  ;;  %v3597_v29 = vadd.f32 %v3596_v54, %v3543_v2 }
 0xdaf   :  { %v4567_v33 = vmul.f32 -1.442695, %v3584_v31 }
 0xdb1   :  { %5002 = vpow2.f32 %v4567_v33  ;;  %v3557_v4 = vpop.f32.mrf.mxu2  ;;  %v3570_v45 = vpop.f32.mrf.mxu3 }
 0xdb2   :  { %v3558_v12 = vadd.f32 %v3557_v4, %v3540_v49  ;;  %v3571_v36 = vadd.f32 %v3570_v45, %v3541_v59 }
 0xdb4   :  { %v4565_v32 = vmul.f32 -1.442695, %v3558_v12  ;;  %v4566_v26 = vmul.f32 -1.442695, %v3571_v36  ;;  %v3585_v25 = vpop.f32.mrf.mxu0  ;;  %v3598_v11 = vpop.f32.mrf.mxu1 }
 0xdb6   :  { %5004 = vpow2.f32 %v4565_v32 }
 0xdb7   :  { %v5003_v62 = vpop.eup %5002  ;;  %5006 = vpow2.f32 %v4566_v26 }
 0xdb8   :  { %v3611_v0 = vadd.f32 1.0, %v5003_v62 }
 0xdb9   :  { %v3559_v57 = vpop.f32.mrf.mxu2  ;;  %v3572_v20 = vpop.f32.mrf.mxu3 }
 0xdba   :  { %5008 = vrcp.f32 %v3611_v0  ;;  %vm3647_vm3 = vweird.f32 %v3611_v0 }
 0xdbc   :  { %v5005_v19 = vpop.eup %5004 }
 0xdbd   :  { %v5007_v53 = vpop.eup %5006  ;;  %v3609_v28 = vadd.f32 1.0, %v5005_v19 }
 0xdbe   :  { %v3610_v18 = vadd.f32 1.0, %v5007_v53 }
 0xdbf   :  { %5010 = vrcp.f32 %v3609_v28  ;;  %v3623_v4 = vand.u32 2147483648, %v3609_v28  ;;  %v3621_v36 = vand.u32 2147483647, %v3609_v28  ;;  %vm3617_vm12 = vweird.f32 %v3609_v28 }
 0xdc0   :  { %5012 = vrcp.f32 %v3610_v18  ;;  %v5009_v60 = vpop.eup %5008  ;;  %v3638_v32 = vand.u32 2147483648, %v3610_v18  ;;  %v3636_v25 = vand.u32 2147483647, %v3610_v18  ;;  %vm3632_vm0 = vweird.f32 %v3610_v18 }
 0xdc1   :  { %v3643_v49 = vmul.f32 %v5009_v60, %v3611_v0  ;;  %5014 = vtanh.f32 %v3597_v29  ;;  %v3624_v54 = vor.u32 1.1754944e-38, %v3623_v4  ;;  %vm3622_vm1 = vcmp.eq.f32.partialorder %v3621_v36, 8.507059e+37 }
 0xdc2   :  { %v3639_v19 = vor.u32 1.1754944e-38, %v3638_v32  ;;  %vm3637_vm15 = vcmp.eq.f32.partialorder %v3636_v25, 8.507059e+37  ;;  %vm3648_vm2 = vweird.f32 %v5009_v60  ;;  %v3653_v4 = vand.u32 2147483648, %v3611_v0 }
 0xdc3   :  { %v3644_v11 = vsub.f32 1.0, %v3643_v49  ;;  %vm3649_vm4 = vmor %vm3647_vm3, %vm3648_vm2 }
 0xdc5   :  { %v5011_v5 = vpop.eup %5010 }
 0xdc6   :  { %v5013_v35 = vpop.eup %5012  ;;  %v3613_v31 = vmul.f32 %v5011_v5, %v3609_v28  ;;  %vm3618_vm10 = vweird.f32 %v5011_v5 }
 0xdc7   :  { %v3628_v33 = vmul.f32 %v5013_v35, %v3610_v18  ;;  %vm3633_vm11 = vweird.f32 %v5013_v35  ;;  %vm3619_vm13 = vmor %vm3617_vm12, %vm3618_vm10  ;;  %v5015_v53 = vpop.eup %5014  ;;  %v3651_v18 = vand.u32 2147483647, %v3611_v0 }
 0xdc8   :  { %v3614_v59 = vsub.f32 1.0, %v3613_v31  ;;  %vm3634_vm14 = vmor %vm3632_vm0, %vm3633_vm11  ;;  %v3645_v31 = vmul.f32 %v5009_v60, %v3644_v11 }
 0xdc9   :  { %v3629_v45 = vsub.f32 1.0, %v3628_v33  ;;  %vm3652_vm5 = vcmp.eq.f32.partialorder %v3651_v18, 8.507059e+37 }
 0xdca   :  { %v3615_v12 = vmul.f32 %v5011_v5, %v3614_v59  ;;  %v3646_v28 = vadd.f32 %v5009_v60, %v3645_v31 }
 0xdcb   :  { %v3630_v26 = vmul.f32 %v5013_v35, %v3629_v45 }
 0xdcc   :  { %v3616_v62 = vadd.f32 %v5011_v5, %v3615_v12  ;;  %v3654_v12 = vor.u32 1.1754944e-38, %v3653_v4 }
 0xdcd   :  { %v3631_v57 = vadd.f32 %v5013_v35, %v3630_v26 }
 0xdce   :  { %v3620_v20 = vsel %vm3619_vm13, %v5011_v5, %v3616_v62  ;;  %v3650_v5 = vsel %vm3649_vm4, %v5009_v60, %v3646_v28 }
 0xdcf   :  { %v3625_v2 = vsel %vm3622_vm1, %v3624_v54, %v3620_v20  ;;  %v3635_v29 = vsel %vm3634_vm14, %v5013_v35, %v3631_v57  ;;  %v3655_v36 = vsel %vm3652_vm5, %v3654_v12, %v3650_v5 }
 0xdd0   :  { %v3659_v33 = vmul.f32 %v5015_v53, %v3625_v2  ;;  %v3640_v59 = vsel %vm3637_vm15, %v3639_v19, %v3635_v29 }
 0xdd1   :  { %v3658_v45 = vmul.f32 %v3640_v59, %v6394_v21 }
 0xdd3   :  { %v6434_v49 = vadd.f32 %v3659_v33, %v3658_v45 }
 0xdd5   :  { %5016 = vtanh.f32 %v6434_v49 }
 0xddb   :  { %v5017_v35 = vpop.eup %5016 }
 0xddc   :  { %v3662_v32 = vmul.f32 %v5017_v35, %v3655_v36 }
 0xdde   :  { %v3663_v26 = vpack.c.bf16 %v3662_v32, %v3662_v32 }
 0xde0   :  { %3680 = vmatmul.bf16.vlgmr.msra.gmra.mxu2 %v3663_v26  ;;  %3693 = vmatmul.bf16.vlgmr.msra.gmra.mxu3 %v3663_v26 }
 0xde1   :  { %3706 = vmatmul.bf16.vlgmr.msra.gmra.mxu0 %v3663_v26  ;;  %3719 = vmatmul.bf16.vlgmr.msra.gmra.mxu1 %v3663_v26 }
 0xde2   :  { %3920 = vmatpush.bf16.msra.mxu2 %v6076_v56  ;;  %3933 = vmatpush.bf16.msra.mxu3 %v6078_v8 }
 0xde3   :  { %3946 = vmatpush.bf16.msra.mxu0 %v6186_v17  ;;  %3959 = vmatpush.bf16.msra.mxu1 %v6071_v30  ;;  %v3666_v30 = vrot.slane %v6273_v9, 5 }
 0xde6   :  { %3921 = vmatpush.bf16.msra.mxu2 %v6086_v34  ;;  %3934 = vmatpush.bf16.msra.mxu3 %v6088_v63 }
 0xde7   :  { %3947 = vmatpush.bf16.msra.mxu0 %v6191_v46  ;;  %3960 = vmatpush.bf16.msra.mxu1 %v6090_v37  ;;  %v3664_v37 = vrot.slane %v6242_v24, 5 }
 0xdea   :  { %3922 = vmatpush.bf16.msra.mxu2 %v6097_v50  ;;  %3935 = vmatpush.bf16.msra.mxu3 %v6099_v42 }
 0xdeb   :  { %3948 = vmatpush.bf16.msra.mxu0 %v6195_v14  ;;  %3961 = vmatpush.bf16.msra.mxu1 %v6093_v51  ;;  %v3665_v51 = vrot.slane %v6244_v3, 5 }
 0xdee   :  { %3923 = vmatpush.bf16.msra.mxu2 %v6106_v58  ;;  %3936 = vmatpush.bf16.msra.mxu3 %v6108_v6 }
 0xdef   :  { %3949 = vmatpush.bf16.msra.mxu0 %v6201_v55  ;;  %3962 = vmatpush.bf16.msra.mxu1 %v6164_v52 }
 0xdf2   :  { %3924 = vmatpush.bf16.msra.mxu2 %v6112_v44  ;;  %3937 = vmatpush.bf16.msra.mxu3 %v6114_v16 }
 0xdf3   :  { %3950 = vmatpush.bf16.msra.mxu0 %v6205_v61  ;;  %3963 = vmatpush.bf16.msra.mxu1 %v6168_v1 }
 0xdf6   :  { %3925 = vmatpush.bf16.msra.mxu2 %v6118_v10  ;;  %3938 = vmatpush.bf16.msra.mxu3 %v6120_v15 }
 0xdf7   :  { %3951 = vmatpush.bf16.msra.mxu0 %v6209_v27  ;;  %3964 = vmatpush.bf16.msra.mxu1 %v6174_v47 }
 0xdfa   :  { %3926 = vmatpush.bf16.msra.mxu2 %v6124_v13  ;;  %3939 = vmatpush.bf16.msra.mxu3 %v6126_v22 }
 0xdfb   :  { %3952 = vmatpush.bf16.msra.mxu0 %v6214_v38  ;;  %3965 = vmatpush.bf16.msra.mxu1 %v6179_v23 }
 0xdfe   :  { %3927 = vmatpush.bf16.msra.mxu2 %v6130_v40  ;;  %3940 = vmatpush.bf16.msra.mxu3 %v6132_v43 }
 0xdff   :  { %3953 = vmatpush.bf16.msra.mxu0 %v6217_v41  ;;  %3966 = vmatpush.bf16.msra.mxu1 %v6182_v48  ;;  %v3667_v48 = vrot.slane %v6264_v39, 5 }
 0xe5e   :  { %v3707_v56 = vpop.f32.mrf.mxu0  ;;  %v3720_v8 = vpop.f32.mrf.mxu1 }
 0xe5f   :  { %v3708_v34 = vadd.f32 %v3707_v56, %v3666_v30  ;;  %v3721_v14 = vadd.f32 %v3720_v8, %v3667_v48 }
 0xe61   :  { %v4570_v63 = vmul.f32 -1.442695, %v3708_v34 }
 0xe63   :  { %5018 = vpow2.f32 %v4570_v63  ;;  %v3681_v50 = vpop.f32.mrf.mxu2  ;;  %v3694_v42 = vpop.f32.mrf.mxu3 }
 0xe64   :  { %v3682_v58 = vadd.f32 %v3681_v50, %v3664_v37  ;;  %v3695_v6 = vadd.f32 %v3694_v42, %v3665_v51  ;;  %v3788_v42 = vrot.slane %v6242_v24, 6 }
 0xe66   :  { %v4568_v44 = vmul.f32 -1.442695, %v3682_v58  ;;  %v4569_v16 = vmul.f32 -1.442695, %v3695_v6  ;;  %v3709_v10 = vpop.f32.mrf.mxu0  ;;  %v3722_v15 = vpop.f32.mrf.mxu1  ;;  %v3789_v58 = vrot.slane %v6244_v3, 6 }
 0xe68   :  { %5020 = vpow2.f32 %v4568_v44 }
 0xe69   :  { %v5019_v13 = vpop.eup %5018  ;;  %5022 = vpow2.f32 %v4569_v16 }
 0xe6a   :  { %v3735_v43 = vadd.f32 1.0, %v5019_v13 }
 0xe6b   :  { %v3683_v22 = vpop.f32.mrf.mxu2  ;;  %v3696_v40 = vpop.f32.mrf.mxu3 }
 0xe6c   :  { %5024 = vrcp.f32 %v3735_v43  ;;  %v3777_v35 = vand.u32 2147483648, %v3735_v43  ;;  %vm3771_vm1 = vweird.f32 %v3735_v43  ;;  %v3775_v36 = vand.u32 2147483647, %v3735_v43 }
 0xe6e   :  { %v5021_v52 = vpop.eup %5020  ;;  %v3778_v26 = vor.u32 1.1754944e-38, %v3777_v35  ;;  %vm3776_vm15 = vcmp.eq.f32.partialorder %v3775_v36, 8.507059e+37 }
 0xe6f   :  { %v5023_v1 = vpop.eup %5022  ;;  %v3733_v47 = vadd.f32 1.0, %v5021_v52 }
 0xe70   :  { %v3734_v23 = vadd.f32 1.0, %v5023_v1 }
 0xe71   :  { %5026 = vrcp.f32 %v3733_v47  ;;  %v3747_v21 = vand.u32 2147483648, %v3733_v47  ;;  %v3745_v25 = vand.u32 2147483647, %v3733_v47  ;;  %vm3741_vm8 = vweird.f32 %v3733_v47 }
 0xe72   :  { %5028 = vrcp.f32 %v3734_v23  ;;  %v5025_v17 = vpop.eup %5024  ;;  %v3762_v11 = vand.u32 2147483648, %v3734_v23  ;;  %v3760_v54 = vand.u32 2147483647, %v3734_v23  ;;  %vm3756_vm10 = vweird.f32 %v3734_v23 }
 0xe73   :  { %v3767_v38 = vmul.f32 %v5025_v17, %v3735_v43  ;;  %5030 = vtanh.f32 %v3721_v14  ;;  %v3748_v19 = vor.u32 1.1754944e-38, %v3747_v21  ;;  %vm3746_vm11 = vcmp.eq.f32.partialorder %v3745_v25, 8.507059e+37 }
 0xe74   :  { %v3763_v29 = vor.u32 1.1754944e-38, %v3762_v11  ;;  %vm3761_vm13 = vcmp.eq.f32.partialorder %v3760_v54, 8.507059e+37  ;;  %vm3772_vm0 = vweird.f32 %v5025_v17  ;;  %v3791_v14 = vrot.slane %v6264_v39, 6 }
 0xe75   :  { %v3768_v57 = vsub.f32 1.0, %v3767_v38  ;;  %vm3773_vm14 = vmor %vm3771_vm1, %vm3772_vm0 }
 0xe77   :  { %v5027_v46 = vpop.eup %5026  ;;  %v3769_v45 = vmul.f32 %v5025_v17, %v3768_v57 }
 0xe78   :  { %v5029_v55 = vpop.eup %5028  ;;  %v3737_v61 = vmul.f32 %v5027_v46, %v3733_v47  ;;  %vm3742_vm6 = vweird.f32 %v5027_v46 }
 0xe79   :  { %v3752_v27 = vmul.f32 %v5029_v55, %v3734_v23  ;;  %vm3757_vm7 = vweird.f32 %v5029_v55  ;;  %vm3743_vm9 = vmor %vm3741_vm8, %vm3742_vm6  ;;  %v5031_v31 = vpop.eup %5030  ;;  %v3770_v12 = vadd.f32 %v5025_v17, %v3769_v45 }
 0xe7a   :  { %v3738_v41 = vsub.f32 1.0, %v3737_v61  ;;  %vm3758_vm12 = vmor %vm3756_vm10, %vm3757_vm7 }
 0xe7b   :  { %v3753_v0 = vsub.f32 1.0, %v3752_v27  ;;  %v3774_v32 = vsel %vm3773_vm14, %v5025_v17, %v3770_v12 }
 0xe7c   :  { %v3739_v60 = vmul.f32 %v5027_v46, %v3738_v41  ;;  %v3779_v56 = vsel %vm3776_vm15, %v3778_v26, %v3774_v32 }
 0xe7d   :  { %v3754_v62 = vmul.f32 %v5029_v55, %v3753_v0 }
 0xe7e   :  { %v3740_v20 = vadd.f32 %v5027_v46, %v3739_v60 }
 0xe7f   :  { %v3755_v53 = vadd.f32 %v5029_v55, %v3754_v62 }
 0xe80   :  { %v3744_v2 = vsel %vm3743_vm9, %v5027_v46, %v3740_v20 }
 0xe81   :  { %v3749_v33 = vsel %vm3746_vm11, %v3748_v19, %v3744_v2  ;;  %v3759_v59 = vsel %vm3758_vm12, %v5029_v55, %v3755_v53 }
 0xe82   :  { %v3783_v28 = vmul.f32 %v5031_v31, %v3749_v33  ;;  %v3764_v4 = vsel %vm3761_vm13, %v3763_v29, %v3759_v59 }
 0xe83   :  { %v3782_v18 = vmul.f32 %v3764_v4, %v6434_v49  ;;  %v3790_v49 = vrot.slane %v6273_v9, 6 }
 0xe85   :  { %v6474_v5 = vadd.f32 %v3783_v28, %v3782_v18 }
 0xe87   :  { %5032 = vtanh.f32 %v6474_v5 }
 0xe8d   :  { %v5033_v30 = vpop.eup %5032 }
 0xe8e   :  { %v3786_v8 = vmul.f32 %v5033_v30, %v3779_v56 }
 0xe90   :  { %v3787_v34 = vpack.c.bf16 %v3786_v8, %v3786_v8 }
 0xe92   :  { %3804 = vmatmul.bf16.vlgmr.msrb.gmra.mxu2 %v3787_v34  ;;  %3817 = vmatmul.bf16.vlgmr.msrb.gmra.mxu3 %v3787_v34 }
 0xe93   :  { %3830 = vmatmul.bf16.vlgmr.msrb.gmra.mxu0 %v3787_v34  ;;  %3843 = vmatmul.bf16.vlgmr.msrb.gmra.mxu1 %v3787_v34 }
 0xf10   :  { %v3831_v63 = vpop.f32.mrf.mxu0  ;;  %v3844_v37 = vpop.f32.mrf.mxu1 }
 0xf11   :  { %v3832_v51 = vadd.f32 %v3831_v63, %v3790_v49  ;;  %v3845_v27 = vadd.f32 %v3844_v37, %v3791_v14 }
 0xf13   :  { %v4573_v50 = vmul.f32 -1.442695, %v3832_v51 }
 0xf15   :  { %5034 = vpow2.f32 %v4573_v50  ;;  %v3805_v6 = vpop.f32.mrf.mxu2  ;;  %v3818_v44 = vpop.f32.mrf.mxu3  ;;  %v4050_v50 = vld [vmem:[#allocation7 + $0x170] sm:$0xff] }
 0xf16   :  { %v3806_v16 = vadd.f32 %v3805_v6, %v3788_v42  ;;  %v3819_v10 = vadd.f32 %v3818_v44, %v3789_v58  ;;  %v4049_v42 = vld [vmem:[#allocation7 + $0x168] sm:$0xff]  ;;  %v4048_v58 = vld [vmem:[#allocation7 + $0x160] sm:$0xff]  ;;  %v4047_v6 = vld [vmem:[#allocation7 + $0x158] sm:$0xff] }
 0xf17   :  { %v4046_v44 = vld [vmem:[#allocation7 + $0x150] sm:$0xff] }
 0xf18   :  { %v4571_v15 = vmul.f32 -1.442695, %v3806_v16  ;;  %v4572_v13 = vmul.f32 -1.442695, %v3819_v10  ;;  %v3833_v22 = vpop.f32.mrf.mxu0  ;;  %v3846_v40 = vpop.f32.mrf.mxu1  ;;  %v4045_v16 = vld [vmem:[#allocation7 + $0x148] sm:$0xff]  ;;  %v3914_v10 = vrot.slane %v6273_v9, 7 }
 0xf19   :  { %v4044_v22 = vld [vmem:[#allocation7 + $0x140] sm:$0xff] }
 0xf1a   :  { %5036 = vpow2.f32 %v4571_v15 }
 0xf1b   :  { %v5035_v43 = vpop.eup %5034  ;;  %5038 = vpow2.f32 %v4572_v13 }
 0xf1c   :  { %v3859_v47 = vadd.f32 1.0, %v5035_v43  ;;  %v4043_v43 = vld [vmem:[#allocation7 + $0x138] sm:$0xff] }
 0xf1d   :  { %v3807_v52 = vpop.f32.mrf.mxu2  ;;  %v3820_v1 = vpop.f32.mrf.mxu3 }
 0xf1e   :  { %5040 = vrcp.f32 %v3859_v47  ;;  %v3901_v30 = vand.u32 2147483648, %v3859_v47  ;;  %vm3895_vm11 = vweird.f32 %v3859_v47  ;;  %v3899_v56 = vand.u32 2147483647, %v3859_v47 }
 0xf1f   :  { %v3912_v1 = vrot.slane %v6242_v24, 7  ;;  %v4038_v24 = vld [vmem:[#allocation7 + $0x110] sm:$0xff] }
 0xf20   :  { %v5037_v23 = vpop.eup %5036  ;;  %v3902_v34 = vor.u32 1.1754944e-38, %v3901_v30  ;;  %vm3900_vm13 = vcmp.eq.f32.partialorder %v3899_v56, 8.507059e+37 }
 0xf21   :  { %v5039_v48 = vpop.eup %5038  ;;  %v3857_v17 = vadd.f32 1.0, %v5037_v23  ;;  %v4042_v23 = vld [vmem:[#allocation7 + $0x130] sm:$0xff] }
 0xf22   :  { %v3858_v46 = vadd.f32 1.0, %v5039_v48 }
 0xf23   :  { %5042 = vrcp.f32 %v3857_v17  ;;  %v3871_v25 = vand.u32 2147483648, %v3857_v17  ;;  %v3869_v54 = vand.u32 2147483647, %v3857_v17  ;;  %vm3865_vm4 = vweird.f32 %v3857_v17 }
 0xf24   :  { %5044 = vrcp.f32 %v3858_v46  ;;  %v5041_v55 = vpop.eup %5040  ;;  %v3886_v57 = vand.u32 2147483648, %v3858_v46  ;;  %v3884_v19 = vand.u32 2147483647, %v3858_v46  ;;  %vm3880_vm6 = vweird.f32 %v3858_v46 }
 0xf25   :  { %v3891_v0 = vmul.f32 %v5041_v55, %v3859_v47  ;;  %5046 = vtanh.f32 %v3845_v27  ;;  %v3872_v29 = vor.u32 1.1754944e-38, %v3871_v25  ;;  %vm3870_vm7 = vcmp.eq.f32.partialorder %v3869_v54, 8.507059e+37 }
 0xf26   :  { %v3887_v59 = vor.u32 1.1754944e-38, %v3886_v57  ;;  %vm3885_vm9 = vcmp.eq.f32.partialorder %v3884_v19, 8.507059e+37  ;;  %vm3896_vm10 = vweird.f32 %v5041_v55  ;;  %v3913_v47 = vrot.slane %v6244_v3, 7  ;;  %v4037_v3 = vld [vmem:[#allocation7 + $0x108] sm:$0xff] }
 0xf27   :  { %v3892_v53 = vsub.f32 1.0, %v3891_v0  ;;  %vm3897_vm12 = vmor %vm3895_vm11, %vm3896_vm10 }
 0xf29   :  { %v5043_v61 = vpop.eup %5042  ;;  %v3893_v18 = vmul.f32 %v5041_v55, %v3892_v53  ;;  %v3915_v53 = vrot.slane %v6264_v39, 7 }
 0xf2a   :  { %v5045_v38 = vpop.eup %5044  ;;  %v3861_v41 = vmul.f32 %v5043_v61, %v3857_v17  ;;  %vm3866_vm2 = vweird.f32 %v5043_v61 }
 0xf2b   :  { %v3876_v21 = vmul.f32 %v5045_v38, %v3858_v46  ;;  %vm3881_vm3 = vweird.f32 %v5045_v38  ;;  %vm3867_vm5 = vmor %vm3865_vm4, %vm3866_vm2  ;;  %v5047_v45 = vpop.eup %5046  ;;  %v3894_v26 = vadd.f32 %v5041_v55, %v3893_v18  ;;  %v4041_v46 = vld [vmem:[#allocation7 + $0x128] sm:$0xff] }
 0xf2c   :  { %v3862_v60 = vsub.f32 1.0, %v3861_v41  ;;  %vm3882_vm8 = vmor %vm3880_vm6, %vm3881_vm3 }
 0xf2d   :  { %v3877_v11 = vsub.f32 1.0, %v3876_v21  ;;  %v3898_v8 = vsel %vm3897_vm12, %v5041_v55, %v3894_v26  ;;  %v4040_v55 = vld [vmem:[#allocation7 + $0x120] sm:$0xff]  ;;  %v4039_v21 = vld [vmem:[#allocation7 + $0x118] sm:$0xff] }
 0xf2e   :  { %v3863_v62 = vmul.f32 %v5043_v61, %v3862_v60  ;;  %v3903_v63 = vsel %vm3900_vm13, %v3902_v34, %v3898_v8 }
 0xf2f   :  { %v3878_v20 = vmul.f32 %v5045_v38, %v3877_v11 }
 0xf30   :  { %v3864_v2 = vadd.f32 %v5043_v61, %v3863_v62  ;;  %v4036_v62 = vld [vmem:[#allocation7 + $0x100] sm:$0xff] }
 0xf31   :  { %v3879_v31 = vadd.f32 %v5045_v38, %v3878_v20 }
 0xf32   :  { %v3868_v33 = vsel %vm3867_vm5, %v5043_v61, %v3864_v2 }
 0xf33   :  { %v3873_v28 = vsel %vm3870_vm7, %v3872_v29, %v3868_v33  ;;  %v3883_v4 = vsel %vm3882_vm8, %v5045_v38, %v3879_v31 }
 0xf34   :  { %v3907_v12 = vmul.f32 %v5047_v45, %v3873_v28  ;;  %v3888_v35 = vsel %vm3885_vm9, %v3887_v59, %v3883_v4 }
 0xf35   :  { %v3906_v36 = vmul.f32 %v3888_v35, %v6474_v5  ;;  %v4051_v5 = vld [vmem:[#allocation7 + $0x178] sm:$0xff] }
 0xf36   :  { %4052 = vmatpush.msrb.mxu2 %v4051_v5 }
 0xf37   :  { %v6482_v32 = vadd.f32 %v3907_v12, %v3906_v36 }
 0xf38   :  { %4053 = vmatpush.msrb.mxu2 %v4050_v50 }
 0xf39   :  { %5048 = vtanh.f32 %v6482_v32 }
 0xf3a   :  { %4054 = vmatpush.msrb.mxu2 %v4049_v42 }
 0xf3c   :  { %4055 = vmatpush.msrb.mxu2 %v4048_v58 }
 0xf3e   :  { %4056 = vmatpush.msrb.mxu2 %v4047_v6 }
 0xf3f   :  { %v5049_v49 = vpop.eup %5048 }
 0xf40   :  { %v3910_v37 = vmul.f32 %v5049_v49, %v3903_v63  ;;  %4057 = vmatpush.msrb.mxu2 %v4046_v44 }
 0xf42   :  { %v3911_v51 = vpack.c.bf16 %v3910_v37, %v3910_v37  ;;  %4058 = vmatpush.msrb.mxu2 %v4045_v16 }
 0xf44   :  { %3928 = vmatmul.bf16.vlgmr.msra.gmra.mxu2 %v3911_v51  ;;  %3941 = vmatmul.bf16.vlgmr.msra.gmra.mxu3 %v3911_v51 }
 0xf45   :  { %3954 = vmatmul.bf16.vlgmr.msra.gmra.mxu0 %v3911_v51  ;;  %3967 = vmatmul.bf16.vlgmr.msra.gmra.mxu1 %v3911_v51 }
 0xf46   :  { %4059 = vmatpush.msrb.mxu2 %v4044_v22 }
 0xf48   :  { %4060 = vmatpush.msrb.mxu2 %v4043_v43 }
 0xf4a   :  { %4061 = vmatpush.msrb.mxu2 %v4042_v23 }
 0xf4c   :  { %4062 = vmatpush.msrb.mxu2 %v4041_v46 }
 0xf4e   :  { %4063 = vmatpush.msrb.mxu2 %v4040_v55 }
 0xf50   :  { %4064 = vmatpush.msrb.mxu2 %v4039_v21 }
 0xf52   :  { %4065 = vmatpush.msrb.mxu2 %v4038_v24 }
 0xf54   :  { %4066 = vmatpush.msrb.mxu2 %v4037_v3 }
 0xf56   :  { %4067 = vmatpush.msrb.mxu2 %v4036_v62 }
 0xfc2   :  { %v3955_v15 = vpop.f32.mrf.mxu0  ;;  %v3968_v13 = vpop.f32.mrf.mxu1 }
 0xfc3   :  { %v3956_v40 = vadd.f32 %v3955_v15, %v3914_v10  ;;  %v3969_v31 = vadd.f32 %v3968_v13, %v3915_v53 }
 0xfc5   :  { %v4576_v52 = vmul.f32 -1.442695, %v3956_v40 }
 0xfc7   :  { %5050 = vpow2.f32 %v4576_v52  ;;  %v3929_v48 = vpop.f32.mrf.mxu2  ;;  %v3942_v17 = vpop.f32.mrf.mxu3 }
 0xfc8   :  { %v3930_v9 = vadd.f32 %v3929_v48, %v3912_v1  ;;  %v3943_v14 = vadd.f32 %v3942_v17, %v3913_v47 }
 0xfca   :  { %v4574_v61 = vmul.f32 -1.442695, %v3930_v9  ;;  %v4575_v27 = vmul.f32 -1.442695, %v3943_v14  ;;  %v3957_v38 = vpop.f32.mrf.mxu0  ;;  %v3970_v41 = vpop.f32.mrf.mxu1 }
 0xfcc   :  { %5052 = vpow2.f32 %v4574_v61 }
 0xfcd   :  { %v5051_v0 = vpop.eup %5050  ;;  %5054 = vpow2.f32 %v4575_v27 }
 0xfce   :  { %v3983_v11 = vadd.f32 1.0, %v5051_v0 }
 0xfcf   :  { %v3931_v60 = vpop.f32.mrf.mxu2  ;;  %v3944_v25 = vpop.f32.mrf.mxu3 }
 0xfd0   :  { %5056 = vrcp.f32 %v3983_v11  ;;  %v4025_v15 = vand.u32 2147483648, %v3983_v11  ;;  %vm4019_vm7 = vweird.f32 %v3983_v11  ;;  %v4023_v13 = vand.u32 2147483647, %v3983_v11 }
 0xfd2   :  { %v5053_v54 = vpop.eup %5052  ;;  %v4026_v40 = vor.u32 1.1754944e-38, %v4025_v15  ;;  %vm4024_vm9 = vcmp.eq.f32.partialorder %v4023_v13, 8.507059e+37 }
 0xfd3   :  { %v5055_v57 = vpop.eup %5054  ;;  %v3981_v20 = vadd.f32 1.0, %v5053_v54 }
 0xfd4   :  { %v3982_v19 = vadd.f32 1.0, %v5055_v57 }
 0xfd5   :  { %5058 = vrcp.f32 %v3981_v20  ;;  %v3995_v18 = vand.u32 2147483648, %v3981_v20  ;;  %v3993_v36 = vand.u32 2147483647, %v3981_v20  ;;  %vm3989_vm14 = vweird.f32 %v3981_v20 }
 0xfd6   :  { %5060 = vrcp.f32 %v3982_v19  ;;  %v5057_v2 = vpop.eup %5056  ;;  %v4010_v26 = vand.u32 2147483648, %v3982_v19  ;;  %v4008_v56 = vand.u32 2147483647, %v3982_v19  ;;  %vm4004_vm2 = vweird.f32 %v3982_v19 }
 0xfd7   :  { %v4015_v28 = vmul.f32 %v5057_v2, %v3983_v11  ;;  %5062 = vtanh.f32 %v3969_v31  ;;  %v3996_v34 = vor.u32 1.1754944e-38, %v3995_v18  ;;  %vm3994_vm3 = vcmp.eq.f32.partialorder %v3993_v36, 8.507059e+37 }
 0xfd8   :  { %v4011_v37 = vor.u32 1.1754944e-38, %v4010_v26  ;;  %vm4009_vm5 = vcmp.eq.f32.partialorder %v4008_v56, 8.507059e+37  ;;  %vm4020_vm6 = vweird.f32 %v5057_v2 }
 0xfd9   :  { %v4016_v8 = vsub.f32 1.0, %v4015_v28  ;;  %vm4021_vm8 = vmor %vm4019_vm7, %vm4020_vm6 }
 0xfdb   :  { %v5059_v29 = vpop.eup %5058  ;;  %v4017_v42 = vmul.f32 %v5057_v2, %v4016_v8 }
 0xfdc   :  { %v5061_v33 = vpop.eup %5060  ;;  %v3985_v59 = vmul.f32 %v5059_v29, %v3981_v20  ;;  %vm3990_vm0 = vweird.f32 %v5059_v29 }
 0xfdd   :  { %v4000_v45 = vmul.f32 %v5061_v33, %v3982_v19  ;;  %vm4005_vm1 = vweird.f32 %v5061_v33  ;;  %vm3991_vm15 = vmor %vm3989_vm14, %vm3990_vm0  ;;  %v5063_v51 = vpop.eup %5062  ;;  %v4018_v10 = vadd.f32 %v5057_v2, %v4017_v42 }
 0xfde   :  { %v3986_v4 = vsub.f32 1.0, %v3985_v59  ;;  %vm4006_vm4 = vmor %vm4004_vm2, %vm4005_vm1 }
 0xfdf   :  { %v4001_v12 = vsub.f32 1.0, %v4000_v45  ;;  %v4022_v22 = vsel %vm4021_vm8, %v5057_v2, %v4018_v10 }
 0xfe0   :  { %v3987_v35 = vmul.f32 %v5059_v29, %v3986_v4  ;;  %v4027_v52 = vsel %vm4024_vm9, %v4026_v40, %v4022_v22 }
 0xfe1   :  { %v4002_v30 = vmul.f32 %v5061_v33, %v4001_v12 }
 0xfe2   :  { %v3988_v39 = vadd.f32 %v5059_v29, %v3987_v35 }
 0xfe3   :  { %v4003_v49 = vadd.f32 %v5061_v33, %v4002_v30 }
 0xfe4   :  { %v3992_v63 = vsel %vm3991_vm15, %v5059_v29, %v3988_v39 }
 0xfe5   :  { %v3997_v5 = vsel %vm3994_vm3, %v3996_v34, %v3992_v63  ;;  %v4007_v50 = vsel %vm4006_vm4, %v5061_v33, %v4003_v49 }
 0xfe6   :  { %v4031_v58 = vmul.f32 %v5063_v51, %v3997_v5  ;;  %v4012_v6 = vsel %vm4009_vm5, %v4011_v37, %v4007_v50 }
 0xfe7   :  { %v4030_v44 = vmul.f32 %v4012_v6, %v6482_v32  ;;  %v4073_v32 = vld [vmem:[%s6504_s7] sm:$0x1] }
 0xfe9   :  { %v4032_v16 = vadd.f32 %v4031_v58, %v4030_v44 }
 0xfeb   :  { %5064 = vtanh.f32 %v4032_v16 }
 0xff1   :  { %v5065_v43 = vpop.eup %5064 }
 0xff2   :  { %v4034_v1 = vmul.f32 %v5065_v43, %v4027_v52 }
 0xff4   :  { %4068 = vmatmul.f32.vlgmr.msrb.gmra.mxu2 %v4034_v1 }
0x1077   :  { %v4069_v47 = vpop.f32.mrf.mxu2 }
0x1078   :  { %v4072_v23 = vadd.f32 %v4069_v47, %v6269_v7 }
0x107a   :  { %v4074_v48 = vadd.f32 %v4073_v32, %v4072_v23 }
0x107c   :  { %v4075_v17 = vmax.f32 %v4074_v48, 0.0 }
0x107e   :  { %4076 = vst [vmem:[#allocation8] sm:$0x1] %v4075_v17 }
0x107f   :  { %4087 = dma.vmem_to_hbm [thread:$0]  %s4083_s10, 16, %s4085_s13, [#allocation4]  }
0x1080   :  { %5166 = dma.done.wait [#allocation4], 16  }
0x1081   :  { %5167 = vsyncadd [#allocation4], 4294967280 }
0x1082   :  { %4092 = vsyncpa [#allocation3], 1 }
0x1083   :  { %4093 = vsyncpa [#allocation6], 1 }
0x1084   :  { %4094 = vsyncpa [#allocation4], 1 }

</bundles_post_ra>
